<compile_context>
chip_gen: v7x
topology: tpu7x:2x2x1
jax: 0.10.0
libtpu: 0.0.40
codegen_flags: <defaults>
</compile_context>

<pallas_src>
import jax
import jax.numpy as jnp
from jax.experimental import pallas as pl
from jax.experimental.pallas import tpu as pltpu

HIDDEN = 128   # lane-aligned padded hidden width (covers both 100 and 50)
TB_UNIT = 1024  # TB must be a multiple of 1024 so the (TB//128,128) out block
                # keeps its sublane dim a multiple of 8


def _round_up(n, m):
    return ((n + m - 1) // m) * m


def _choose_tb(B, tile_batch):
    """Pick the batch tile: large (amortize per-step overhead), multiple of
    TB_UNIT (lane-dense tail), and <= ~half the batch when possible so the
    parallel grid axis has >= 2 steps (v7x has 2 TensorCores)."""
    tb_cap = max(TB_UNIT, (tile_batch // TB_UNIT) * TB_UNIT)
    if B <= TB_UNIT:
        return min(tb_cap, _round_up(B, TB_UNIT))
    half = _round_up((B + 1) // 2, TB_UNIT)
    return min(tb_cap, half)


def anet3_kernel(x_ref, w1_ref, b1_ref, w2_ref, b2_ref, w3_ref, b3_ref, o_ref):
    tb = x_ref.shape[0]

    # layer1 + relu1  (dropout1 is identity in eval mode)
    # bf16 MXU operands, f32 accumulation / bias / activation.
    h1 = jnp.dot(x_ref[...].astype(jnp.bfloat16), w1_ref[...],
                 preferred_element_type=jnp.float32)
    h1 = jnp.maximum(h1 + b1_ref[...], 0.0)           # (TB, 128); cols >=100 are 0

    # layer2 + relu2
    h2 = jnp.dot(h1.astype(jnp.bfloat16), w2_ref[...],
                 preferred_element_type=jnp.float32)
    h2 = jnp.maximum(h2 + b2_ref[...], 0.0)           # (TB, 128); cols >=50 are 0

    # layer3 (out_features=1): VPU multiply + minor-dim reduction, laid out so
    # the result is a lane-dense (TB//128, 128) block instead of a
    # 1/128-occupancy (TB, 1) column.
    prod = (h2 * w3_ref[...]).reshape(tb // 128, 128, HIDDEN)
    h3 = jnp.sum(prod, axis=-1) + b3_ref[...]          # (TB//128, 128)

    # sigmoid = 1 / (1 + exp(-x)): EUP exp + approx reciprocal (free-ish slots)
    o_ref[...] = pl.reciprocal(1.0 + jnp.exp(-h3), approx=True).astype(o_ref.dtype)


def anet3_forward(x, padded_params, *, tile_batch=4096):
    """x: (B, in_feature) f32.  padded_params from prepare_params()."""
    w1, b1, w2, b2, w3_row, b3 = padded_params
    B, F = x.shape

    TB = _choose_tb(B, tile_batch)
    B_pad = _round_up(B, TB)
    if B_pad != B:
        x = jnp.pad(x, ((0, B_pad - B), (0, 0)))
    grid = (B_pad // TB,)

    const = lambda shape: pl.BlockSpec(shape, lambda i: (0,) * len(shape))

    # Advisory cost for XLA scheduling (exp + reciprocal per output element).
    flops = 2 * B_pad * (F * HIDDEN + HIDDEN * HIDDEN + HIDDEN)
    weight_bytes = (w1.size * 2 + w2.size * 2
                    + (b1.size + b2.size + w3_row.size + b3.size) * 4)
    bytes_accessed = B_pad * F * 4 + B_pad * 4 + weight_bytes

    # VMEM footprint estimate: double-buffered x / out streams, double-buffered
    # resident weights, plus the (TB,128) f32 h1/h2/prod temporaries.  Only set
    # an explicit limit when we would crowd v5e's 16 MiB scoped default.
    vmem_bytes = (2 * TB * F * 4 + 2 * TB * 4
                  + 2 * weight_bytes
                  + 3 * TB * HIDDEN * 4)
    compiler_kwargs = dict(dimension_semantics=("parallel",))
    if vmem_bytes > (12 << 20):
        compiler_kwargs["vmem_limit_bytes"] = int(
            min(max(2 * vmem_bytes, 32 << 20), 48 << 20))

    out = pl.pallas_call(
        anet3_kernel,
        out_shape=jax.ShapeDtypeStruct((B_pad // 128, 128), jnp.float32),
        grid=grid,
        in_specs=[
            pl.BlockSpec((TB, F), lambda i: (i, 0)),   # streamed batch tile
            const(w1.shape), const(b1.shape),          # resident weights/biases
            const(w2.shape), const(b2.shape),
            const(w3_row.shape), const(b3.shape),
        ],
        out_specs=pl.BlockSpec((TB // 128, 128), lambda i: (i, 0)),  # lane-dense
        compiler_params=pltpu.CompilerParams(**compiler_kwargs),
        cost_estimate=pl.CostEstimate(
            flops=flops, transcendentals=2 * B_pad, bytes_accessed=bytes_accessed),
    )(x, w1, b1, w2, b2, w3_row, b3)
    return out.reshape(B_pad, 1)[:B]


def init_params(key, in_feature):
    """PyTorch-shaped params: nn.Linear-style U(-1/sqrt(fan_in), 1/sqrt(fan_in)).

    Weights stored as (in_dim, out_dim) so kernel computes x @ W + b
    (== PyTorch x @ weight.T + bias).
    """
    dims = [(in_feature, 100), (100, 50), (50, 1)]
    params = []
    for i, (fan_in, fan_out) in enumerate(dims):
        kw, kb = jax.random.split(jax.random.fold_in(key, i))
        bound = 1.0 / jnp.sqrt(float(fan_in))
        w = jax.random.uniform(kw, (fan_in, fan_out), jnp.float32, -bound, bound)
        b = jax.random.uniform(kb, (1, fan_out), jnp.float32, -bound, bound)
        params.extend([w, b])
    return tuple(params)


def prepare_params(params):
    """Zero-pad hidden dims to 128 lanes; store w1/w2 as bf16 MXU operands.

    Padding is exact even in bf16: padded b1/b2 columns are 0 -> ReLU keeps
    them 0 -> padded rows of w2 / lanes of w3_row (also exactly 0) never
    contribute.
    """
    w1, b1, w2, b2, w3, b3 = params
    in_f = w1.shape[0]
    w1p = jnp.zeros((in_f, HIDDEN), jnp.float32).at[:, :100].set(w1).astype(jnp.bfloat16)
    b1p = jnp.zeros((1, HIDDEN), jnp.float32).at[:, :100].set(b1)
    w2p = jnp.zeros((HIDDEN, HIDDEN), jnp.float32).at[:100, :50].set(w2).astype(jnp.bfloat16)
    b2p = jnp.zeros((1, HIDDEN), jnp.float32).at[:, :50].set(b2)
    w3_row = jnp.zeros((1, HIDDEN), jnp.float32).at[:, :50].set(w3[:, 0])
    b3p = b3.reshape(1, 1).astype(jnp.float32)
    return (w1p, b1p, w2p, b2p, w3_row, b3p)


if __name__ == "__main__":
    key = jax.random.PRNGKey(0)
    in_feature = 32
    batch = 8

    params = init_params(key, in_feature)
    padded = prepare_params(params)
    x = jax.random.normal(jax.random.fold_in(key, 100), (batch, in_feature), jnp.float32)

    out = anet3_forward(x, padded)
    out = jax.block_until_ready(out)

    # Reference in plain JAX with the original (unpadded) params, using the
    # same bf16-operand / f32-accumulate matmul numerics as the kernel.
    w1, b1, w2, b2, w3, b3 = params
    h = jnp.maximum(jnp.dot(x.astype(jnp.bfloat16), w1.astype(jnp.bfloat16),
                            preferred_element_type=jnp.float32) + b1, 0.0)
    h = jnp.maximum(jnp.dot(h.astype(jnp.bfloat16), w2.astype(jnp.bfloat16),
                            preferred_element_type=jnp.float32) + b2, 0.0)
    ref = jax.nn.sigmoid(h @ w3 + b3)

    assert out.shape == (batch, 1)
    assert jnp.allclose(out, ref, atol=5e-3, rtol=5e-3), \
        float(jnp.max(jnp.abs(out - ref)))

    print("KERNEL_OK")
</pallas_src>

<mosaic_0001>
module attributes {stable_mosaic.version = 11 : i64} {
  func.func @anet3_kernel(%arg0: i32, %arg1: memref<1024x32xf32, #tpu.memory_space<vmem>>, %arg2: memref<32x128xbf16, #tpu.memory_space<vmem>>, %arg3: memref<1x128xf32, #tpu.memory_space<vmem>>, %arg4: memref<128x128xbf16, #tpu.memory_space<vmem>>, %arg5: memref<1x128xf32, #tpu.memory_space<vmem>>, %arg6: memref<1x128xf32, #tpu.memory_space<vmem>>, %arg7: memref<1x1xf32, #tpu.memory_space<vmem>>, %arg8: memref<8x128xf32, #tpu.memory_space<vmem>>) attributes {dimension_semantics = [#tpu.dimension_semantics<parallel>], iteration_bounds = array<i64: 1>, scalar_prefetch = 0 : i64, scratch_operands = 0 : i64, tpu.core_type = #tpu.core_type<tc>, window_params = [{transform_indices = @transform_0, window_bounds = array<i64: 1024, 32>}, {pipeline_mode = #tpu.pipeline_mode<synchronous>, transform_indices = @transform_1, window_bounds = array<i64: 32, 128>}, {pipeline_mode = #tpu.pipeline_mode<synchronous>, transform_indices = @transform_2, window_bounds = array<i64: 1, 128>}, {pipeline_mode = #tpu.pipeline_mode<synchronous>, transform_indices = @transform_3, window_bounds = array<i64: 128, 128>}, {pipeline_mode = #tpu.pipeline_mode<synchronous>, transform_indices = @transform_4, window_bounds = array<i64: 1, 128>}, {pipeline_mode = #tpu.pipeline_mode<synchronous>, transform_indices = @transform_5, window_bounds = array<i64: 1, 128>}, {pipeline_mode = #tpu.pipeline_mode<synchronous>, transform_indices = @transform_6, window_bounds = array<i64: 1, 1>}, {transform_indices = @transform_7, window_bounds = array<i64: 8, 128>}]} {
    %c0 = arith.constant 0 : index
    %c0_0 = arith.constant 0 : index
    %0 = vector.load %arg1[%c0, %c0_0] : memref<1024x32xf32, #tpu.memory_space<vmem>>, vector<1024x32xf32>
    %1 = arith.truncf %0 : vector<1024x32xf32> to vector<1024x32xbf16>
    %c0_1 = arith.constant 0 : index
    %c0_2 = arith.constant 0 : index
    %2 = vector.load %arg2[%c0_1, %c0_2] : memref<32x128xbf16, #tpu.memory_space<vmem>>, vector<32x128xbf16>
    %cst = arith.constant dense<0.000000e+00> : vector<1024x128xf32>
    %3 = tpu.matmul %1, %2, %cst {dimension_numbers = #tpu.dot_dimension_numbers<[1], [0], [0], [1], [0, 0, 1, 1], [], []>} : vector<1024x32xbf16>, vector<32x128xbf16>, vector<1024x128xf32> -> vector<1024x128xf32>
    %c0_3 = arith.constant 0 : index
    %c0_4 = arith.constant 0 : index
    %4 = vector.load %arg3[%c0_3, %c0_4] : memref<1x128xf32, #tpu.memory_space<vmem>>, vector<1x128xf32>
    %5 = vector.broadcast %4 : vector<1x128xf32> to vector<1024x128xf32>
    %6 = arith.addf %3, %5 : vector<1024x128xf32>
    %cst_5 = arith.constant 0.000000e+00 : f32
    %7 = vector.broadcast %cst_5 : f32 to vector<1024x128xf32>
    %8 = arith.maximumf %6, %7 : vector<1024x128xf32>
    %9 = arith.truncf %8 : vector<1024x128xf32> to vector<1024x128xbf16>
    %c0_6 = arith.constant 0 : index
    %c0_7 = arith.constant 0 : index
    %10 = vector.load %arg4[%c0_6, %c0_7] : memref<128x128xbf16, #tpu.memory_space<vmem>>, vector<128x128xbf16>
    %cst_8 = arith.constant dense<0.000000e+00> : vector<1024x128xf32>
    %11 = tpu.matmul %9, %10, %cst_8 {dimension_numbers = #tpu.dot_dimension_numbers<[1], [0], [0], [1], [0, 0, 1, 1], [], []>} : vector<1024x128xbf16>, vector<128x128xbf16>, vector<1024x128xf32> -> vector<1024x128xf32>
    %c0_9 = arith.constant 0 : index
    %c0_10 = arith.constant 0 : index
    %12 = vector.load %arg5[%c0_9, %c0_10] : memref<1x128xf32, #tpu.memory_space<vmem>>, vector<1x128xf32>
    %13 = vector.broadcast %12 : vector<1x128xf32> to vector<1024x128xf32>
    %14 = arith.addf %11, %13 : vector<1024x128xf32>
    %cst_11 = arith.constant 0.000000e+00 : f32
    %15 = vector.broadcast %cst_11 : f32 to vector<1024x128xf32>
    %16 = arith.maximumf %14, %15 : vector<1024x128xf32>
    %c0_12 = arith.constant 0 : index
    %c0_13 = arith.constant 0 : index
    %17 = vector.load %arg6[%c0_12, %c0_13] : memref<1x128xf32, #tpu.memory_space<vmem>>, vector<1x128xf32>
    %18 = vector.broadcast %17 : vector<1x128xf32> to vector<1024x128xf32>
    %19 = arith.mulf %16, %18 : vector<1024x128xf32>
    %20 = vector.shape_cast %19 : vector<1024x128xf32> to vector<8x128x128xf32>
    %cst_14 = arith.constant dense<0.000000e+00> : vector<8x128xf32>
    %21 = vector.multi_reduction <add>, %20, %cst_14 [2] : vector<8x128x128xf32> to vector<8x128xf32>
    %c0_15 = arith.constant 0 : index
    %c0_16 = arith.constant 0 : index
    %22 = vector.load %arg7[%c0_15, %c0_16] : memref<1x1xf32, #tpu.memory_space<vmem>>, vector<1x1xf32>
    %23 = vector.broadcast %22 : vector<1x1xf32> to vector<8x128xf32>
    %24 = arith.addf %21, %23 : vector<8x128xf32>
    %cst_17 = arith.constant 0.000000e+00 : f32
    %25 = vector.broadcast %cst_17 : f32 to vector<8x128xf32>
    %26 = arith.subf %25, %24 : vector<8x128xf32>
    %27 = math.exp %26 : vector<8x128xf32>
    %cst_18 = arith.constant 1.000000e+00 : f32
    %28 = vector.broadcast %cst_18 : f32 to vector<8x128xf32>
    %29 = arith.addf %28, %27 : vector<8x128xf32>
    %30 = tpu.reciprocal %29 {approx = true} : vector<8x128xf32> -> vector<8x128xf32>
    %c0_19 = arith.constant 0 : index
    %c0_20 = arith.constant 0 : index
    %31 = vector.load %arg8[%c0_19, %c0_20] : memref<8x128xf32, #tpu.memory_space<vmem>>, vector<8x128xf32>
    tpu.vector_store %arg8[%c0_19, %c0_20], %30 {strides = array<i32>} : memref<8x128xf32, #tpu.memory_space<vmem>>, vector<8x128xf32>,
    return
  }
  func.func @transform_0(%arg0: i32) -> (i32, i32) {
    %c0_i32 = arith.constant 0 : i32
    %c0_i32_0 = arith.constant 0 : i32
    return %arg0, %c0_i32 : i32, i32
  }
  func.func @transform_1(%arg0: i32) -> (i32, i32) {
    %c0_i32 = arith.constant 0 : i32
    %c0_i32_0 = arith.constant 0 : i32
    %c0_i32_1 = arith.constant 0 : i32
    return %c0_i32, %c0_i32_0 : i32, i32
  }
  func.func @transform_2(%arg0: i32) -> (i32, i32) {
    %c0_i32 = arith.constant 0 : i32
    %c0_i32_0 = arith.constant 0 : i32
    %c0_i32_1 = arith.constant 0 : i32
    return %c0_i32, %c0_i32_0 : i32, i32
  }
  func.func @transform_3(%arg0: i32) -> (i32, i32) {
    %c0_i32 = arith.constant 0 : i32
    %c0_i32_0 = arith.constant 0 : i32
    %c0_i32_1 = arith.constant 0 : i32
    return %c0_i32, %c0_i32_0 : i32, i32
  }
  func.func @transform_4(%arg0: i32) -> (i32, i32) {
    %c0_i32 = arith.constant 0 : i32
    %c0_i32_0 = arith.constant 0 : i32
    %c0_i32_1 = arith.constant 0 : i32
    return %c0_i32, %c0_i32_0 : i32, i32
  }
  func.func @transform_5(%arg0: i32) -> (i32, i32) {
    %c0_i32 = arith.constant 0 : i32
    %c0_i32_0 = arith.constant 0 : i32
    %c0_i32_1 = arith.constant 0 : i32
    return %c0_i32, %c0_i32_0 : i32, i32
  }
  func.func @transform_6(%arg0: i32) -> (i32, i32) {
    %c0_i32 = arith.constant 0 : i32
    %c0_i32_0 = arith.constant 0 : i32
    %c0_i32_1 = arith.constant 0 : i32
    return %c0_i32, %c0_i32_0 : i32, i32
  }
  func.func @transform_7(%arg0: i32) -> (i32, i32) {
    %c0_i32 = arith.constant 0 : i32
    %c0_i32_0 = arith.constant 0 : i32
    return %arg0, %c0_i32 : i32, i32
  }
}

</mosaic_0001>

<bundles_post_ra>
// kernel: tpu_custom_call.1
= control target key start
LH: loop header
LB: loop body
LE: loop exit
PB: predicated region body
PF: predicated region fallthrough
CT: control target
= control target key end

     0   :  { %s7023_s0 = inlined_call_operand.vmem [shape: f32[1024,32], index: 0, kind: input, shape index: {}]   ;;  %s7024_s1 = inlined_call_operand.vmem [shape: bf16[32,128], index: 1, kind: input, shape index: {}]   ;;  %s7025_s2 = inlined_call_operand.vmem [shape: f32[1,128], index: 2, kind: input, shape index: {}]   ;;  %s7026_s3 = inlined_call_operand.vmem [shape: bf16[128,128], index: 3, kind: input, shape index: {}]   ;;  %s7027_s4 = inlined_call_operand.vmem [shape: f32[1,128], index: 4, kind: input, shape index: {}]   ;;  %s7028_s5 = inlined_call_operand.vmem [shape: f32[1,128], index: 5, kind: input, shape index: {}]   ;;  %s7029_s6 = inlined_call_operand.<no memory space> [shape: f32[1,1], index: 6, kind: input, shape index: {}]   ;;  %s7030_s7 = inlined_call_operand.hbm [shape: f32[8,128], index: 7, kind: output, shape index: {}]  }
   0x1   :  { %v12_v0 = vstv %s7029_s6 }
   0x2   :  { %13 = vst [vmem:[#allocation2] sm:$0x1] %v12_v0 }
   0x3   :  { %v4421_v1 = vld [vmem:[%s7024_s1] sm:$0xff]   ;;  %v4422_v2 = vld [vmem:[%s7024_s1 + $0x8] sm:$0xff]   ;;  %vm245_vm0 = vcmask 261120   ;;  %v32_v5 = vld [vmem:[%s7023_s0 + $0x10] sm:$0xff] }
   0x4   :  { %4126 = vmatprep.subr.bf16.mxu0 %v4421_v1  ;;  %v30_v3 = vld [vmem:[%s7023_s0] sm:$0xff]  ;;  %v31_v4 = vld [vmem:[%s7023_s0 + $0x8] sm:$0xff]  ;;  %v33_v7 = vld [vmem:[%s7023_s0 + $0x18] sm:$0xff] }
   0x5   :  { %4127 = vmatpush3.bf16.msra.mxu0 %v4421_v1  ;;  %v158_v6 = vpack.c.bf16 %v31_v4, %v30_v3  ;;  %v4423_v8 = vld [vmem:[%s7026_s3] sm:$0xff]   ;;  %v35_v10 = vld [vmem:[%s7023_s0 + $0x28] sm:$0xff]  ;;  %v159_v11 = vpack.c.bf16 %v33_v7, %v32_v5  ;;  %v36_v14 = vld [vmem:[%s7023_s0 + $0x30] sm:$0xff] }
   0x6   :  { %4128 = vmatprep.subr.bf16.mxu0 %v4422_v2  ;;  %v34_v9 = vld [vmem:[%s7023_s0 + $0x20] sm:$0xff]  ;;  %4402 = vmatprep.subr.bf16.mxu1 %v4423_v8  ;;  %v4424_v13 = vld [vmem:[%s7026_s3 + $0x8] sm:$0xff]   ;;  %v37_v15 = vld [vmem:[%s7023_s0 + $0x38] sm:$0xff] }
   0x7   :  { %4130 = vmatprep.mubr.msk.bf16.mxu0 %vm245_vm0, %v158_v6  ;;  %v160_v12 = vpack.c.bf16 %v35_v10, %v34_v9  ;;  %4410 = vmatpush3.bf16.msra.mxu1 %v4423_v8  ;;  %v38_v16 = vld [vmem:[%s7023_s0 + $0x40] sm:$0xff]  ;;  %v39_v17 = vld [vmem:[%s7023_s0 + $0x48] sm:$0xff]  ;;  %v161_v18 = vpack.c.bf16 %v37_v15, %v36_v14  ;;  %v4425_v20 = vld [vmem:[%s7026_s3 + $0x10] sm:$0xff]  }
   0x8   :  { %4403 = vmatprep.subr.bf16.mxu1 %v4424_v13  ;;  %v162_v19 = vpack.c.bf16 %v39_v17, %v38_v16  ;;  %v40_v21 = vld [vmem:[%s7023_s0 + $0x50] sm:$0xff]  ;;  %v41_v22 = vld [vmem:[%s7023_s0 + $0x58] sm:$0xff]  ;;  %v42_v23 = vld [vmem:[%s7023_s0 + $0x60] sm:$0xff] }
   0x9   :  { %4129 = vmatpush3.bf16.msra.mxu0 %v4422_v2  ;;  %v43_v24 = vld [vmem:[%s7023_s0 + $0x68] sm:$0xff]  ;;  %v163_v25 = vpack.c.bf16 %v41_v22, %v40_v21  ;;  %v4426_v27 = vld [vmem:[%s7026_s3 + $0x18] sm:$0xff]   ;;  %v44_v28 = vld [vmem:[%s7023_s0 + $0x70] sm:$0xff] }
   0xa   :  { %4258 = vmatprep.subr.bf16.mxu0 %v4423_v8  ;;  %v164_v26 = vpack.c.bf16 %v43_v24, %v42_v23  ;;  %v45_v29 = vld [vmem:[%s7023_s0 + $0x78] sm:$0xff]  ;;  %v46_v30 = vld [vmem:[%s7023_s0 + $0x80] sm:$0xff]  ;;  %v47_v31 = vld [vmem:[%s7023_s0 + $0x88] sm:$0xff] }
   0xb   :  { %4411 = vmatpush3.bf16.msra.mxu1 %v4424_v13  ;;  %v4427_v32 = vld [vmem:[%s7026_s3 + $0x20] sm:$0xff]   ;;  %v165_v33 = vpack.c.bf16 %v45_v29, %v44_v28  ;;  %v166_v34 = vpack.c.bf16 %v47_v31, %v46_v30  ;;  %v48_v35 = vld [vmem:[%s7023_s0 + $0x90] sm:$0xff]  ;;  %v49_v36 = vld [vmem:[%s7023_s0 + $0x98] sm:$0xff] }
   0xc   :  { %4131 = vmatmul.mubr.msk.bf16.vlgmr.msra.gmra.mrb[0].mxu0 %vm245_vm0, %v159_v11  ;;  %4404 = vmatprep.subr.bf16.mxu1 %v4425_v20  ;;  %v50_v37 = vld [vmem:[%s7023_s0 + $0xa0] sm:$0xff]  ;;  %v51_v38 = vld [vmem:[%s7023_s0 + $0xa8] sm:$0xff] }
   0xd   :  { %4259 = vmatpush3.bf16.msra.mxu0 %v4423_v8  ;;  %4134 = vmatprep.mubr.msk.bf16.mxu0 %vm245_vm0, %v160_v12 }
   0xe   :  { %4260 = vmatprep.subr.bf16.mxu0 %v4424_v13 }
   0xf   :  { %4412 = vmatpush3.bf16.msra.mxu1 %v4425_v20 }
  0x10   :  { %4405 = vmatprep.subr.bf16.mxu1 %v4426_v27 }
  0x11   :  { %4261 = vmatpush3.bf16.msra.mxu0 %v4424_v13 }
  0x12   :  { %4262 = vmatprep.subr.bf16.mxu0 %v4425_v20 }
  0x13   :  { %4413 = vmatpush3.bf16.msra.mxu1 %v4426_v27 }
  0x14   :  { %4135 = vmatmul.mubr.msk.bf16.gmra.mrb[4].mxu0 %vm245_vm0, %v161_v18  ;;  %4406 = vmatprep.subr.bf16.mxu1 %v4427_v32 }
  0x15   :  { %4138 = vmatprep.mubr.msk.bf16.mxu0 %vm245_vm0, %v162_v19  ;;  %4263 = vmatpush3.bf16.msra.mxu0 %v4425_v20 }
  0x16   :  { %4264 = vmatprep.subr.bf16.mxu0 %v4426_v27 }
  0x17   :  { %4414 = vmatpush3.bf16.msra.mxu1 %v4427_v32 }
  0x19   :  { %4265 = vmatpush3.bf16.msra.mxu0 %v4426_v27 }
  0x1a   :  { %4266 = vmatprep.subr.bf16.mxu0 %v4427_v32 }
  0x1c   :  { %4139 = vmatmul.mubr.msk.bf16.gmra.mrb[8].mxu0 %vm245_vm0, %v163_v25 }
  0x1d   :  { %4142 = vmatprep.mubr.msk.bf16.mxu0 %vm245_vm0, %v164_v26  ;;  %4267 = vmatpush3.bf16.msra.mxu0 %v4427_v32 }
  0x24   :  { %4143 = vmatmul.mubr.msk.bf16.gmra.mrb[12].mxu0 %vm245_vm0, %v165_v33 }
  0x25   :  { %4146 = vmatprep.mubr.msk.bf16.mxu0 %vm245_vm0, %v166_v34 }
  0x26   :  { %14 = vsyncpa [#allocation4], 0  ;;  %v167_v39 = vpack.c.bf16 %v49_v36, %v48_v35  ;;  %v168_v40 = vpack.c.bf16 %v51_v38, %v50_v37  ;;  %v4428_v41 = vld [vmem:[%s7026_s3 + $0x28] sm:$0xff]   ;;  %v52_v42 = vld [vmem:[%s7023_s0 + $0xb0] sm:$0xff]  ;;  %vm3227_vm1 = vcmask 130112   ;;  %vm3234_vm2 = vcmask 195712  }
  0x27   :  { %v53_v43 = vld [vmem:[%s7023_s0 + $0xb8] sm:$0xff]  ;;  %v54_v44 = vld [vmem:[%s7023_s0 + $0xc0] sm:$0xff]  ;;  %v55_v45 = vld [vmem:[%s7023_s0 + $0xc8] sm:$0xff]  ;;  %4268 = vmatprep.subr.bf16.mxu0 %v4428_v41  ;;  %4407 = vmatprep.subr.bf16.mxu1 %v4428_v41  ;;  %vm3241_vm3 = vcmask 261312   ;;  %vm3248_vm4 = vcmask 326912   ;;  %vm3255_vm5 = vcmask 392512  }
  0x28   :  { %4269 = vmatpush3.bf16.msra.mxu0 %v4428_v41  ;;  %4415 = vmatpush3.bf16.msra.mxu1 %v4428_v41  ;;  %v169_v46 = vpack.c.bf16 %v53_v43, %v52_v42  ;;  %v170_v47 = vpack.c.bf16 %v55_v45, %v54_v44  ;;  %v56_v48 = vld [vmem:[%s7023_s0 + $0xd0] sm:$0xff]  ;;  %v57_v49 = vld [vmem:[%s7023_s0 + $0xd8] sm:$0xff]  ;;  %v58_v50 = vld [vmem:[%s7023_s0 + $0xe0] sm:$0xff]  ;;  %vm3262_vm6 = vcmask 458112   ;;  %vm3269_vm7 = vcmask 523712  }
  0x29   :  { %v59_v51 = vld [vmem:[%s7023_s0 + $0xe8] sm:$0xff]  ;;  %v171_v52 = vpack.c.bf16 %v57_v49, %v56_v48  ;;  %v60_v54 = vld [vmem:[%s7023_s0 + $0xf0] sm:$0xff]  ;;  %v61_v55 = vld [vmem:[%s7023_s0 + $0xf8] sm:$0xff]  ;;  %vm7051_vm8 = vcmask 589312   ;;  %vm3283_vm9 = vcmask 654912   ;;  %vm3290_vm10 = vcmask 720512  }
  0x2a   :  { %v172_v53 = vpack.c.bf16 %v59_v51, %v58_v50  ;;  %v62_v56 = vld [vmem:[%s7023_s0 + $0x100] sm:$0xff]  ;;  %v63_v57 = vld [vmem:[%s7023_s0 + $0x108] sm:$0xff]  ;;  %v173_v58 = vpack.c.bf16 %v61_v55, %v60_v54  ;;  %v64_v60 = vld [vmem:[%s7023_s0 + $0x110] sm:$0xff]  ;;  %vm3297_vm11 = vcmask 786112   ;;  %vm3304_vm12 = vcmask 851712  }
  0x2b   :  { %v174_v59 = vpack.c.bf16 %v63_v57, %v62_v56  ;;  %v65_v61 = vld [vmem:[%s7023_s0 + $0x118] sm:$0xff]  ;;  %v66_v62 = vld [vmem:[%s7023_s0 + $0x120] sm:$0xff]  ;;  %v67_v63 = vld [vmem:[%s7023_s0 + $0x128] sm:$0xff]  ;;  %vm3311_vm13 = vcmask 917312   ;;  %vm3318_vm14 = vcmask 982912   ;;  %vm3325_vm15 = vcmask 1048512  }
  0x2c   :  { %4147 = vmatmul.mubr.msk.bf16.gmra.mrb[16].mxu0 %vm245_vm0, %v167_v39  ;;  %v175_v0 = vpack.c.bf16 %v65_v61, %v64_v60  ;;  %v176_v1 = vpack.c.bf16 %v67_v63, %v66_v62  ;;  %v4429_v2 = vld [vmem:[%s7026_s3 + $0x30] sm:$0xff]   ;;  %v69_v4 = vld [vmem:[%s7023_s0 + $0x138] sm:$0xff]  ;;  %v70_v5 = vld [vmem:[%s7023_s0 + $0x140] sm:$0xff] }
  0x2d   :  { %4150 = vmatprep.mubr.msk.bf16.mxu0 %vm245_vm0, %v168_v40  ;;  %v68_v3 = vld [vmem:[%s7023_s0 + $0x130] sm:$0xff]  ;;  %v71_v6 = vld [vmem:[%s7023_s0 + $0x148] sm:$0xff]  ;;  %4270 = vmatprep.subr.bf16.mxu0 %v4429_v2  ;;  %v73_v10 = vld [vmem:[%s7023_s0 + $0x158] sm:$0xff] }
  0x2e   :  { %4408 = vmatprep.subr.bf16.mxu1 %v4429_v2  ;;  %4271 = vmatpush3.bf16.msra.mxu0 %v4429_v2  ;;  %v177_v7 = vpack.c.bf16 %v69_v4, %v68_v3  ;;  %v178_v8 = vpack.c.bf16 %v71_v6, %v70_v5  ;;  %v72_v9 = vld [vmem:[%s7023_s0 + $0x150] sm:$0xff]  ;;  %v74_v11 = vld [vmem:[%s7023_s0 + $0x160] sm:$0xff]  ;;  %v75_v12 = vld [vmem:[%s7023_s0 + $0x168] sm:$0xff] }
  0x2f   :  { %4416 = vmatpush3.bf16.msra.mxu1 %v4429_v2  ;;  %v179_v13 = vpack.c.bf16 %v73_v10, %v72_v9  ;;  %v180_v14 = vpack.c.bf16 %v75_v12, %v74_v11  ;;  %v76_v15 = vld [vmem:[%s7023_s0 + $0x170] sm:$0xff]  ;;  %v77_v16 = vld [vmem:[%s7023_s0 + $0x178] sm:$0xff]  ;;  %v78_v17 = vld [vmem:[%s7023_s0 + $0x180] sm:$0xff] }
  0x30   :  { %v79_v18 = vld [vmem:[%s7023_s0 + $0x188] sm:$0xff]  ;;  %v181_v19 = vpack.c.bf16 %v77_v16, %v76_v15  ;;  %v80_v21 = vld [vmem:[%s7023_s0 + $0x190] sm:$0xff]  ;;  %v81_v22 = vld [vmem:[%s7023_s0 + $0x198] sm:$0xff] }
  0x31   :  { %v182_v20 = vpack.c.bf16 %v79_v18, %v78_v17  ;;  %v82_v23 = vld [vmem:[%s7023_s0 + $0x1a0] sm:$0xff]  ;;  %v83_v24 = vld [vmem:[%s7023_s0 + $0x1a8] sm:$0xff]  ;;  %v183_v25 = vpack.c.bf16 %v81_v22, %v80_v21  ;;  %v4430_v27 = vld [vmem:[%s7026_s3 + $0x38] sm:$0xff]  }
  0x32   :  { %v184_v26 = vpack.c.bf16 %v83_v24, %v82_v23  ;;  %v84_v28 = vld [vmem:[%s7023_s0 + $0x1b0] sm:$0xff]  ;;  %v85_v29 = vld [vmem:[%s7023_s0 + $0x1b8] sm:$0xff]  ;;  %v86_v30 = vld [vmem:[%s7023_s0 + $0x1c0] sm:$0xff]  ;;  %4272 = vmatprep.subr.bf16.mxu0 %v4430_v27  ;;  %4409 = vmatprep.subr.bf16.mxu1 %v4430_v27 }
  0x33   :  { %v87_v31 = vld [vmem:[%s7023_s0 + $0x1c8] sm:$0xff]  ;;  %4273 = vmatpush3.bf16.msra.mxu0 %v4430_v27  ;;  %4417 = vmatpush3.bf16.msra.mxu1 %v4430_v27  ;;  %v185_v32 = vpack.c.bf16 %v85_v29, %v84_v28  ;;  %v88_v34 = vld [vmem:[%s7023_s0 + $0x1d0] sm:$0xff]  ;;  %v89_v35 = vld [vmem:[%s7023_s0 + $0x1d8] sm:$0xff] }
  0x34   :  { %4151 = vmatmul.mubr.msk.bf16.gmra.mrb[20].mxu0 %vm245_vm0, %v169_v46  ;;  %v186_v33 = vpack.c.bf16 %v87_v31, %v86_v30  ;;  %v90_v36 = vld [vmem:[%s7023_s0 + $0x1e0] sm:$0xff]  ;;  %v91_v37 = vld [vmem:[%s7023_s0 + $0x1e8] sm:$0xff]  ;;  %v187_v38 = vpack.c.bf16 %v89_v35, %v88_v34  ;;  %v92_v40 = vld [vmem:[%s7023_s0 + $0x1f0] sm:$0xff] }
  0x35   :  { %4154 = vmatprep.mubr.msk.bf16.mxu0 %vm245_vm0, %v170_v47  ;;  %v188_v39 = vpack.c.bf16 %v91_v37, %v90_v36  ;;  %v93_v41 = vld [vmem:[%s7023_s0 + $0x1f8] sm:$0xff]  ;;  %v94_v42 = vld [vmem:[%s7023_s0 + $0x200] sm:$0xff]  ;;  %v95_v43 = vld [vmem:[%s7023_s0 + $0x208] sm:$0xff] }
  0x36   :  { %v189_v44 = vpack.c.bf16 %v93_v41, %v92_v40  ;;  %v190_v45 = vpack.c.bf16 %v95_v43, %v94_v42  ;;  %v96_v46 = vld [vmem:[%s7023_s0 + $0x210] sm:$0xff]  ;;  %v97_v47 = vld [vmem:[%s7023_s0 + $0x218] sm:$0xff]  ;;  %v98_v48 = vld [vmem:[%s7023_s0 + $0x220] sm:$0xff] }
  0x37   :  { %v99_v49 = vld [vmem:[%s7023_s0 + $0x228] sm:$0xff]  ;;  %v191_v50 = vpack.c.bf16 %v97_v47, %v96_v46  ;;  %v102_v54 = vld [vmem:[%s7023_s0 + $0x240] sm:$0xff]  ;;  %v112_v6 = vld [vmem:[%s7023_s0 + $0x290] sm:$0xff] }
  0x38   :  { %v192_v51 = vpack.c.bf16 %v99_v49, %v98_v48  ;;  %v103_v55 = vld [vmem:[%s7023_s0 + $0x248] sm:$0xff]  ;;  %v106_v60 = vld [vmem:[%s7023_s0 + $0x260] sm:$0xff]  ;;  %v116_v12 = vld [vmem:[%s7023_s0 + $0x2b0] sm:$0xff] }
  0x39   :  { %v194_v57 = vpack.c.bf16 %v103_v55, %v102_v54  ;;  %v107_v61 = vld [vmem:[%s7023_s0 + $0x268] sm:$0xff]  ;;  %v110_v2 = vld [vmem:[%s7023_s0 + $0x280] sm:$0xff]  ;;  %v120_v18 = vld [vmem:[%s7023_s0 + $0x2d0] sm:$0xff] }
  0x3a   :  { %v196_v63 = vpack.c.bf16 %v107_v61, %v106_v60  ;;  %v111_v3 = vld [vmem:[%s7023_s0 + $0x288] sm:$0xff]  ;;  %v124_v24 = vld [vmem:[%s7023_s0 + $0x2f0] sm:$0xff]  ;;  %v129_v31 = vld [vmem:[%s7023_s0 + $0x318] sm:$0xff] }
  0x3b   :  { %v198_v5 = vpack.c.bf16 %v111_v3, %v110_v2  ;;  %v115_v9 = vld [vmem:[%s7023_s0 + $0x2a8] sm:$0xff]  ;;  %v128_v30 = vld [vmem:[%s7023_s0 + $0x310] sm:$0xff]  ;;  %v133_v37 = vld [vmem:[%s7023_s0 + $0x338] sm:$0xff] }
  0x3c   :  { %4155 = vmatmul.mubr.msk.bf16.gmra.mrb[24].mxu0 %vm245_vm0, %v171_v52  ;;  %v100_v52 = vld [vmem:[%s7023_s0 + $0x230] sm:$0xff]  ;;  %v119_v15 = vld [vmem:[%s7023_s0 + $0x2c8] sm:$0xff]  ;;  %v207_v34 = vpack.c.bf16 %v129_v31, %v128_v30  ;;  %v137_v43 = vld [vmem:[%s7023_s0 + $0x358] sm:$0xff] }
  0x3d   :  { %4158 = vmatprep.mubr.msk.bf16.mxu0 %vm245_vm0, %v172_v53  ;;  %v101_v53 = vld [vmem:[%s7023_s0 + $0x238] sm:$0xff]  ;;  %v123_v21 = vld [vmem:[%s7023_s0 + $0x2e8] sm:$0xff]  ;;  %v132_v36 = vld [vmem:[%s7023_s0 + $0x330] sm:$0xff] }
  0x3e   :  { %v193_v56 = vpack.c.bf16 %v101_v53, %v100_v52  ;;  %v127_v27 = vld [vmem:[%s7023_s0 + $0x308] sm:$0xff]  ;;  %v209_v40 = vpack.c.bf16 %v133_v37, %v132_v36  ;;  %v136_v42 = vld [vmem:[%s7023_s0 + $0x350] sm:$0xff]  ;;  %v5434_v48 = vld [vmem:[%s7025_s2] ss:$0 sm:$0xff] }
  0x3f   :  { %v211_v46 = vpack.c.bf16 %v137_v43, %v136_v42  ;;  %v140_v49 = vld [vmem:[%s7023_s0 + $0x370] sm:$0xff]  ;;  %v143_v52 = vld [vmem:[%s7023_s0 + $0x388] sm:$0xff] }
  0x40   :  { %v144_v3 = vld [vmem:[%s7023_s0 + $0x390] sm:$0xff] }
  0x41   :  { %v152_v43 = vld [vmem:[%s7023_s0 + $0x3d0] sm:$0xff] }
  0x44   :  { %4159 = vmatmul.mubr.msk.bf16.gmra.mrb[28].mxu0 %vm245_vm0, %v173_v58  ;;  %v104_v58 = vld [vmem:[%s7023_s0 + $0x250] sm:$0xff] }
  0x45   :  { %4162 = vmatprep.mubr.msk.bf16.mxu0 %vm245_vm0, %v174_v59  ;;  %v105_v59 = vld [vmem:[%s7023_s0 + $0x258] sm:$0xff] }
  0x46   :  { %v195_v62 = vpack.c.bf16 %v105_v59, %v104_v58 }
  0x4c   :  { %4163 = vmatmul.mubr.msk.bf16.gmra.mrb[32].mxu0 %vm245_vm0, %v175_v0  ;;  %v108_v0 = vld [vmem:[%s7023_s0 + $0x270] sm:$0xff] }
  0x4d   :  { %4166 = vmatprep.mubr.msk.bf16.mxu0 %vm245_vm0, %v176_v1  ;;  %v109_v1 = vld [vmem:[%s7023_s0 + $0x278] sm:$0xff] }
  0x4e   :  { %v197_v4 = vpack.c.bf16 %v109_v1, %v108_v0 }
  0x54   :  { %4167 = vmatmul.mubr.msk.bf16.gmra.mrb[36].mxu0 %vm245_vm0, %v177_v7  ;;  %v113_v7 = vld [vmem:[%s7023_s0 + $0x298] sm:$0xff] }
  0x55   :  { %4170 = vmatprep.mubr.msk.bf16.mxu0 %vm245_vm0, %v178_v8  ;;  %v114_v8 = vld [vmem:[%s7023_s0 + $0x2a0] sm:$0xff]  ;;  %v199_v10 = vpack.c.bf16 %v113_v7, %v112_v6  ;;  %v147_v7 = vld [vmem:[%s7023_s0 + $0x3a8] sm:$0xff] }
  0x56   :  { %v200_v11 = vpack.c.bf16 %v115_v9, %v114_v8  ;;  %v146_v6 = vld [vmem:[%s7023_s0 + $0x3a0] sm:$0xff] }
  0x5c   :  { %4171 = vmatmul.mubr.msk.bf16.gmra.mrb[40].mxu0 %vm245_vm0, %v179_v13  ;;  %v117_v13 = vld [vmem:[%s7023_s0 + $0x2b8] sm:$0xff] }
  0x5d   :  { %4174 = vmatprep.mubr.msk.bf16.mxu0 %vm245_vm0, %v180_v14  ;;  %v118_v14 = vld [vmem:[%s7023_s0 + $0x2c0] sm:$0xff]  ;;  %v201_v16 = vpack.c.bf16 %v117_v13, %v116_v12 }
  0x5e   :  { %v202_v17 = vpack.c.bf16 %v119_v15, %v118_v14  ;;  %v216_v15 = vpack.c.bf16 %v147_v7, %v146_v6 }
  0x64   :  { %4175 = vmatmul.mubr.msk.bf16.gmra.mrb[44].mxu0 %vm245_vm0, %v181_v19  ;;  %v121_v19 = vld [vmem:[%s7023_s0 + $0x2d8] sm:$0xff] }
  0x65   :  { %4178 = vmatprep.mubr.msk.bf16.mxu0 %vm245_vm0, %v182_v20  ;;  %v122_v20 = vld [vmem:[%s7023_s0 + $0x2e0] sm:$0xff]  ;;  %v203_v22 = vpack.c.bf16 %v121_v19, %v120_v18 }
  0x66   :  { %v204_v23 = vpack.c.bf16 %v123_v21, %v122_v20 }
  0x6c   :  { %4179 = vmatmul.mubr.msk.bf16.gmra.mrb[48].mxu0 %vm245_vm0, %v183_v25  ;;  %v125_v25 = vld [vmem:[%s7023_s0 + $0x2f8] sm:$0xff] }
  0x6d   :  { %4182 = vmatprep.mubr.msk.bf16.mxu0 %vm245_vm0, %v184_v26  ;;  %v126_v26 = vld [vmem:[%s7023_s0 + $0x300] sm:$0xff]  ;;  %v205_v28 = vpack.c.bf16 %v125_v25, %v124_v24  ;;  %v149_v24 = vld [vmem:[%s7023_s0 + $0x3b8] sm:$0xff] }
  0x6e   :  { %v206_v29 = vpack.c.bf16 %v127_v27, %v126_v26  ;;  %v150_v26 = vld [vmem:[%s7023_s0 + $0x3c0] sm:$0xff]  ;;  %v151_v27 = vld [vmem:[%s7023_s0 + $0x3c8] sm:$0xff] }
  0x74   :  { %4183 = vmatmul.mubr.msk.bf16.gmra.mrb[52].mxu0 %vm245_vm0, %v185_v32  ;;  %v130_v32 = vld [vmem:[%s7023_s0 + $0x320] sm:$0xff] }
  0x75   :  { %4186 = vmatprep.mubr.msk.bf16.mxu0 %vm245_vm0, %v186_v33  ;;  %v131_v33 = vld [vmem:[%s7023_s0 + $0x328] sm:$0xff] }
  0x76   :  { %v208_v35 = vpack.c.bf16 %v131_v33, %v130_v32 }
  0x7c   :  { %4187 = vmatmul.mubr.msk.bf16.gmra.mrb[56].mxu0 %vm245_vm0, %v187_v38  ;;  %v134_v38 = vld [vmem:[%s7023_s0 + $0x340] sm:$0xff] }
  0x7d   :  { %4190 = vmatprep.mubr.msk.bf16.mxu0 %vm245_vm0, %v188_v39  ;;  %v135_v39 = vld [vmem:[%s7023_s0 + $0x348] sm:$0xff] }
  0x7e   :  { %v210_v41 = vpack.c.bf16 %v135_v39, %v134_v38 }
  0x84   :  { %4191 = vmatmul.mubr.msk.bf16.gmra.mrb[60].mxu0 %vm245_vm0, %v189_v44  ;;  %v138_v44 = vld [vmem:[%s7023_s0 + $0x360] sm:$0xff] }
  0x85   :  { %4194 = vmatprep.mubr.msk.bf16.mxu0 %vm245_vm0, %v190_v45  ;;  %v139_v45 = vld [vmem:[%s7023_s0 + $0x368] sm:$0xff] }
  0x86   :  { %v212_v47 = vpack.c.bf16 %v139_v45, %v138_v44  ;;  %v153_v44 = vld [vmem:[%s7023_s0 + $0x3d8] sm:$0xff] }
  0x8c   :  { %4195 = vmatmul.mubr.msk.bf16.gmra.mrb[64].mxu0 %vm245_vm0, %v191_v50  ;;  %v141_v50 = vld [vmem:[%s7023_s0 + $0x378] sm:$0xff] }
  0x8d   :  { %4198 = vmatprep.mubr.msk.bf16.mxu0 %vm245_vm0, %v192_v51  ;;  %v142_v51 = vld [vmem:[%s7023_s0 + $0x380] sm:$0xff] }
  0x8e   :  { %v214_v59 = vpack.c.bf16 %v143_v52, %v142_v51 }
  0x94   :  { %4199 = vmatmul.mubr.msk.bf16.gmra.mrb[68].mxu0 %vm245_vm0, %v193_v56  ;;  %v213_v56 = vpack.c.bf16 %v141_v50, %v140_v49 }
  0x95   :  { %4202 = vmatprep.mubr.msk.bf16.mxu0 %vm245_vm0, %v194_v57 }
  0x9c   :  { %4203 = vmatmul.mubr.msk.bf16.gmra.mrb[72].mxu0 %vm245_vm0, %v195_v62 }
  0x9d   :  { %4206 = vmatprep.mubr.msk.bf16.mxu0 %vm245_vm0, %v196_v63 }
  0xa4   :  { %4207 = vmatmul.mubr.msk.bf16.gmra.mrb[76].mxu0 %vm245_vm0, %v197_v4  ;;  %v145_v4 = vld [vmem:[%s7023_s0 + $0x398] sm:$0xff] }
  0xa5   :  { %4210 = vmatprep.mubr.msk.bf16.mxu0 %vm245_vm0, %v198_v5  ;;  %v215_v12 = vpack.c.bf16 %v145_v4, %v144_v3 }
  0xac   :  { %4211 = vmatmul.mubr.msk.bf16.gmra.mrb[80].mxu0 %vm245_vm0, %v199_v10 }
  0xad   :  { %4214 = vmatprep.mubr.msk.bf16.mxu0 %vm245_vm0, %v200_v11 }
  0xb4   :  { %4215 = vmatmul.mubr.msk.bf16.gmra.mrb[84].mxu0 %vm245_vm0, %v201_v16 }
  0xb5   :  { %4218 = vmatprep.mubr.msk.bf16.mxu0 %vm245_vm0, %v202_v17 }
  0xbc   :  { %4219 = vmatmul.mubr.msk.bf16.gmra.mrb[88].mxu0 %vm245_vm0, %v203_v22 }
  0xbd   :  { %4222 = vmatprep.mubr.msk.bf16.mxu0 %vm245_vm0, %v204_v23  ;;  %v148_v23 = vld [vmem:[%s7023_s0 + $0x3b0] sm:$0xff] }
  0xbe   :  { %v217_v32 = vpack.c.bf16 %v149_v24, %v148_v23 }
  0xc4   :  { %4223 = vmatmul.mubr.msk.bf16.gmra.mrb[92].mxu0 %vm245_vm0, %v205_v28 }
  0xc5   :  { %4226 = vmatprep.mubr.msk.bf16.mxu0 %vm245_vm0, %v206_v29 }
  0xcc   :  { %4227 = vmatmul.mubr.msk.bf16.gmra.mrb[96].mxu0 %vm245_vm0, %v207_v34 }
  0xcd   :  { %4230 = vmatprep.mubr.msk.bf16.mxu0 %vm245_vm0, %v208_v35  ;;  %v218_v35 = vpack.c.bf16 %v151_v27, %v150_v26 }
  0xd4   :  { %4231 = vmatmul.mubr.msk.bf16.gmra.mrb[100].mxu0 %vm245_vm0, %v209_v40 }
  0xd5   :  { %4234 = vmatprep.mubr.msk.bf16.mxu0 %vm245_vm0, %v210_v41 }
  0xdc   :  { %4235 = vmatmul.mubr.msk.bf16.gmra.mrb[104].mxu0 %vm245_vm0, %v211_v46  ;;  %v154_v46 = vld [vmem:[%s7023_s0 + $0x3e0] sm:$0xff] }
  0xdd   :  { %4238 = vmatprep.mubr.msk.bf16.mxu0 %vm245_vm0, %v212_v47  ;;  %v155_v47 = vld [vmem:[%s7023_s0 + $0x3e8] sm:$0xff] }
  0xdf   :  { %v4132_v53 = vpop.f32.mrb[0].mxu0 }
  0xe0   :  { %v481_v54 = vadd.f32 %v4132_v53, %v5434_v48  ;;  %v472_v55 = vpop.f32.mrb[1].mxu0  ;;  %v219_v53 = vpack.c.bf16 %v153_v44, %v152_v43 }
  0xe1   :  { %v473_v57 = vadd.f32 %v5434_v48, %v472_v55  ;;  %v4133_v58 = vpop.f32.mrb[2].mxu0 }
  0xe2   :  { %v484_v60 = vadd.f32 %v4133_v58, %v5434_v48  ;;  %v475_v61 = vpop.f32.mrb[3].mxu0  ;;  %v985_v63 = vmax.f32 %v481_v54, 0.0 }
  0xe3   :  { %v476_v62 = vadd.f32 %v5434_v48, %v475_v61  ;;  %v983_v1 = vmax.f32 %v473_v57, 0.0 }
  0xe4   :  { %v986_v0 = vmax.f32 %v484_v60, 0.0  ;;  %4239 = vmatmul.mubr.msk.bf16.gmra.mrb[108].mxu0 %vm245_vm0, %v213_v56  ;;  %v220_v56 = vpack.c.bf16 %v155_v47, %v154_v46 }
  0xe5   :  { %v984_v2 = vmax.f32 %v476_v62, 0.0  ;;  %4242 = vmatprep.mubr.msk.bf16.mxu0 %vm245_vm0, %v214_v59 }
  0xe6   :  { %v5461_v5 = vpack.c.bf16 %v986_v0, %v985_v63  ;;  %v156_v0 = vld [vmem:[%s7023_s0 + $0x3f0] sm:$0xff] }
  0xe7   :  { %v5469_v8 = vpack.c.bf16 %v984_v2, %v983_v1  ;;  %v4136_v9 = vpop.f32.mrb[4].mxu0  ;;  %v157_v1 = vld [vmem:[%s7023_s0 + $0x3f8] sm:$0xff] }
  0xe8   :  { %v497_v10 = vadd.f32 %v4136_v9, %v5434_v48  ;;  %v488_v11 = vpop.f32.mrb[5].mxu0  ;;  %v221_v9 = vpack.c.bf16 %v157_v1, %v156_v0 }
  0xe9   :  { %v489_v13 = vadd.f32 %v5434_v48, %v488_v11  ;;  %v4137_v14 = vpop.f32.mrb[6].mxu0 }
  0xea   :  { %v500_v16 = vadd.f32 %v4137_v14, %v5434_v48  ;;  %v491_v17 = vpop.f32.mrb[7].mxu0  ;;  %v989_v19 = vmax.f32 %v497_v10, 0.0 }
  0xeb   :  { %v492_v18 = vadd.f32 %v5434_v48, %v491_v17  ;;  %v987_v21 = vmax.f32 %v489_v13, 0.0 }
  0xec   :  { %v990_v20 = vmax.f32 %v500_v16, 0.0  ;;  %4243 = vmatmul.mubr.msk.bf16.gmra.mrb[112].mxu0 %vm245_vm0, %v215_v12 }
  0xed   :  { %v988_v22 = vmax.f32 %v492_v18, 0.0  ;;  %4246 = vmatprep.mubr.msk.bf16.mxu0 %vm245_vm0, %v216_v15 }
  0xee   :  { %v1114_v25 = vpack.c.bf16 %v990_v20, %v989_v19 }
  0xef   :  { %v4140_v28 = vpop.f32.mrb[8].mxu0  ;;  %v1113_v29 = vpack.c.bf16 %v988_v22, %v987_v21 }
  0xf0   :  { %v513_v30 = vadd.f32 %v4140_v28, %v5434_v48  ;;  %v504_v31 = vpop.f32.mrb[9].mxu0 }
  0xf1   :  { %v505_v33 = vadd.f32 %v5434_v48, %v504_v31  ;;  %v4141_v34 = vpop.f32.mrb[10].mxu0  ;;  %4278 = vmatprep.mubr.bf16.mxu1 %v1113_v29 }
  0xf2   :  { %v516_v36 = vadd.f32 %v4141_v34, %v5434_v48  ;;  %v507_v37 = vpop.f32.mrb[11].mxu0  ;;  %4279 = vmatmul.mubr.bf16.vlgmr.msra.gmra.mrb[0].mxu1 %v1114_v25  ;;  %v993_v39 = vmax.f32 %v513_v30, 0.0 }
  0xf3   :  { %v508_v38 = vadd.f32 %v5434_v48, %v507_v37  ;;  %v991_v41 = vmax.f32 %v505_v33, 0.0 }
  0xf4   :  { %v994_v40 = vmax.f32 %v516_v36, 0.0  ;;  %4247 = vmatmul.mubr.msk.bf16.gmra.mrb[116].mxu0 %vm245_vm0, %v217_v32 }
  0xf5   :  { %v992_v42 = vmax.f32 %v508_v38, 0.0  ;;  %4250 = vmatprep.mubr.msk.bf16.mxu0 %vm245_vm0, %v218_v35 }
  0xf6   :  { %v1116_v45 = vpack.c.bf16 %v994_v40, %v993_v39 }
  0xf7   :  { %v1115_v49 = vpack.c.bf16 %v992_v42, %v991_v41  ;;  %v4144_v50 = vpop.f32.mrb[12].mxu0 }
  0xf8   :  { %v529_v51 = vadd.f32 %v4144_v50, %v5434_v48  ;;  %v520_v52 = vpop.f32.mrb[13].mxu0 }
  0xf9   :  { %v521_v54 = vadd.f32 %v5434_v48, %v520_v52  ;;  %v4145_v55 = vpop.f32.mrb[14].mxu0  ;;  %4282 = vmatprep.mubr.bf16.mxu1 %v1115_v49 }
  0xfa   :  { %v532_v57 = vadd.f32 %v4145_v55, %v5434_v48  ;;  %v523_v58 = vpop.f32.mrb[15].mxu0  ;;  %4283 = vmatmul.mubr.bf16.gmra.mrb[4].mxu1 %v1116_v45  ;;  %v997_v60 = vmax.f32 %v529_v51, 0.0 }
  0xfb   :  { %v524_v59 = vadd.f32 %v5434_v48, %v523_v58  ;;  %v995_v62 = vmax.f32 %v521_v54, 0.0 }
  0xfc   :  { %v998_v61 = vmax.f32 %v532_v57, 0.0  ;;  %4251 = vmatmul.mubr.msk.bf16.gmra.mrb[120].mxu0 %vm245_vm0, %v219_v53 }
  0xfd   :  { %v996_v63 = vmax.f32 %v524_v59, 0.0  ;;  %4254 = vmatprep.mubr.msk.bf16.mxu0 %vm245_vm0, %v220_v56 }
  0xfe   :  { %v1118_v2 = vpack.c.bf16 %v998_v61, %v997_v60 }
  0xff   :  { %v1117_v3 = vpack.c.bf16 %v996_v63, %v995_v62  ;;  %v4148_v4 = vpop.f32.mrb[16].mxu0 }
 0x100   :  { %v545_v6 = vadd.f32 %v4148_v4, %v5434_v48  ;;  %v536_v7 = vpop.f32.mrb[17].mxu0 }
 0x101   :  { %v537_v10 = vadd.f32 %v5434_v48, %v536_v7  ;;  %v4149_v11 = vpop.f32.mrb[18].mxu0  ;;  %4286 = vmatprep.mubr.bf16.mxu1 %v1117_v3 }
 0x102   :  { %v548_v12 = vadd.f32 %v4149_v11, %v5434_v48  ;;  %v539_v13 = vpop.f32.mrb[19].mxu0  ;;  %4287 = vmatmul.mubr.bf16.gmra.mrb[8].mxu1 %v1118_v2  ;;  %v1001_v15 = vmax.f32 %v545_v6, 0.0 }
 0x103   :  { %v540_v14 = vadd.f32 %v5434_v48, %v539_v13  ;;  %v999_v17 = vmax.f32 %v537_v10, 0.0 }
 0x104   :  { %v1002_v16 = vmax.f32 %v548_v12, 0.0  ;;  %4255 = vmatmul.mubr.msk.bf16.gmra.mrb[124].mxu0 %vm245_vm0, %v221_v9  ;;  %vm3880_vm0 = vcmask 1041409  }
 0x105   :  { %v1000_v18 = vmax.f32 %v540_v14, 0.0  ;;  %4274 = vmatprep.mubr.bf16.mxu0 %v5469_v8 }
 0x106   :  { %v1120_v19 = vpack.c.bf16 %v1002_v16, %v1001_v15 }
 0x107   :  { %v1119_v20 = vpack.c.bf16 %v1000_v18, %v999_v17  ;;  %v4152_v21 = vpop.f32.mrb[20].mxu0 }
 0x108   :  { %v561_v22 = vadd.f32 %v4152_v21, %v5434_v48  ;;  %v552_v23 = vpop.f32.mrb[21].mxu0 }
 0x109   :  { %v553_v24 = vadd.f32 %v5434_v48, %v552_v23  ;;  %v4153_v25 = vpop.f32.mrb[22].mxu0  ;;  %4290 = vmatprep.mubr.bf16.mxu1 %v1119_v20 }
 0x10a   :  { %v564_v26 = vadd.f32 %v4153_v25, %v5434_v48  ;;  %v555_v27 = vpop.f32.mrb[23].mxu0  ;;  %4291 = vmatmul.mubr.bf16.gmra.mrb[12].mxu1 %v1120_v19  ;;  %v1005_v29 = vmax.f32 %v561_v22, 0.0  ;;  %v3987_v25 = vld [vmem:[#allocation2] ss:$0 sm:$0xff] }
 0x10b   :  { %v556_v28 = vadd.f32 %v5434_v48, %v555_v27  ;;  %v1003_v8 = vmax.f32 %v553_v24, 0.0  ;;  %v4972_v24 = vmov 0  }
 0x10c   :  { %v1006_v30 = vmax.f32 %v564_v26, 0.0  ;;  %4275 = vmatmul.mubr.bf16.vlgmr.msra.gmra.mrb[128].mxu0 %v5461_v5  ;;  %4420 = vset.pattern.permute.xlu0 %v4972_v24 }
 0x10d   :  { %v1004_v31 = vmax.f32 %v556_v28, 0.0  ;;  %2317 = vperm.xlu0 %4420, %v3987_v25  }
 0x10e   :  { %v1122_v32 = vpack.c.bf16 %v1006_v30, %v1005_v29 }
 0x10f   :  { %v1121_v33 = vpack.c.bf16 %v1004_v31, %v1003_v8  ;;  %v4156_v34 = vpop.f32.mrb[24].mxu0 }
 0x110   :  { %v577_v35 = vadd.f32 %v4156_v34, %v5434_v48  ;;  %v568_v36 = vpop.f32.mrb[25].mxu0 }
 0x111   :  { %v569_v37 = vadd.f32 %v5434_v48, %v568_v36  ;;  %v4157_v38 = vpop.f32.mrb[26].mxu0  ;;  %4294 = vmatprep.mubr.bf16.mxu1 %v1121_v33 }
 0x112   :  { %v580_v39 = vadd.f32 %v4157_v38, %v5434_v48  ;;  %v571_v40 = vpop.f32.mrb[27].mxu0  ;;  %4295 = vmatmul.mubr.bf16.gmra.mrb[16].mxu1 %v1122_v32  ;;  %v1009_v42 = vmax.f32 %v577_v35, 0.0 }
 0x113   :  { %v572_v41 = vadd.f32 %v5434_v48, %v571_v40  ;;  %v1007_v43 = vmax.f32 %v569_v37, 0.0 }
 0x114   :  { %v1010_v5 = vmax.f32 %v580_v39, 0.0 }
 0x115   :  { %v1008_v44 = vmax.f32 %v572_v41, 0.0 }
 0x116   :  { %v1124_v45 = vpack.c.bf16 %v1010_v5, %v1009_v42 }
 0x117   :  { %v1123_v46 = vpack.c.bf16 %v1008_v44, %v1007_v43  ;;  %v4160_v47 = vpop.f32.mrb[28].mxu0 }
 0x118   :  { %v593_v49 = vadd.f32 %v4160_v47, %v5434_v48  ;;  %v584_v50 = vpop.f32.mrb[29].mxu0 }
 0x119   :  { %v585_v51 = vadd.f32 %v5434_v48, %v584_v50  ;;  %v4161_v52 = vpop.f32.mrb[30].mxu0  ;;  %4298 = vmatprep.mubr.bf16.mxu1 %v1123_v46 }
 0x11a   :  { %v596_v53 = vadd.f32 %v4161_v52, %v5434_v48  ;;  %v587_v54 = vpop.f32.mrb[31].mxu0  ;;  %4299 = vmatmul.mubr.bf16.gmra.mrb[20].mxu1 %v1124_v45  ;;  %v1013_v56 = vmax.f32 %v593_v49, 0.0 }
 0x11b   :  { %v588_v55 = vadd.f32 %v5434_v48, %v587_v54  ;;  %v1011_v58 = vmax.f32 %v585_v51, 0.0 }
 0x11c   :  { %v1014_v57 = vmax.f32 %v596_v53, 0.0 }
 0x11d   :  { %v1012_v59 = vmax.f32 %v588_v55, 0.0 }
 0x11e   :  { %v1126_v60 = vpack.c.bf16 %v1014_v57, %v1013_v56 }
 0x11f   :  { %v1125_v61 = vpack.c.bf16 %v1012_v59, %v1011_v58  ;;  %v4164_v62 = vpop.f32.mrb[32].mxu0 }
 0x120   :  { %v609_v63 = vadd.f32 %v4164_v62, %v5434_v48  ;;  %v600_v0 = vpop.f32.mrb[33].mxu0 }
 0x121   :  { %v601_v1 = vadd.f32 %v5434_v48, %v600_v0  ;;  %v4165_v2 = vpop.f32.mrb[34].mxu0  ;;  %4302 = vmatprep.mubr.bf16.mxu1 %v1125_v61 }
 0x122   :  { %v612_v3 = vadd.f32 %v4165_v2, %v5434_v48  ;;  %v603_v4 = vpop.f32.mrb[35].mxu0  ;;  %4303 = vmatmul.mubr.bf16.gmra.mrb[24].mxu1 %v1126_v60  ;;  %v1017_v7 = vmax.f32 %v609_v63, 0.0 }
 0x123   :  { %v604_v6 = vadd.f32 %v5434_v48, %v603_v4  ;;  %v1015_v10 = vmax.f32 %v601_v1, 0.0 }
 0x124   :  { %v1018_v9 = vmax.f32 %v612_v3, 0.0 }
 0x125   :  { %v1016_v11 = vmax.f32 %v604_v6, 0.0 }
 0x126   :  { %v1128_v12 = vpack.c.bf16 %v1018_v9, %v1017_v7 }
 0x127   :  { %v1127_v13 = vpack.c.bf16 %v1016_v11, %v1015_v10  ;;  %v4168_v14 = vpop.f32.mrb[36].mxu0 }
 0x128   :  { %v625_v15 = vadd.f32 %v4168_v14, %v5434_v48  ;;  %v616_v16 = vpop.f32.mrb[37].mxu0 }
 0x129   :  { %v617_v17 = vadd.f32 %v5434_v48, %v616_v16  ;;  %v4169_v18 = vpop.f32.mrb[38].mxu0  ;;  %4306 = vmatprep.mubr.bf16.mxu1 %v1127_v13 }
 0x12a   :  { %v628_v19 = vadd.f32 %v4169_v18, %v5434_v48  ;;  %v619_v20 = vpop.f32.mrb[39].mxu0  ;;  %4307 = vmatmul.mubr.bf16.gmra.mrb[28].mxu1 %v1128_v12  ;;  %v1021_v22 = vmax.f32 %v625_v15, 0.0 }
 0x12b   :  { %v620_v21 = vadd.f32 %v5434_v48, %v619_v20  ;;  %v1019_v26 = vmax.f32 %v617_v17, 0.0 }
 0x12c   :  { %v1022_v23 = vmax.f32 %v628_v19, 0.0 }
 0x12d   :  { %v1020_v27 = vmax.f32 %v620_v21, 0.0 }
 0x12e   :  { %v1130_v28 = vpack.c.bf16 %v1022_v23, %v1021_v22 }
 0x12f   :  { %v1129_v29 = vpack.c.bf16 %v1020_v27, %v1019_v26  ;;  %v4172_v30 = vpop.f32.mrb[40].mxu0 }
 0x130   :  { %v641_v8 = vadd.f32 %v4172_v30, %v5434_v48  ;;  %v632_v31 = vpop.f32.mrb[41].mxu0 }
 0x131   :  { %v633_v32 = vadd.f32 %v5434_v48, %v632_v31  ;;  %v4173_v33 = vpop.f32.mrb[42].mxu0  ;;  %4310 = vmatprep.mubr.bf16.mxu1 %v1129_v29 }
 0x132   :  { %v644_v34 = vadd.f32 %v4173_v33, %v5434_v48  ;;  %v635_v35 = vpop.f32.mrb[43].mxu0  ;;  %4311 = vmatmul.mubr.bf16.gmra.mrb[32].mxu1 %v1130_v28  ;;  %v1025_v37 = vmax.f32 %v641_v8, 0.0 }
 0x133   :  { %v636_v36 = vadd.f32 %v5434_v48, %v635_v35  ;;  %v1023_v39 = vmax.f32 %v633_v32, 0.0 }
 0x134   :  { %v1026_v38 = vmax.f32 %v644_v34, 0.0 }
 0x135   :  { %v1024_v40 = vmax.f32 %v636_v36, 0.0 }
 0x136   :  { %v1132_v41 = vpack.c.bf16 %v1026_v38, %v1025_v37 }
 0x137   :  { %v1131_v42 = vpack.c.bf16 %v1024_v40, %v1023_v39  ;;  %v4176_v5 = vpop.f32.mrb[44].mxu0 }
 0x138   :  { %v657_v43 = vadd.f32 %v4176_v5, %v5434_v48  ;;  %v648_v44 = vpop.f32.mrb[45].mxu0 }
 0x139   :  { %v649_v45 = vadd.f32 %v5434_v48, %v648_v44  ;;  %v4177_v46 = vpop.f32.mrb[46].mxu0  ;;  %4314 = vmatprep.mubr.bf16.mxu1 %v1131_v42 }
 0x13a   :  { %v660_v47 = vadd.f32 %v4177_v46, %v5434_v48  ;;  %v651_v49 = vpop.f32.mrb[47].mxu0  ;;  %4315 = vmatmul.mubr.bf16.gmra.mrb[36].mxu1 %v1132_v41  ;;  %v1029_v51 = vmax.f32 %v657_v43, 0.0 }
 0x13b   :  { %v652_v50 = vadd.f32 %v5434_v48, %v651_v49  ;;  %v1027_v53 = vmax.f32 %v649_v45, 0.0 }
 0x13c   :  { %v1030_v52 = vmax.f32 %v660_v47, 0.0 }
 0x13d   :  { %v1028_v54 = vmax.f32 %v652_v50, 0.0 }
 0x13e   :  { %v1134_v55 = vpack.c.bf16 %v1030_v52, %v1029_v51 }
 0x13f   :  { %v1133_v56 = vpack.c.bf16 %v1028_v54, %v1027_v53  ;;  %v4180_v57 = vpop.f32.mrb[48].mxu0 }
 0x140   :  { %v673_v58 = vadd.f32 %v4180_v57, %v5434_v48  ;;  %v664_v59 = vpop.f32.mrb[49].mxu0 }
 0x141   :  { %v665_v60 = vadd.f32 %v5434_v48, %v664_v59  ;;  %v4181_v61 = vpop.f32.mrb[50].mxu0  ;;  %4318 = vmatprep.mubr.bf16.mxu1 %v1133_v56 }
 0x142   :  { %v676_v62 = vadd.f32 %v4181_v61, %v5434_v48  ;;  %v667_v63 = vpop.f32.mrb[51].mxu0  ;;  %4319 = vmatmul.mubr.bf16.gmra.mrb[40].mxu1 %v1134_v55  ;;  %v1033_v1 = vmax.f32 %v673_v58, 0.0 }
 0x143   :  { %v668_v0 = vadd.f32 %v5434_v48, %v667_v63  ;;  %v1031_v3 = vmax.f32 %v665_v60, 0.0 }
 0x144   :  { %v1034_v2 = vmax.f32 %v676_v62, 0.0 }
 0x145   :  { %v1032_v4 = vmax.f32 %v668_v0, 0.0 }
 0x146   :  { %v1136_v6 = vpack.c.bf16 %v1034_v2, %v1033_v1 }
 0x147   :  { %v1135_v7 = vpack.c.bf16 %v1032_v4, %v1031_v3  ;;  %v4184_v9 = vpop.f32.mrb[52].mxu0 }
 0x148   :  { %v689_v10 = vadd.f32 %v4184_v9, %v5434_v48  ;;  %v680_v11 = vpop.f32.mrb[53].mxu0 }
 0x149   :  { %v681_v12 = vadd.f32 %v5434_v48, %v680_v11  ;;  %v4185_v13 = vpop.f32.mrb[54].mxu0  ;;  %4322 = vmatprep.mubr.bf16.mxu1 %v1135_v7 }
 0x14a   :  { %v692_v14 = vadd.f32 %v4185_v13, %v5434_v48  ;;  %v683_v15 = vpop.f32.mrb[55].mxu0  ;;  %4323 = vmatmul.mubr.bf16.gmra.mrb[44].mxu1 %v1136_v6  ;;  %v1037_v17 = vmax.f32 %v689_v10, 0.0 }
 0x14b   :  { %v684_v16 = vadd.f32 %v5434_v48, %v683_v15  ;;  %v1035_v19 = vmax.f32 %v681_v12, 0.0 }
 0x14c   :  { %v1038_v18 = vmax.f32 %v692_v14, 0.0 }
 0x14d   :  { %v1036_v20 = vmax.f32 %v684_v16, 0.0 }
 0x14e   :  { %v1138_v21 = vpack.c.bf16 %v1038_v18, %v1037_v17 }
 0x14f   :  { %v1137_v22 = vpack.c.bf16 %v1036_v20, %v1035_v19  ;;  %v4188_v23 = vpop.f32.mrb[56].mxu0 }
 0x150   :  { %v705_v24 = vadd.f32 %v4188_v23, %v5434_v48  ;;  %v696_v25 = vpop.f32.mrb[57].mxu0 }
 0x151   :  { %v697_v26 = vadd.f32 %v5434_v48, %v696_v25  ;;  %v4189_v27 = vpop.f32.mrb[58].mxu0  ;;  %4326 = vmatprep.mubr.bf16.mxu1 %v1137_v22 }
 0x152   :  { %v708_v28 = vadd.f32 %v4189_v27, %v5434_v48  ;;  %v699_v29 = vpop.f32.mrb[59].mxu0  ;;  %4327 = vmatmul.mubr.bf16.gmra.mrb[48].mxu1 %v1138_v21  ;;  %v1041_v8 = vmax.f32 %v705_v24, 0.0 }
 0x153   :  { %v700_v30 = vadd.f32 %v5434_v48, %v699_v29  ;;  %v1039_v32 = vmax.f32 %v697_v26, 0.0 }
 0x154   :  { %v1042_v31 = vmax.f32 %v708_v28, 0.0 }
 0x155   :  { %v1040_v33 = vmax.f32 %v700_v30, 0.0 }
 0x156   :  { %v1140_v34 = vpack.c.bf16 %v1042_v31, %v1041_v8 }
 0x157   :  { %v1139_v35 = vpack.c.bf16 %v1040_v33, %v1039_v32  ;;  %v4192_v36 = vpop.f32.mrb[60].mxu0 }
 0x158   :  { %v721_v37 = vadd.f32 %v4192_v36, %v5434_v48  ;;  %v712_v38 = vpop.f32.mrb[61].mxu0 }
 0x159   :  { %v713_v39 = vadd.f32 %v5434_v48, %v712_v38  ;;  %v4193_v40 = vpop.f32.mrb[62].mxu0  ;;  %4330 = vmatprep.mubr.bf16.mxu1 %v1139_v35 }
 0x15a   :  { %v724_v41 = vadd.f32 %v4193_v40, %v5434_v48  ;;  %v715_v42 = vpop.f32.mrb[63].mxu0  ;;  %4331 = vmatmul.mubr.bf16.gmra.mrb[52].mxu1 %v1140_v34  ;;  %v1045_v43 = vmax.f32 %v721_v37, 0.0 }
 0x15b   :  { %v716_v5 = vadd.f32 %v5434_v48, %v715_v42  ;;  %v1043_v45 = vmax.f32 %v713_v39, 0.0 }
 0x15c   :  { %v1046_v44 = vmax.f32 %v724_v41, 0.0 }
 0x15d   :  { %v1044_v46 = vmax.f32 %v716_v5, 0.0 }
 0x15e   :  { %v1142_v47 = vpack.c.bf16 %v1046_v44, %v1045_v43 }
 0x15f   :  { %v1141_v49 = vpack.c.bf16 %v1044_v46, %v1043_v45  ;;  %v4196_v50 = vpop.f32.mrb[64].mxu0 }
 0x160   :  { %v737_v51 = vadd.f32 %v4196_v50, %v5434_v48  ;;  %v728_v52 = vpop.f32.mrb[65].mxu0 }
 0x161   :  { %v729_v53 = vadd.f32 %v5434_v48, %v728_v52  ;;  %v4197_v54 = vpop.f32.mrb[66].mxu0  ;;  %4334 = vmatprep.mubr.bf16.mxu1 %v1141_v49 }
 0x162   :  { %v740_v55 = vadd.f32 %v4197_v54, %v5434_v48  ;;  %v731_v56 = vpop.f32.mrb[67].mxu0  ;;  %4335 = vmatmul.mubr.bf16.gmra.mrb[56].mxu1 %v1142_v47  ;;  %v1049_v58 = vmax.f32 %v737_v51, 0.0 }
 0x163   :  { %v732_v57 = vadd.f32 %v5434_v48, %v731_v56  ;;  %v1047_v60 = vmax.f32 %v729_v53, 0.0 }
 0x164   :  { %v1050_v59 = vmax.f32 %v740_v55, 0.0 }
 0x165   :  { %v1048_v61 = vmax.f32 %v732_v57, 0.0 }
 0x166   :  { %v1144_v62 = vpack.c.bf16 %v1050_v59, %v1049_v58 }
 0x167   :  { %v1143_v63 = vpack.c.bf16 %v1048_v61, %v1047_v60  ;;  %v4200_v0 = vpop.f32.mrb[68].mxu0 }
 0x168   :  { %v753_v1 = vadd.f32 %v4200_v0, %v5434_v48  ;;  %v744_v2 = vpop.f32.mrb[69].mxu0 }
 0x169   :  { %v745_v3 = vadd.f32 %v5434_v48, %v744_v2  ;;  %v4201_v4 = vpop.f32.mrb[70].mxu0  ;;  %4338 = vmatprep.mubr.bf16.mxu1 %v1143_v63 }
 0x16a   :  { %v756_v6 = vadd.f32 %v4201_v4, %v5434_v48  ;;  %v747_v7 = vpop.f32.mrb[71].mxu0  ;;  %4339 = vmatmul.mubr.bf16.gmra.mrb[60].mxu1 %v1144_v62  ;;  %v1053_v10 = vmax.f32 %v753_v1, 0.0 }
 0x16b   :  { %v748_v9 = vadd.f32 %v5434_v48, %v747_v7  ;;  %v1051_v12 = vmax.f32 %v745_v3, 0.0 }
 0x16c   :  { %v1054_v11 = vmax.f32 %v756_v6, 0.0 }
 0x16d   :  { %v1052_v13 = vmax.f32 %v748_v9, 0.0 }
 0x16e   :  { %v1146_v14 = vpack.c.bf16 %v1054_v11, %v1053_v10 }
 0x16f   :  { %v1145_v15 = vpack.c.bf16 %v1052_v13, %v1051_v12  ;;  %v4204_v16 = vpop.f32.mrb[72].mxu0 }
 0x170   :  { %v769_v17 = vadd.f32 %v4204_v16, %v5434_v48  ;;  %v760_v18 = vpop.f32.mrb[73].mxu0 }
 0x171   :  { %v761_v19 = vadd.f32 %v5434_v48, %v760_v18  ;;  %v4205_v20 = vpop.f32.mrb[74].mxu0  ;;  %4342 = vmatprep.mubr.bf16.mxu1 %v1145_v15 }
 0x172   :  { %v772_v21 = vadd.f32 %v4205_v20, %v5434_v48  ;;  %v763_v22 = vpop.f32.mrb[75].mxu0  ;;  %4343 = vmatmul.mubr.bf16.gmra.mrb[64].mxu1 %v1146_v14  ;;  %v1057_v24 = vmax.f32 %v769_v17, 0.0 }
 0x173   :  { %v764_v23 = vadd.f32 %v5434_v48, %v763_v22  ;;  %v1055_v26 = vmax.f32 %v761_v19, 0.0 }
 0x174   :  { %v1058_v25 = vmax.f32 %v772_v21, 0.0 }
 0x175   :  { %v1056_v27 = vmax.f32 %v764_v23, 0.0 }
 0x176   :  { %v1148_v28 = vpack.c.bf16 %v1058_v25, %v1057_v24 }
 0x177   :  { %v1147_v29 = vpack.c.bf16 %v1056_v27, %v1055_v26  ;;  %v4208_v30 = vpop.f32.mrb[76].mxu0 }
 0x178   :  { %v785_v8 = vadd.f32 %v4208_v30, %v5434_v48  ;;  %v776_v31 = vpop.f32.mrb[77].mxu0 }
 0x179   :  { %v777_v32 = vadd.f32 %v5434_v48, %v776_v31  ;;  %v4209_v33 = vpop.f32.mrb[78].mxu0  ;;  %4346 = vmatprep.mubr.bf16.mxu1 %v1147_v29 }
 0x17a   :  { %v788_v34 = vadd.f32 %v4209_v33, %v5434_v48  ;;  %v779_v35 = vpop.f32.mrb[79].mxu0  ;;  %4347 = vmatmul.mubr.bf16.gmra.mrb[68].mxu1 %v1148_v28  ;;  %v1061_v37 = vmax.f32 %v785_v8, 0.0 }
 0x17b   :  { %v780_v36 = vadd.f32 %v5434_v48, %v779_v35  ;;  %v1059_v39 = vmax.f32 %v777_v32, 0.0 }
 0x17c   :  { %v1062_v38 = vmax.f32 %v788_v34, 0.0 }
 0x17d   :  { %v1060_v40 = vmax.f32 %v780_v36, 0.0 }
 0x17e   :  { %v1150_v41 = vpack.c.bf16 %v1062_v38, %v1061_v37 }
 0x17f   :  { %v1149_v42 = vpack.c.bf16 %v1060_v40, %v1059_v39  ;;  %v4212_v5 = vpop.f32.mrb[80].mxu0 }
 0x180   :  { %v801_v43 = vadd.f32 %v4212_v5, %v5434_v48  ;;  %v792_v44 = vpop.f32.mrb[81].mxu0 }
 0x181   :  { %v793_v45 = vadd.f32 %v5434_v48, %v792_v44  ;;  %v4213_v46 = vpop.f32.mrb[82].mxu0  ;;  %4350 = vmatprep.mubr.bf16.mxu1 %v1149_v42 }
 0x182   :  { %v804_v47 = vadd.f32 %v4213_v46, %v5434_v48  ;;  %v795_v49 = vpop.f32.mrb[83].mxu0  ;;  %4351 = vmatmul.mubr.bf16.gmra.mrb[72].mxu1 %v1150_v41  ;;  %v1065_v51 = vmax.f32 %v801_v43, 0.0 }
 0x183   :  { %v796_v50 = vadd.f32 %v5434_v48, %v795_v49  ;;  %v1063_v53 = vmax.f32 %v793_v45, 0.0 }
 0x184   :  { %v1066_v52 = vmax.f32 %v804_v47, 0.0 }
 0x185   :  { %v1064_v54 = vmax.f32 %v796_v50, 0.0 }
 0x186   :  { %v1152_v55 = vpack.c.bf16 %v1066_v52, %v1065_v51 }
 0x187   :  { %v1151_v56 = vpack.c.bf16 %v1064_v54, %v1063_v53  ;;  %v4216_v57 = vpop.f32.mrb[84].mxu0 }
 0x188   :  { %v817_v58 = vadd.f32 %v4216_v57, %v5434_v48  ;;  %v808_v59 = vpop.f32.mrb[85].mxu0 }
 0x189   :  { %v809_v60 = vadd.f32 %v5434_v48, %v808_v59  ;;  %v4217_v61 = vpop.f32.mrb[86].mxu0  ;;  %4354 = vmatprep.mubr.bf16.mxu1 %v1151_v56 }
 0x18a   :  { %v820_v62 = vadd.f32 %v4217_v61, %v5434_v48  ;;  %v811_v63 = vpop.f32.mrb[87].mxu0  ;;  %4355 = vmatmul.mubr.bf16.gmra.mrb[76].mxu1 %v1152_v55  ;;  %v1069_v1 = vmax.f32 %v817_v58, 0.0 }
 0x18b   :  { %v812_v0 = vadd.f32 %v5434_v48, %v811_v63  ;;  %v1067_v3 = vmax.f32 %v809_v60, 0.0 }
 0x18c   :  { %v1070_v2 = vmax.f32 %v820_v62, 0.0 }
 0x18d   :  { %v1068_v4 = vmax.f32 %v812_v0, 0.0 }
 0x18e   :  { %v1154_v6 = vpack.c.bf16 %v1070_v2, %v1069_v1 }
 0x18f   :  { %v1153_v7 = vpack.c.bf16 %v1068_v4, %v1067_v3  ;;  %v4220_v9 = vpop.f32.mrb[88].mxu0 }
 0x190   :  { %v833_v10 = vadd.f32 %v4220_v9, %v5434_v48  ;;  %v824_v11 = vpop.f32.mrb[89].mxu0 }
 0x191   :  { %v825_v12 = vadd.f32 %v5434_v48, %v824_v11  ;;  %v4221_v13 = vpop.f32.mrb[90].mxu0  ;;  %4358 = vmatprep.mubr.bf16.mxu1 %v1153_v7 }
 0x192   :  { %v836_v14 = vadd.f32 %v4221_v13, %v5434_v48  ;;  %v827_v15 = vpop.f32.mrb[91].mxu0  ;;  %4359 = vmatmul.mubr.bf16.gmra.mrb[80].mxu1 %v1154_v6  ;;  %v1073_v17 = vmax.f32 %v833_v10, 0.0 }
 0x193   :  { %v828_v16 = vadd.f32 %v5434_v48, %v827_v15  ;;  %v1071_v19 = vmax.f32 %v825_v12, 0.0 }
 0x194   :  { %v1074_v18 = vmax.f32 %v836_v14, 0.0 }
 0x195   :  { %v1072_v20 = vmax.f32 %v828_v16, 0.0 }
 0x196   :  { %v1156_v21 = vpack.c.bf16 %v1074_v18, %v1073_v17 }
 0x197   :  { %v1155_v22 = vpack.c.bf16 %v1072_v20, %v1071_v19  ;;  %v4224_v23 = vpop.f32.mrb[92].mxu0 }
 0x198   :  { %v849_v24 = vadd.f32 %v4224_v23, %v5434_v48  ;;  %v840_v25 = vpop.f32.mrb[93].mxu0 }
 0x199   :  { %v841_v26 = vadd.f32 %v5434_v48, %v840_v25  ;;  %v4225_v27 = vpop.f32.mrb[94].mxu0  ;;  %4362 = vmatprep.mubr.bf16.mxu1 %v1155_v22 }
 0x19a   :  { %v852_v28 = vadd.f32 %v4225_v27, %v5434_v48  ;;  %v843_v29 = vpop.f32.mrb[95].mxu0  ;;  %4363 = vmatmul.mubr.bf16.gmra.mrb[84].mxu1 %v1156_v21  ;;  %v1077_v8 = vmax.f32 %v849_v24, 0.0 }
 0x19b   :  { %v844_v30 = vadd.f32 %v5434_v48, %v843_v29  ;;  %v1075_v32 = vmax.f32 %v841_v26, 0.0 }
 0x19c   :  { %v1078_v31 = vmax.f32 %v852_v28, 0.0 }
 0x19d   :  { %v1076_v33 = vmax.f32 %v844_v30, 0.0 }
 0x19e   :  { %v1158_v34 = vpack.c.bf16 %v1078_v31, %v1077_v8 }
 0x19f   :  { %v1157_v35 = vpack.c.bf16 %v1076_v33, %v1075_v32  ;;  %v4228_v36 = vpop.f32.mrb[96].mxu0 }
 0x1a0   :  { %v865_v37 = vadd.f32 %v4228_v36, %v5434_v48  ;;  %v856_v38 = vpop.f32.mrb[97].mxu0 }
 0x1a1   :  { %v857_v39 = vadd.f32 %v5434_v48, %v856_v38  ;;  %v4229_v40 = vpop.f32.mrb[98].mxu0  ;;  %4366 = vmatprep.mubr.bf16.mxu1 %v1157_v35 }
 0x1a2   :  { %v868_v41 = vadd.f32 %v4229_v40, %v5434_v48  ;;  %v859_v42 = vpop.f32.mrb[99].mxu0  ;;  %4367 = vmatmul.mubr.bf16.gmra.mrb[88].mxu1 %v1158_v34  ;;  %v1081_v43 = vmax.f32 %v865_v37, 0.0  ;;  %v5625_v37 = vld [vmem:[%s7027_s4] ss:$0 sm:$0xff] }
 0x1a3   :  { %v860_v5 = vadd.f32 %v5434_v48, %v859_v42  ;;  %v1079_v45 = vmax.f32 %v857_v39, 0.0 }
 0x1a4   :  { %v1082_v44 = vmax.f32 %v868_v41, 0.0 }
 0x1a5   :  { %v1080_v46 = vmax.f32 %v860_v5, 0.0 }
 0x1a6   :  { %v1160_v47 = vpack.c.bf16 %v1082_v44, %v1081_v43 }
 0x1a7   :  { %v1159_v49 = vpack.c.bf16 %v1080_v46, %v1079_v45  ;;  %v4232_v50 = vpop.f32.mrb[100].mxu0 }
 0x1a8   :  { %v881_v51 = vadd.f32 %v4232_v50, %v5434_v48  ;;  %v872_v52 = vpop.f32.mrb[101].mxu0 }
 0x1a9   :  { %v873_v53 = vadd.f32 %v5434_v48, %v872_v52  ;;  %v4233_v54 = vpop.f32.mrb[102].mxu0  ;;  %4370 = vmatprep.mubr.bf16.mxu1 %v1159_v49 }
 0x1aa   :  { %v884_v55 = vadd.f32 %v4233_v54, %v5434_v48  ;;  %v875_v56 = vpop.f32.mrb[103].mxu0  ;;  %4371 = vmatmul.mubr.bf16.gmra.mrb[92].mxu1 %v1160_v47  ;;  %v1085_v58 = vmax.f32 %v881_v51, 0.0  ;;  %v5637_v51 = vld [vmem:[%s7025_s2] ss:$0 sm:$0xff] }
 0x1ab   :  { %v876_v57 = vadd.f32 %v5434_v48, %v875_v56  ;;  %v1083_v60 = vmax.f32 %v873_v53, 0.0 }
 0x1ac   :  { %v1086_v59 = vmax.f32 %v884_v55, 0.0 }
 0x1ad   :  { %v1084_v61 = vmax.f32 %v876_v57, 0.0 }
 0x1ae   :  { %v1162_v62 = vpack.c.bf16 %v1086_v59, %v1085_v58 }
 0x1af   :  { %v1161_v63 = vpack.c.bf16 %v1084_v61, %v1083_v60  ;;  %v4236_v0 = vpop.f32.mrb[104].mxu0 }
 0x1b0   :  { %v897_v1 = vadd.f32 %v4236_v0, %v5434_v48  ;;  %v888_v2 = vpop.f32.mrb[105].mxu0 }
 0x1b1   :  { %v889_v3 = vadd.f32 %v5434_v48, %v888_v2  ;;  %v4237_v4 = vpop.f32.mrb[106].mxu0  ;;  %4374 = vmatprep.mubr.bf16.mxu1 %v1161_v63 }
 0x1b2   :  { %v900_v6 = vadd.f32 %v4237_v4, %v5434_v48  ;;  %v891_v7 = vpop.f32.mrb[107].mxu0  ;;  %4375 = vmatmul.mubr.bf16.gmra.mrb[96].mxu1 %v1162_v62  ;;  %v1089_v10 = vmax.f32 %v897_v1, 0.0 }
 0x1b3   :  { %v892_v9 = vadd.f32 %v5434_v48, %v891_v7  ;;  %v1087_v12 = vmax.f32 %v889_v3, 0.0 }
 0x1b4   :  { %v1090_v11 = vmax.f32 %v900_v6, 0.0 }
 0x1b5   :  { %v1088_v13 = vmax.f32 %v892_v9, 0.0 }
 0x1b6   :  { %v1164_v14 = vpack.c.bf16 %v1090_v11, %v1089_v10 }
 0x1b7   :  { %v1163_v15 = vpack.c.bf16 %v1088_v13, %v1087_v12  ;;  %v4240_v16 = vpop.f32.mrb[108].mxu0 }
 0x1b8   :  { %v913_v17 = vadd.f32 %v4240_v16, %v5434_v48  ;;  %v904_v18 = vpop.f32.mrb[109].mxu0 }
 0x1b9   :  { %v905_v19 = vadd.f32 %v5434_v48, %v904_v18  ;;  %v4241_v20 = vpop.f32.mrb[110].mxu0  ;;  %4378 = vmatprep.mubr.bf16.mxu1 %v1163_v15 }
 0x1ba   :  { %v916_v21 = vadd.f32 %v4241_v20, %v5434_v48  ;;  %v907_v22 = vpop.f32.mrb[111].mxu0  ;;  %4379 = vmatmul.mubr.bf16.gmra.mrb[100].mxu1 %v1164_v14  ;;  %v1093_v24 = vmax.f32 %v913_v17, 0.0 }
 0x1bb   :  { %v908_v23 = vadd.f32 %v5434_v48, %v907_v22  ;;  %v1091_v26 = vmax.f32 %v905_v19, 0.0 }
 0x1bc   :  { %v1094_v25 = vmax.f32 %v916_v21, 0.0 }
 0x1bd   :  { %v1092_v27 = vmax.f32 %v908_v23, 0.0 }
 0x1be   :  { %v1166_v28 = vpack.c.bf16 %v1094_v25, %v1093_v24 }
 0x1bf   :  { %v1165_v29 = vpack.c.bf16 %v1092_v27, %v1091_v26  ;;  %v4244_v30 = vpop.f32.mrb[112].mxu0 }
 0x1c0   :  { %v929_v8 = vadd.f32 %v4244_v30, %v5434_v48  ;;  %v920_v31 = vpop.f32.mrb[113].mxu0 }
 0x1c1   :  { %v921_v32 = vadd.f32 %v5434_v48, %v920_v31  ;;  %v4245_v33 = vpop.f32.mrb[114].mxu0  ;;  %4382 = vmatprep.mubr.bf16.mxu1 %v1165_v29 }
 0x1c2   :  { %v932_v34 = vadd.f32 %v4245_v33, %v5434_v48  ;;  %v923_v35 = vpop.f32.mrb[115].mxu0  ;;  %4383 = vmatmul.mubr.bf16.gmra.mrb[104].mxu1 %v1166_v28  ;;  %v1097_v38 = vmax.f32 %v929_v8, 0.0 }
 0x1c3   :  { %v924_v36 = vadd.f32 %v5434_v48, %v923_v35  ;;  %v1095_v40 = vmax.f32 %v921_v32, 0.0  ;;  %v5632_v48 = vld [vmem:[%s7028_s5] ss:$0 sm:$0xff] }
 0x1c4   :  { %v1098_v39 = vmax.f32 %v932_v34, 0.0 }
 0x1c5   :  { %v1096_v41 = vmax.f32 %v924_v36, 0.0  ;;  %v4280_v42 = vpop.f32.mrb[0].mxu1 }
 0x1c6   :  { %v1168_v5 = vpack.c.bf16 %v1098_v39, %v1097_v38  ;;  %v1305_v43 = vadd.f32 %v4280_v42, %v5625_v37  ;;  %v1296_v44 = vpop.f32.mrb[1].mxu1 }
 0x1c7   :  { %v1167_v45 = vpack.c.bf16 %v1096_v41, %v1095_v40  ;;  %v1297_v46 = vadd.f32 %v5625_v37, %v1296_v44  ;;  %v4248_v47 = vpop.f32.mrb[116].mxu0  ;;  %v4281_v49 = vpop.f32.mrb[2].mxu1 }
 0x1c8   :  { %v1797_v50 = vmax.f32 %v1305_v43, 0.0  ;;  %v945_v52 = vadd.f32 %v5637_v51, %v4248_v47  ;;  %v1308_v53 = vadd.f32 %v4281_v49, %v5625_v37  ;;  %v936_v54 = vpop.f32.mrb[117].mxu0  ;;  %v1299_v55 = vpop.f32.mrb[3].mxu1 }
 0x1c9   :  { %v937_v56 = vadd.f32 %v5637_v51, %v936_v54  ;;  %v1300_v57 = vadd.f32 %v5625_v37, %v1299_v55  ;;  %v4249_v58 = vpop.f32.mrb[118].mxu0  ;;  %4386 = vmatprep.mubr.bf16.mxu1 %v1167_v45  ;;  %v1795_v59 = vmax.f32 %v1297_v46, 0.0 }
 0x1ca   :  { %v1798_v60 = vmax.f32 %v1308_v53, 0.0  ;;  %v948_v61 = vadd.f32 %v5637_v51, %v4249_v58  ;;  %v939_v62 = vpop.f32.mrb[119].mxu0  ;;  %4387 = vmatmul.mubr.bf16.gmra.mrb[108].mxu1 %v1168_v5  ;;  %v1932_v63 = vmul.f32 %v5632_v48, %v1797_v50  ;;  %v1101_v1 = vmax.f32 %v945_v52, 0.0 }
 0x1cb   :  { %v940_v0 = vadd.f32 %v5637_v51, %v939_v62  ;;  %v1796_v2 = vmax.f32 %v1300_v57, 0.0  ;;  %v1099_v6 = vmax.f32 %v937_v56, 0.0  ;;  %v1930_v13 = vmul.f32 %v5632_v48, %v1795_v59 }
 0x1cc   :  { %v1102_v3 = vmax.f32 %v948_v61, 0.0  ;;  %2066 = vadd.xlane.f32.xlu0 %v1932_v63  ;;  %v1933_v4 = vmul.f32 %v5632_v48, %v1798_v60 }
 0x1cd   :  { %v1100_v7 = vmax.f32 %v940_v0, 0.0  ;;  %v4284_v9 = vpop.f32.mrb[4].mxu1  ;;  %v1931_v23 = vmul.f32 %v5632_v48, %v1796_v2 }
 0x1ce   :  { %v1170_v10 = vpack.c.bf16 %v1102_v3, %v1101_v1  ;;  %v1321_v11 = vadd.f32 %v4284_v9, %v5625_v37  ;;  %2068 = vadd.xlane.f32.xlu1 %v1933_v4  ;;  %v1312_v12 = vpop.f32.mrb[5].mxu1 }
 0x1cf   :  { %v1169_v14 = vpack.c.bf16 %v1100_v7, %v1099_v6  ;;  %v1313_v15 = vadd.f32 %v5625_v37, %v1312_v12  ;;  %v4252_v16 = vpop.f32.mrb[120].mxu0  ;;  %v4285_v17 = vpop.f32.mrb[6].mxu1 }
 0x1d0   :  { %v1801_v18 = vmax.f32 %v1321_v11, 0.0  ;;  %v961_v19 = vadd.f32 %v5637_v51, %v4252_v16  ;;  %v1324_v20 = vadd.f32 %v4285_v17, %v5625_v37  ;;  %v952_v21 = vpop.f32.mrb[121].mxu0  ;;  %v1315_v22 = vpop.f32.mrb[7].mxu1  ;;  %2062 = vadd.xlane.f32.xlu0 %v1930_v13 }
 0x1d1   :  { %v953_v24 = vadd.f32 %v5637_v51, %v952_v21  ;;  %v1316_v25 = vadd.f32 %v5625_v37, %v1315_v22  ;;  %v4253_v26 = vpop.f32.mrb[122].mxu0  ;;  %4390 = vmatprep.mubr.bf16.mxu1 %v1169_v14  ;;  %v1799_v27 = vmax.f32 %v1313_v15, 0.0 }
 0x1d2   :  { %v1802_v28 = vmax.f32 %v1324_v20, 0.0  ;;  %v964_v29 = vadd.f32 %v5637_v51, %v4253_v26  ;;  %v955_v30 = vpop.f32.mrb[123].mxu0  ;;  %4391 = vmatmul.mubr.bf16.gmra.mrb[112].mxu1 %v1170_v10  ;;  %2064 = vadd.xlane.f32.xlu1 %v1931_v23  ;;  %v1936_v8 = vmul.f32 %v5632_v48, %v1801_v18  ;;  %v1105_v32 = vmax.f32 %v961_v19, 0.0 }
 0x1d3   :  { %v956_v31 = vadd.f32 %v5637_v51, %v955_v30  ;;  %v1800_v33 = vmax.f32 %v1316_v25, 0.0  ;;  %v1103_v36 = vmax.f32 %v953_v24, 0.0  ;;  %v1934_v5 = vmul.f32 %v5632_v48, %v1799_v27 }
 0x1d4   :  { %v1106_v34 = vmax.f32 %v964_v29, 0.0  ;;  %2074 = vadd.xlane.f32.xlu0 %v1936_v8  ;;  %v1937_v35 = vmul.f32 %v5632_v48, %v1802_v28 }
 0x1d5   :  { %v1104_v38 = vmax.f32 %v956_v31, 0.0  ;;  %v4288_v39 = vpop.f32.mrb[8].mxu1  ;;  %v1935_v54 = vmul.f32 %v5632_v48, %v1800_v33 }
 0x1d6   :  { %v1172_v40 = vpack.c.bf16 %v1106_v34, %v1105_v32  ;;  %v1337_v41 = vadd.f32 %v4288_v39, %v5625_v37  ;;  %v1328_v42 = vpop.f32.mrb[9].mxu1  ;;  %2076 = vadd.xlane.f32.xlu1 %v1937_v35 }
 0x1d7   :  { %v1171_v43 = vpack.c.bf16 %v1104_v38, %v1103_v36  ;;  %v1329_v44 = vadd.f32 %v5625_v37, %v1328_v42  ;;  %v4256_v45 = vpop.f32.mrb[124].mxu0  ;;  %v4289_v46 = vpop.f32.mrb[10].mxu1 }
 0x1d8   :  { %v1805_v47 = vmax.f32 %v1337_v41, 0.0  ;;  %v977_v49 = vadd.f32 %v5637_v51, %v4256_v45  ;;  %v1340_v50 = vadd.f32 %v4289_v46, %v5625_v37  ;;  %v968_v52 = vpop.f32.mrb[125].mxu0  ;;  %v1331_v53 = vpop.f32.mrb[11].mxu1  ;;  %2070 = vadd.xlane.f32.xlu0 %v1934_v5 }
 0x1d9   :  { %v969_v55 = vadd.f32 %v5637_v51, %v968_v52  ;;  %v1332_v56 = vadd.f32 %v5625_v37, %v1331_v53  ;;  %v4257_v57 = vpop.f32.mrb[126].mxu0  ;;  %4394 = vmatprep.mubr.bf16.mxu1 %v1171_v43  ;;  %v1803_v58 = vmax.f32 %v1329_v44, 0.0 }
 0x1da   :  { %v1806_v59 = vmax.f32 %v1340_v50, 0.0  ;;  %v980_v60 = vadd.f32 %v5637_v51, %v4257_v57  ;;  %v971_v61 = vpop.f32.mrb[127].mxu0  ;;  %4395 = vmatmul.mubr.bf16.gmra.mrb[116].mxu1 %v1172_v40  ;;  %2072 = vadd.xlane.f32.xlu1 %v1935_v54  ;;  %v1940_v62 = vmul.f32 %v5632_v48, %v1805_v47  ;;  %v1109_v0 = vmax.f32 %v977_v49, 0.0 }
 0x1db   :  { %v972_v63 = vadd.f32 %v5637_v51, %v971_v61  ;;  %v1804_v1 = vmax.f32 %v1332_v56, 0.0  ;;  %v1107_v4 = vmax.f32 %v969_v55, 0.0  ;;  %v1938_v12 = vmul.f32 %v5632_v48, %v1803_v58 }
 0x1dc   :  { %v1110_v2 = vmax.f32 %v980_v60, 0.0  ;;  %2082 = vadd.xlane.f32.xlu0 %v1940_v62  ;;  %v1941_v3 = vmul.f32 %v5632_v48, %v1806_v59 }
 0x1dd   :  { %v1108_v6 = vmax.f32 %v972_v63, 0.0  ;;  %v4292_v7 = vpop.f32.mrb[12].mxu1  ;;  %v1939_v21 = vmul.f32 %v5632_v48, %v1804_v1 }
 0x1de   :  { %v1174_v9 = vpack.c.bf16 %v1110_v2, %v1109_v0  ;;  %v1353_v10 = vadd.f32 %v4292_v7, %v5625_v37  ;;  %v1344_v11 = vpop.f32.mrb[13].mxu1  ;;  %2084 = vadd.xlane.f32.xlu1 %v1941_v3 }
 0x1df   :  { %v1173_v13 = vpack.c.bf16 %v1108_v6, %v1107_v4  ;;  %v1345_v14 = vadd.f32 %v5625_v37, %v1344_v11  ;;  %v4276_v51 = vpop.f32.mrb[128].mxu0  ;;  %v4293_v15 = vpop.f32.mrb[14].mxu1 }
 0x1e0   :  { %v1809_v16 = vmax.f32 %v1353_v10, 0.0  ;;  %v1289_v17 = vadd.f32 %v4276_v51, %v5625_v37  ;;  %v1356_v18 = vadd.f32 %v4293_v15, %v5625_v37  ;;  %v1347_v19 = vpop.f32.mrb[15].mxu1  ;;  %2078 = vadd.xlane.f32.xlu0 %v1938_v12  ;;  %v1280_v20 = vpop.f32.mrb[129].mxu0 }
 0x1e1   :  { %v4277_v22 = vpop.f32.mrb[130].mxu0  ;;  %4398 = vmatprep.mubr.bf16.mxu1 %v1173_v13  ;;  %v1807_v23 = vmax.f32 %v1345_v14, 0.0  ;;  %v1281_v25 = vadd.f32 %v5625_v37, %v1280_v20  ;;  %v1348_v29 = vadd.f32 %v5625_v37, %v1347_v19 }
 0x1e2   :  { %v1793_v24 = vmax.f32 %v1289_v17, 0.0  ;;  %4399 = vmatmul.mubr.bf16.gmra.mrb[120].mxu1 %v1174_v9  ;;  %2080 = vadd.xlane.f32.xlu1 %v1939_v21  ;;  %v1283_v26 = vpop.f32.mrb[131].mxu0  ;;  %v1944_v27 = vmul.f32 %v5632_v48, %v1809_v16  ;;  %v1810_v28 = vmax.f32 %v1356_v18, 0.0  ;;  %v1292_v38 = vadd.f32 %v4277_v22, %v5625_v37 }
 0x1e3   :  { %v1791_v31 = vmax.f32 %v1281_v25, 0.0  ;;  %v1284_v32 = vadd.f32 %v5625_v37, %v1283_v26  ;;  %v1942_v34 = vmul.f32 %v5632_v48, %v1807_v23  ;;  %v1808_v36 = vmax.f32 %v1348_v29, 0.0 }
 0x1e4   :  { %2090 = vadd.xlane.f32.xlu0 %v1944_v27  ;;  %v1928_v30 = vmul.f32 %v5632_v48, %v1793_v24  ;;  %v1945_v40 = vmul.f32 %v5632_v48, %v1810_v28  ;;  %v1794_v43 = vmax.f32 %v1292_v38, 0.0 }
 0x1e5   :  { %v4296_v8 = vpop.f32.mrb[16].mxu1  ;;  %v1792_v41 = vmax.f32 %v1284_v32, 0.0  ;;  %v1926_v5 = vmul.f32 %v5632_v48, %v1791_v31  ;;  %v1943_v45 = vmul.f32 %v5632_v48, %v1808_v36 }
 0x1e6   :  { %v1360_v33 = vpop.f32.mrb[17].mxu1  ;;  %2058 = vadd.xlane.f32.xlu1 %v1928_v30  ;;  %v1369_v42 = vadd.f32 %v4296_v8, %v5625_v37  ;;  %v1929_v57 = vmul.f32 %v5632_v48, %v1794_v43 }
 0x1e7   :  { %v4297_v35 = vpop.f32.mrb[18].mxu1  ;;  %v1361_v49 = vadd.f32 %v5625_v37, %v1360_v33  ;;  %v1927_v52 = vmul.f32 %v5632_v48, %v1792_v41 }
 0x1e8   :  { %v1363_v39 = vpop.f32.mrb[19].mxu1  ;;  %2086 = vadd.xlane.f32.xlu0 %v1942_v34  ;;  %v1372_v44 = vadd.f32 %v4297_v35, %v5625_v37  ;;  %v1813_v47 = vmax.f32 %v1369_v42, 0.0 }
 0x1e9   :  { %v1364_v55 = vadd.f32 %v5625_v37, %v1363_v39  ;;  %v1811_v58 = vmax.f32 %v1361_v49, 0.0 }
 0x1ea   :  { %2092 = vadd.xlane.f32.xlu1 %v1945_v40  ;;  %v1814_v54 = vmax.f32 %v1372_v44, 0.0  ;;  %v1948_v60 = vmul.f32 %v5632_v48, %v1813_v47 }
 0x1eb   :  { %v1812_v61 = vmax.f32 %v1364_v55, 0.0  ;;  %v1946_v4 = vmul.f32 %v5632_v48, %v1811_v58 }
 0x1ec   :  { %2054 = vadd.xlane.f32.xlu0 %v1926_v5  ;;  %v1949_v63 = vmul.f32 %v5632_v48, %v1814_v54 }
 0x1ed   :  { %v4300_v46 = vpop.f32.mrb[20].mxu1  ;;  %v1947_v11 = vmul.f32 %v5632_v48, %v1812_v61 }
 0x1ee   :  { %v1376_v50 = vpop.f32.mrb[21].mxu1  ;;  %2088 = vadd.xlane.f32.xlu1 %v1943_v45  ;;  %v1385_v59 = vadd.f32 %v4300_v46, %v5625_v37 }
 0x1ef   :  { %v4301_v53 = vpop.f32.mrb[22].mxu1  ;;  %v1377_v2 = vadd.f32 %v5625_v37, %v1376_v50 }
 0x1f0   :  { %v1379_v56 = vpop.f32.mrb[23].mxu1  ;;  %2056 = vadd.xlane.f32.xlu0 %v1927_v52  ;;  %v1388_v62 = vadd.f32 %v4301_v53, %v5625_v37  ;;  %v1817_v1 = vmax.f32 %v1385_v59, 0.0 }
 0x1f1   :  { %v1380_v9 = vadd.f32 %v5625_v37, %v1379_v56  ;;  %v1815_v12 = vmax.f32 %v1377_v2, 0.0 }
 0x1f2   :  { %2060 = vadd.xlane.f32.xlu1 %v1929_v57  ;;  %v1818_v7 = vmax.f32 %v1388_v62, 0.0  ;;  %v1952_v14 = vmul.f32 %v5632_v48, %v1817_v1 }
 0x1f3   :  { %v1816_v51 = vmax.f32 %v1380_v9, 0.0  ;;  %v1950_v21 = vmul.f32 %v5632_v48, %v1815_v12 }
 0x1f4   :  { %2098 = vadd.xlane.f32.xlu0 %v1948_v60  ;;  %v1953_v16 = vmul.f32 %v5632_v48, %v1818_v7 }
 0x1f5   :  { %v4304_v0 = vpop.f32.mrb[24].mxu1  ;;  %v1951_v26 = vmul.f32 %v5632_v48, %v1816_v51 }
 0x1f6   :  { %v1392_v3 = vpop.f32.mrb[25].mxu1  ;;  %2100 = vadd.xlane.f32.xlu1 %v1949_v63  ;;  %v1401_v13 = vadd.f32 %v4304_v0, %v5625_v37 }
 0x1f7   :  { %v4305_v6 = vpop.f32.mrb[26].mxu1  ;;  %v1393_v19 = vadd.f32 %v5625_v37, %v1392_v3 }
 0x1f8   :  { %v1395_v10 = vpop.f32.mrb[27].mxu1  ;;  %2094 = vadd.xlane.f32.xlu0 %v1946_v4  ;;  %v1404_v15 = vadd.f32 %v4305_v6, %v5625_v37  ;;  %v1821_v18 = vmax.f32 %v1401_v13, 0.0 }
 0x1f9   :  { %v1396_v24 = vadd.f32 %v5625_v37, %v1395_v10  ;;  %v1819_v27 = vmax.f32 %v1393_v19, 0.0 }
 0x1fa   :  { %2096 = vadd.xlane.f32.xlu1 %v1947_v11  ;;  %v1822_v23 = vmax.f32 %v1404_v15, 0.0  ;;  %v1956_v29 = vmul.f32 %v5632_v48, %v1821_v18 }
 0x1fb   :  { %v1820_v30 = vmax.f32 %v1396_v24, 0.0  ;;  %v1954_v36 = vmul.f32 %v5632_v48, %v1819_v27 }
 0x1fc   :  { %2106 = vadd.xlane.f32.xlu0 %v1952_v14  ;;  %v1957_v31 = vmul.f32 %v5632_v48, %v1822_v23 }
 0x1fd   :  { %v4308_v17 = vpop.f32.mrb[28].mxu1  ;;  %v1955_v42 = vmul.f32 %v5632_v48, %v1820_v30 }
 0x1fe   :  { %v1408_v20 = vpop.f32.mrb[29].mxu1  ;;  %2108 = vadd.xlane.f32.xlu1 %v1953_v16  ;;  %v1417_v28 = vadd.f32 %v4308_v17, %v5625_v37 }
 0x1ff   :  { %v4309_v22 = vpop.f32.mrb[30].mxu1  ;;  %v1409_v34 = vadd.f32 %v5625_v37, %v1408_v20 }
 0x200   :  { %v1411_v25 = vpop.f32.mrb[31].mxu1  ;;  %2102 = vadd.xlane.f32.xlu0 %v1950_v21  ;;  %v1420_v8 = vadd.f32 %v4309_v22, %v5625_v37  ;;  %v1825_v33 = vmax.f32 %v1417_v28, 0.0 }
 0x201   :  { %v1412_v40 = vadd.f32 %v5625_v37, %v1411_v25  ;;  %v1823_v5 = vmax.f32 %v1409_v34, 0.0 }
 0x202   :  { %2104 = vadd.xlane.f32.xlu1 %v1951_v26  ;;  %v1826_v39 = vmax.f32 %v1420_v8, 0.0  ;;  %v1960_v44 = vmul.f32 %v5632_v48, %v1825_v33 }
 0x203   :  { %v1824_v45 = vmax.f32 %v1412_v40, 0.0  ;;  %v1958_v54 = vmul.f32 %v5632_v48, %v1823_v5 }
 0x204   :  { %2114 = vadd.xlane.f32.xlu0 %v1956_v29  ;;  %v1961_v47 = vmul.f32 %v5632_v48, %v1826_v39 }
 0x205   :  { %v4312_v32 = vpop.f32.mrb[32].mxu1  ;;  %v1959_v59 = vmul.f32 %v5632_v48, %v1824_v45 }
 0x206   :  { %v1424_v35 = vpop.f32.mrb[33].mxu1  ;;  %2116 = vadd.xlane.f32.xlu1 %v1957_v31  ;;  %v1433_v43 = vadd.f32 %v4312_v32, %v5625_v37 }
 0x207   :  { %v4313_v38 = vpop.f32.mrb[34].mxu1  ;;  %v1425_v52 = vadd.f32 %v5625_v37, %v1424_v35 }
 0x208   :  { %v1427_v41 = vpop.f32.mrb[35].mxu1  ;;  %2110 = vadd.xlane.f32.xlu0 %v1954_v36  ;;  %v1436_v46 = vadd.f32 %v4313_v38, %v5625_v37  ;;  %v1829_v50 = vmax.f32 %v1433_v43, 0.0 }
 0x209   :  { %v1428_v57 = vadd.f32 %v5625_v37, %v1427_v41  ;;  %v1827_v60 = vmax.f32 %v1425_v52, 0.0 }
 0x20a   :  { %2112 = vadd.xlane.f32.xlu1 %v1955_v42  ;;  %v1830_v56 = vmax.f32 %v1436_v46, 0.0  ;;  %v1964_v62 = vmul.f32 %v5632_v48, %v1829_v50 }
 0x20b   :  { %v1828_v63 = vmax.f32 %v1428_v57, 0.0  ;;  %v1962_v7 = vmul.f32 %v5632_v48, %v1827_v60 }
 0x20c   :  { %2122 = vadd.xlane.f32.xlu0 %v1960_v44  ;;  %v1965_v1 = vmul.f32 %v5632_v48, %v1830_v56 }
 0x20d   :  { %v4316_v49 = vpop.f32.mrb[36].mxu1  ;;  %v1963_v13 = vmul.f32 %v5632_v48, %v1828_v63 }
 0x20e   :  { %v1440_v53 = vpop.f32.mrb[37].mxu1  ;;  %2124 = vadd.xlane.f32.xlu1 %v1961_v47  ;;  %v1449_v61 = vadd.f32 %v4316_v49, %v5625_v37 }
 0x20f   :  { %v4317_v55 = vpop.f32.mrb[38].mxu1  ;;  %v1441_v4 = vadd.f32 %v5625_v37, %v1440_v53 }
 0x210   :  { %v1443_v58 = vpop.f32.mrb[39].mxu1  ;;  %2118 = vadd.xlane.f32.xlu0 %v1958_v54  ;;  %v1452_v0 = vadd.f32 %v4317_v55, %v5625_v37  ;;  %v1833_v3 = vmax.f32 %v1449_v61, 0.0 }
 0x211   :  { %v1444_v11 = vadd.f32 %v5625_v37, %v1443_v58  ;;  %v1831_v14 = vmax.f32 %v1441_v4, 0.0 }
 0x212   :  { %2120 = vadd.xlane.f32.xlu1 %v1959_v59  ;;  %v1834_v10 = vmax.f32 %v1452_v0, 0.0  ;;  %v1968_v15 = vmul.f32 %v5632_v48, %v1833_v3 }
 0x213   :  { %v1832_v16 = vmax.f32 %v1444_v11, 0.0  ;;  %v1966_v23 = vmul.f32 %v5632_v48, %v1831_v14 }
 0x214   :  { %2130 = vadd.xlane.f32.xlu0 %v1964_v62  ;;  %v1969_v18 = vmul.f32 %v5632_v48, %v1834_v10 }
 0x215   :  { %v4320_v2 = vpop.f32.mrb[40].mxu1  ;;  %v1967_v28 = vmul.f32 %v5632_v48, %v1832_v16 }
 0x216   :  { %v1456_v6 = vpop.f32.mrb[41].mxu1  ;;  %2132 = vadd.xlane.f32.xlu1 %v1965_v1  ;;  %v1465_v51 = vadd.f32 %v4320_v2, %v5625_v37 }
 0x217   :  { %v4321_v9 = vpop.f32.mrb[42].mxu1  ;;  %v1457_v21 = vadd.f32 %v5625_v37, %v1456_v6 }
 0x218   :  { %v1459_v12 = vpop.f32.mrb[43].mxu1  ;;  %2126 = vadd.xlane.f32.xlu0 %v1962_v7  ;;  %v1468_v17 = vadd.f32 %v4321_v9, %v5625_v37  ;;  %v1837_v20 = vmax.f32 %v1465_v51, 0.0 }
 0x219   :  { %v1460_v26 = vadd.f32 %v5625_v37, %v1459_v12  ;;  %v1835_v29 = vmax.f32 %v1457_v21, 0.0 }
 0x21a   :  { %2128 = vadd.xlane.f32.xlu1 %v1963_v13  ;;  %v1838_v25 = vmax.f32 %v1468_v17, 0.0  ;;  %v1972_v8 = vmul.f32 %v5632_v48, %v1837_v20 }
 0x21b   :  { %v1836_v31 = vmax.f32 %v1460_v26, 0.0  ;;  %v1970_v39 = vmul.f32 %v5632_v48, %v1835_v29 }
 0x21c   :  { %2138 = vadd.xlane.f32.xlu0 %v1968_v15  ;;  %v1973_v33 = vmul.f32 %v5632_v48, %v1838_v25 }
 0x21d   :  { %v4324_v19 = vpop.f32.mrb[44].mxu1  ;;  %v1971_v43 = vmul.f32 %v5632_v48, %v1836_v31 }
 0x21e   :  { %v1472_v22 = vpop.f32.mrb[45].mxu1  ;;  %2140 = vadd.xlane.f32.xlu1 %v1969_v18  ;;  %v1481_v30 = vadd.f32 %v4324_v19, %v5625_v37 }
 0x21f   :  { %v4325_v24 = vpop.f32.mrb[46].mxu1  ;;  %v1473_v36 = vadd.f32 %v5625_v37, %v1472_v22 }
 0x220   :  { %v1475_v27 = vpop.f32.mrb[47].mxu1  ;;  %2134 = vadd.xlane.f32.xlu0 %v1966_v23  ;;  %v1484_v32 = vadd.f32 %v4325_v24, %v5625_v37  ;;  %v1841_v35 = vmax.f32 %v1481_v30, 0.0 }
 0x221   :  { %v1476_v42 = vadd.f32 %v5625_v37, %v1475_v27  ;;  %v1839_v44 = vmax.f32 %v1473_v36, 0.0 }
 0x222   :  { %2136 = vadd.xlane.f32.xlu1 %v1967_v28  ;;  %v1842_v41 = vmax.f32 %v1484_v32, 0.0  ;;  %v1976_v46 = vmul.f32 %v5632_v48, %v1841_v35 }
 0x223   :  { %v1840_v47 = vmax.f32 %v1476_v42, 0.0  ;;  %v1974_v56 = vmul.f32 %v5632_v48, %v1839_v44 }
 0x224   :  { %2146 = vadd.xlane.f32.xlu0 %v1972_v8  ;;  %v1977_v50 = vmul.f32 %v5632_v48, %v1842_v41 }
 0x225   :  { %v4328_v34 = vpop.f32.mrb[48].mxu1  ;;  %v1975_v61 = vmul.f32 %v5632_v48, %v1840_v47 }
 0x226   :  { %v1488_v38 = vpop.f32.mrb[49].mxu1  ;;  %2148 = vadd.xlane.f32.xlu1 %v1973_v33  ;;  %v1497_v45 = vadd.f32 %v4328_v34, %v5625_v37 }
 0x227   :  { %v4329_v40 = vpop.f32.mrb[50].mxu1  ;;  %v1489_v54 = vadd.f32 %v5625_v37, %v1488_v38 }
 0x228   :  { %v1491_v5 = vpop.f32.mrb[51].mxu1  ;;  %2142 = vadd.xlane.f32.xlu0 %v1970_v39  ;;  %v1500_v49 = vadd.f32 %v4329_v40, %v5625_v37  ;;  %v1845_v53 = vmax.f32 %v1497_v45, 0.0 }
 0x229   :  { %v1492_v59 = vadd.f32 %v5625_v37, %v1491_v5  ;;  %v1843_v62 = vmax.f32 %v1489_v54, 0.0 }
 0x22a   :  { %2144 = vadd.xlane.f32.xlu1 %v1971_v43  ;;  %v1846_v58 = vmax.f32 %v1500_v49, 0.0  ;;  %v1980_v0 = vmul.f32 %v5632_v48, %v1845_v53 }
 0x22b   :  { %v1844_v1 = vmax.f32 %v1492_v59, 0.0  ;;  %v1978_v10 = vmul.f32 %v5632_v48, %v1843_v62 }
 0x22c   :  { %2154 = vadd.xlane.f32.xlu0 %v1976_v46  ;;  %v1981_v3 = vmul.f32 %v5632_v48, %v1846_v58 }
 0x22d   :  { %v4332_v52 = vpop.f32.mrb[52].mxu1  ;;  %v1979_v51 = vmul.f32 %v5632_v48, %v1844_v1 }
 0x22e   :  { %v1504_v55 = vpop.f32.mrb[53].mxu1  ;;  %2156 = vadd.xlane.f32.xlu1 %v1977_v50  ;;  %v1513_v63 = vadd.f32 %v4332_v52, %v5625_v37  ;;  %v3216_v50 = vlaneseq }
 0x22f   :  { %v4333_v57 = vpop.f32.mrb[54].mxu1  ;;  %v1505_v7 = vadd.f32 %v5625_v37, %v1504_v55 }
 0x230   :  { %v1507_v60 = vpop.f32.mrb[55].mxu1  ;;  %2150 = vadd.xlane.f32.xlu0 %v1974_v56  ;;  %v1516_v2 = vadd.f32 %v4333_v57, %v5625_v37  ;;  %v1849_v6 = vmax.f32 %v1513_v63, 0.0 }
 0x231   :  { %v1508_v13 = vadd.f32 %v5625_v37, %v1507_v60  ;;  %v1847_v15 = vmax.f32 %v1505_v7, 0.0  ;;  %v5795_v7 = vshrl.u32 %v3216_v50, 7 }
 0x232   :  { %2152 = vadd.xlane.f32.xlu1 %v1975_v61  ;;  %v1850_v12 = vmax.f32 %v1516_v2, 0.0  ;;  %v1984_v17 = vmul.f32 %v5632_v48, %v1849_v6  ;;  %v5787_v61 = vand.u32 127, %v3216_v50  ;;  %v5793_v6 = vpop.permute.xlu0 %2317 }
 0x233   :  { %v1848_v18 = vmax.f32 %v1508_v13, 0.0  ;;  %v1982_v25 = vmul.f32 %v5632_v48, %v1847_v15 }
 0x234   :  { %2162 = vadd.xlane.f32.xlu0 %v1980_v0  ;;  %v1985_v20 = vmul.f32 %v5632_v48, %v1850_v12  ;;  %v3264_v13 = vadd.s32 4294967240, %v5787_v61 }
 0x235   :  { %v4336_v4 = vpop.f32.mrb[56].mxu1  ;;  %v1983_v30 = vmul.f32 %v5632_v48, %v1848_v18 }
 0x236   :  { %v1520_v9 = vpop.f32.mrb[57].mxu1  ;;  %2164 = vadd.xlane.f32.xlu1 %v1981_v3  ;;  %v1529_v16 = vadd.f32 %v4336_v4, %v5625_v37 }
 0x237   :  { %v4337_v11 = vpop.f32.mrb[58].mxu1  ;;  %v1521_v23 = vadd.f32 %v5625_v37, %v1520_v9  ;;  %v3257_v9 = vadd.s32 4294967248, %v5787_v61 }
 0x238   :  { %v1523_v14 = vpop.f32.mrb[59].mxu1  ;;  %2158 = vadd.xlane.f32.xlu0 %v1978_v10  ;;  %v1532_v19 = vadd.f32 %v4337_v11, %v5625_v37  ;;  %v1853_v22 = vmax.f32 %v1529_v16, 0.0 }
 0x239   :  { %v1524_v28 = vadd.f32 %v5625_v37, %v1523_v14  ;;  %v1851_v8 = vmax.f32 %v1521_v23, 0.0 }
 0x23a   :  { %2160 = vadd.xlane.f32.xlu1 %v1979_v51  ;;  %v1854_v27 = vmax.f32 %v1532_v19, 0.0  ;;  %v1988_v32 = vmul.f32 %v5632_v48, %v1853_v22  ;;  %v3243_v51 = vadd.s32 4294967264, %v5787_v61 }
 0x23b   :  { %v1852_v33 = vmax.f32 %v1524_v28, 0.0  ;;  %v1986_v41 = vmul.f32 %v5632_v48, %v1851_v8  ;;  %v3250_v28 = vadd.s32 4294967256, %v5787_v61 }
 0x23c   :  { %2170 = vadd.xlane.f32.xlu0 %v1984_v17  ;;  %v1989_v35 = vmul.f32 %v5632_v48, %v1854_v27  ;;  %v5813_v27 = vsub.s32 %v3243_v51, %v5795_v7 }
 0x23d   :  { %v4340_v21 = vpop.f32.mrb[60].mxu1  ;;  %v1987_v45 = vmul.f32 %v5632_v48, %v1852_v33 }
 0x23e   :  { %v1536_v24 = vpop.f32.mrb[61].mxu1  ;;  %2172 = vadd.xlane.f32.xlu1 %v1985_v20  ;;  %v1545_v31 = vadd.f32 %v4340_v21, %v5625_v37  ;;  %v5805_v20 = vsub.s32 %v3257_v9, %v5795_v7  ;;  %7052 = vst [vmem:[#allocation6_spill] sm:$0xff] %v5813_v27 }
 0x23f   :  { %v4341_v26 = vpop.f32.mrb[62].mxu1  ;;  %v1537_v39 = vadd.f32 %v5625_v37, %v1536_v24 }
 0x240   :  { %v1539_v29 = vpop.f32.mrb[63].mxu1  ;;  %2166 = vadd.xlane.f32.xlu0 %v1982_v25  ;;  %v1548_v34 = vadd.f32 %v4341_v26, %v5625_v37  ;;  %v1857_v38 = vmax.f32 %v1545_v31, 0.0  ;;  %v5810_v25 = vsub.s32 %v3264_v13, %v5795_v7 }
 0x241   :  { %v1540_v43 = vadd.f32 %v5625_v37, %v1539_v29  ;;  %v1855_v46 = vmax.f32 %v1537_v39, 0.0  ;;  %v3285_v29 = vadd.s32 4294967216, %v5787_v61  ;;  %v3313_v39 = vadd.s32 4294967184, %v5787_v61 }
 0x242   :  { %2168 = vadd.xlane.f32.xlu1 %v1983_v30  ;;  %v1858_v5 = vmax.f32 %v1548_v34, 0.0  ;;  %v1992_v49 = vmul.f32 %v5632_v48, %v1857_v38  ;;  %v3292_v30 = vadd.s32 4294967208, %v5787_v61  ;;  %v3278_v38 = vadd.s32 4294967224, %v5787_v61 }
 0x243   :  { %v1856_v52 = vmax.f32 %v1540_v43, 0.0  ;;  %v1990_v59 = vmul.f32 %v5632_v48, %v1855_v46  ;;  %v5829_v46 = vsub.s32 %v3250_v28, %v5795_v7 }
 0x244   :  { %2178 = vadd.xlane.f32.xlu0 %v1988_v32  ;;  %v1993_v54 = vmul.f32 %v5632_v48, %v1858_v5 }
 0x245   :  { %v4344_v36 = vpop.f32.mrb[64].mxu1  ;;  %v1991_v1 = vmul.f32 %v5632_v48, %v1856_v52  ;;  %7053 = vst [vmem:[#allocation7_spill] sm:$0xff] %v5829_v46 }
 0x246   :  { %v1552_v40 = vpop.f32.mrb[65].mxu1  ;;  %2180 = vadd.xlane.f32.xlu1 %v1989_v35  ;;  %v1561_v47 = vadd.f32 %v4344_v36, %v5625_v37  ;;  %v3271_v36 = vadd.s32 4294967232, %v5787_v61 }
 0x247   :  { %v4345_v42 = vpop.f32.mrb[66].mxu1  ;;  %v1553_v57 = vadd.f32 %v5625_v37, %v1552_v40 }
 0x248   :  { %v1555_v44 = vpop.f32.mrb[67].mxu1  ;;  %2174 = vadd.xlane.f32.xlu0 %v1986_v41  ;;  %v1564_v53 = vadd.f32 %v4345_v42, %v5625_v37  ;;  %v1861_v56 = vmax.f32 %v1561_v47, 0.0  ;;  %v5832_v47 = vsub.s32 %v3285_v29, %v5795_v7 }
 0x249   :  { %v1556_v63 = vadd.f32 %v5625_v37, %v1555_v44  ;;  %v1859_v2 = vmax.f32 %v1553_v57, 0.0 }
 0x24a   :  { %2176 = vadd.xlane.f32.xlu1 %v1987_v45  ;;  %v1862_v62 = vmax.f32 %v1564_v53, 0.0  ;;  %v1996_v4 = vmul.f32 %v5632_v48, %v1861_v56 }
 0x24b   :  { %v1860_v10 = vmax.f32 %v1556_v63, 0.0  ;;  %v1994_v18 = vmul.f32 %v5632_v48, %v1859_v2 }
 0x24c   :  { %2186 = vadd.xlane.f32.xlu0 %v1992_v49  ;;  %v1997_v12 = vmul.f32 %v5632_v48, %v1862_v62  ;;  %v5835_v49 = vsub.s32 %v3292_v30, %v5795_v7  ;;  %v5846_v62 = vsub.s32 %v3313_v39, %v5795_v7 }
 0x24d   :  { %v4348_v55 = vpop.f32.mrb[68].mxu1  ;;  %v1995_v24 = vmul.f32 %v5632_v48, %v1860_v10 }
 0x24e   :  { %v1568_v58 = vpop.f32.mrb[69].mxu1  ;;  %2188 = vadd.xlane.f32.xlu1 %v1993_v54  ;;  %v1577_v3 = vadd.f32 %v4348_v55, %v5625_v37  ;;  %7054 = vst [vmem:[#allocation8_spill] sm:$0xff] %v5846_v62 }
 0x24f   :  { %v4349_v60 = vpop.f32.mrb[70].mxu1  ;;  %v1569_v16 = vadd.f32 %v5625_v37, %v1568_v58 }
 0x250   :  { %v1571_v0 = vpop.f32.mrb[71].mxu1  ;;  %2182 = vadd.xlane.f32.xlu0 %v1990_v59  ;;  %v1580_v11 = vadd.f32 %v4349_v60, %v5625_v37  ;;  %v1865_v15 = vmax.f32 %v1577_v3, 0.0  ;;  %v5840_v59 = vsub.s32 %v3271_v36, %v5795_v7  ;;  %v5843_v60 = vsub.s32 %v3278_v38, %v5795_v7 }
 0x251   :  { %v1572_v22 = vadd.f32 %v5625_v37, %v1571_v0  ;;  %v1863_v8 = vmax.f32 %v1569_v16, 0.0  ;;  %v3320_v3 = vadd.s32 4294967176, %v5787_v61 }
 0x252   :  { %2184 = vadd.xlane.f32.xlu1 %v1991_v1  ;;  %v1866_v21 = vmax.f32 %v1580_v11, 0.0  ;;  %v2000_v33 = vmul.f32 %v5632_v48, %v1865_v15 }
 0x253   :  { %v1864_v40 = vmax.f32 %v1572_v22, 0.0  ;;  %v1998_v55 = vmul.f32 %v5632_v48, %v1863_v8 }
 0x254   :  { %2194 = vadd.xlane.f32.xlu0 %v1996_v4  ;;  %v2001_v5 = vmul.f32 %v5632_v48, %v1866_v21 }
 0x255   :  { %v4352_v14 = vpop.f32.mrb[72].mxu1  ;;  %v1999_v2 = vmul.f32 %v5632_v48, %v1864_v40  ;;  %v3306_v40 = vadd.s32 4294967192, %v5787_v61 }
 0x256   :  { %v1584_v17 = vpop.f32.mrb[73].mxu1  ;;  %2196 = vadd.xlane.f32.xlu1 %v1997_v12  ;;  %v1593_v31 = vadd.f32 %v4352_v14, %v5625_v37 }
 0x257   :  { %v4353_v19 = vpop.f32.mrb[74].mxu1  ;;  %v1585_v43 = vadd.f32 %v5625_v37, %v1584_v17 }
 0x258   :  { %v1587_v23 = vpop.f32.mrb[75].mxu1  ;;  %2190 = vadd.xlane.f32.xlu0 %v1994_v18  ;;  %v1869_v50 = vmax.f32 %v1593_v31, 0.0  ;;  %v1596_v9 = vadd.f32 %v4353_v19, %v5625_v37  ;;  %v3299_v19 = vadd.s32 4294967200, %v5787_v61  ;;  %v5862_v31 = vsub.s32 %v3320_v3, %v5795_v7 }
 0x259   :  { %v2067_v26 = vpop.xlane.xlu0 %2066  ;;  %v1588_v34 = vadd.f32 %v5625_v37, %v1587_v23  ;;  %v1867_v4 = vmax.f32 %v1585_v43, 0.0 }
 0x25a   :  { %v2326_v32 = vadd.f32 %v5793_v6, %v2067_v26  ;;  %2192 = vadd.xlane.f32.xlu1 %v1995_v24  ;;  %v2004_v15 = vmul.f32 %v5632_v48, %v1869_v50  ;;  %v1870_v26 = vmax.f32 %v1596_v9, 0.0  ;;  %7055 = vst [vmem:[#allocation9_spill] sm:$0xff] %v5862_v31 }
 0x25b   :  { %v2069_v35 = vpop.xlane.xlu1 %2068  ;;  %v1868_v56 = vmax.f32 %v1588_v34, 0.0  ;;  %v2002_v8 = vmul.f32 %v5632_v48, %v1867_v4 }
 0x25c   :  { %v2454_v41 = vsub.f32 0.0, %v2326_v32  ;;  %v2327_v42 = vadd.f32 %v5793_v6, %v2069_v35  ;;  %2202 = vadd.xlane.f32.xlu0 %v2000_v33 }
 0x25d   :  { %v4356_v44 = vpop.f32.mrb[76].mxu1  ;;  %v2063_v45 = vpop.xlane.xlu0 %2062  ;;  %v2003_v21 = vmul.f32 %v5632_v48, %v1868_v56  ;;  %v3229_v56 = vadd.s32 4294967280, %v5787_v61 }
 0x25e   :  { %v2455_v52 = vsub.f32 0.0, %v2327_v42  ;;  %v2324_v53 = vadd.f32 %v5793_v6, %v2063_v45  ;;  %v1600_v54 = vpop.f32.mrb[77].mxu1  ;;  %2204 = vadd.xlane.f32.xlu1 %v2001_v5  ;;  %v2588_v63 = vmul.f32 1.442695, %v2454_v41  ;;  %v1609_v28 = vadd.f32 %v4356_v44, %v5625_v37  ;;  %v5872_v41 = vld [vmem:[%s7027_s4] ss:$0 sm:$0xff] }
 0x25f   :  { %v4357_v57 = vpop.f32.mrb[78].mxu1  ;;  %v2065_v58 = vpop.xlane.xlu1 %2064  ;;  %v5878_v44 = vld [vmem:[%s7028_s5] ss:$0 sm:$0xff] }
 0x260   :  { %v2452_v0 = vsub.f32 0.0, %v2324_v53  ;;  %v1603_v1 = vpop.f32.mrb[79].mxu1  ;;  %2198 = vadd.xlane.f32.xlu0 %v1998_v55  ;;  %v1612_v10 = vadd.f32 %v4357_v57, %v5625_v37  ;;  %v2325_v11 = vadd.f32 %v5793_v6, %v2065_v58  ;;  %v2590_v13 = vmul.f32 1.442695, %v2455_v52 }
 0x261   :  { %v2075_v12 = vpop.xlane.xlu0 %2074  ;;  %v1604_v14 = vadd.f32 %v5625_v37, %v1603_v1  ;;  %4431 = vpow2.f32 %v2588_v63  ;;  %v5866_v37 = vsub.s32 %v3299_v19, %v5795_v7  ;;  %v1873_v50 = vmax.f32 %v1609_v28, 0.0 }
 0x262   :  { %v2330_v51 = vadd.f32 %v5793_v6, %v2075_v12  ;;  %2200 = vadd.xlane.f32.xlu1 %v1999_v2  ;;  %v2584_v16 = vmul.f32 1.442695, %v2452_v0  ;;  %v2453_v17 = vsub.f32 0.0, %v2325_v11  ;;  %v1874_v22 = vmax.f32 %v1612_v10, 0.0 }
 0x263   :  { %v2077_v18 = vpop.xlane.xlu1 %2076  ;;  %4433 = vpow2.f32 %v2590_v13  ;;  %v1872_v32 = vmax.f32 %v1604_v14, 0.0  ;;  %v1601_v52 = vadd.f32 %v5872_v41, %v1600_v54  ;;  %v2005_v63 = vmul.f32 %v5878_v44, %v1870_v26 }
 0x264   :  { %v2458_v23 = vsub.f32 0.0, %v2330_v51  ;;  %v2331_v24 = vadd.f32 %v5793_v6, %v2077_v18  ;;  %2210 = vadd.xlane.f32.xlu0 %v2004_v15  ;;  %4435 = vpow2.f32 %v2584_v16  ;;  %v2586_v36 = vmul.f32 1.442695, %v2453_v17 }
 0x265   :  { %v4360_v29 = vpop.f32.mrb[80].mxu1  ;;  %v2071_v30 = vpop.xlane.xlu0 %2070  ;;  %v2009_v45 = vmul.f32 %v5878_v44, %v1874_v22  ;;  %v2007_v0 = vmul.f32 %v5878_v44, %v1872_v32  ;;  %v1871_v11 = vmax.f32 %v1601_v52, 0.0  ;;  %v5890_v51 = vsub.s32 %v3306_v40, %v5795_v7 }
 0x266   :  { %v2459_v33 = vsub.f32 0.0, %v2331_v24  ;;  %v2328_v34 = vadd.f32 %v5793_v6, %v2071_v30  ;;  %v1616_v35 = vpop.f32.mrb[81].mxu1  ;;  %2208 = vadd.xlane.f32.xlu1 %v2003_v21  ;;  %v2596_v48 = vmul.f32 1.442695, %v2458_v23  ;;  %v1625_v42 = vadd.f32 %v5872_v41, %v4360_v29 }
 0x267   :  { %v4361_v38 = vpop.f32.mrb[82].mxu1  ;;  %v2073_v39 = vpop.xlane.xlu1 %2072  ;;  %4437 = vpow2.f32 %v2586_v36  ;;  %v1617_v2 = vadd.f32 %v5872_v41, %v1616_v35  ;;  %v2008_v15 = vmul.f32 %v5878_v44, %v1873_v50  ;;  %v5900_v26 = vsub.s32 %v3229_v56, %v5795_v7 }
 0x268   :  { %v2456_v5 = vsub.f32 0.0, %v2328_v34  ;;  %v1619_v43 = vpop.f32.mrb[83].mxu1  ;;  %2206 = vadd.xlane.f32.xlu0 %v2002_v8  ;;  %v2329_v53 = vadd.f32 %v5793_v6, %v2073_v39  ;;  %v2598_v57 = vmul.f32 1.442695, %v2459_v33  ;;  %4439 = vpow2.f32 %v2596_v48 }
 0x269   :  { %v2083_v55 = vpop.xlane.xlu0 %2082  ;;  %v1877_v54 = vmax.f32 %v1625_v42, 0.0  ;;  %v1628_v22 = vadd.f32 %v5872_v41, %v4361_v38  ;;  %v3236_v28 = vadd.s32 4294967272, %v5787_v61  ;;  %v1875_v30 = vmax.f32 %v1617_v2, 0.0 }
 0x26a   :  { %v2334_v58 = vadd.f32 %v5793_v6, %v2083_v55  ;;  %2220 = vadd.xlane.f32.xlu1 %v2009_v45  ;;  %v2592_v1 = vmul.f32 1.442695, %v2456_v5  ;;  %v2457_v3 = vsub.f32 0.0, %v2329_v53  ;;  %4441 = vpow2.f32 %v2598_v57 }
 0x26b   :  { %v2085_v4 = vpop.xlane.xlu1 %2084  ;;  %v4432_v16 = vpop.eup %4431  ;;  %v2012_v34 = vmul.f32 %v5878_v44, %v1877_v54  ;;  %v5909_v40 = vsub.s32 %v5787_v61, %v5795_v7  ;;  %v1620_v48 = vadd.f32 %v5872_v41, %v1619_v43  ;;  %v2006_v5 = vmul.f32 %v5878_v44, %v1871_v11 }
 0x26c   :  { %v2462_v9 = vsub.f32 0.0, %v2334_v58  ;;  %v2335_v10 = vadd.f32 %v5793_v6, %v2085_v4  ;;  %2212 = vadd.xlane.f32.xlu0 %v2005_v63  ;;  %v2594_v12 = vmul.f32 1.442695, %v2457_v3  ;;  %4443 = vpow2.f32 %v2592_v1 }
 0x26d   :  { %v4364_v13 = vpop.f32.mrb[84].mxu1  ;;  %v2079_v14 = vpop.xlane.xlu0 %2078  ;;  %v2838_v36 = vadd.f32 1.0, %v4432_v16  ;;  %v1878_v50 = vmax.f32 %v1628_v22, 0.0  ;;  %v5914_v55 = vsub.s32 %v3236_v28, %v5795_v7  ;;  %v2010_v43 = vmul.f32 %v5878_v44, %v1875_v30 }
 0x26e   :  { %v2604_v17 = vmul.f32 1.442695, %v2462_v9  ;;  %v2463_v18 = vsub.f32 0.0, %v2335_v10  ;;  %v2332_v21 = vadd.f32 %v5793_v6, %v2079_v14  ;;  %v5894_v19 = vpop.f32.mrb[85].mxu1  ;;  %2216 = vadd.xlane.f32.xlu1 %v2007_v0  ;;  %v4434_v29 = vpop.eup %4433  ;;  %4445 = vpow2.f32 %v2594_v12 }
 0x26f   :  { %v5897_v23 = vpop.f32.mrb[86].mxu1  ;;  %v2081_v24 = vpop.xlane.xlu1 %2080  ;;  %v2839_v45 = vadd.f32 1.0, %v4434_v29  ;;  %v3222_v3 = vadd.s32 4294967288, %v5787_v61  ;;  %v1876_v54 = vmax.f32 %v1620_v48, 0.0  ;;  %v1641_v12 = vadd.f32 %v5872_v41, %v4364_v13 }
 0x270   :  { %v2606_v8 = vmul.f32 1.442695, %v2463_v18  ;;  %v2460_v32 = vsub.f32 0.0, %v2332_v21  ;;  %v5903_v33 = vpop.f32.mrb[87].mxu1  ;;  %2218 = vadd.xlane.f32.xlu0 %v2008_v15  ;;  %v4436_v35 = vpop.eup %4435  ;;  %v2333_v38 = vadd.f32 %v5793_v6, %v2081_v24  ;;  %4447 = vpow2.f32 %v2604_v17 }
 0x271   :  { %v2091_v39 = vpop.xlane.xlu0 %2090  ;;  %v4438_v58 = vpop.eup %4437  ;;  %v2836_v63 = vadd.f32 1.0, %v4436_v35  ;;  %v2013_v17 = vmul.f32 %v5878_v44, %v1878_v50  ;;  %v5931_v30 = vadd.f32 %v5872_v41, %v5894_v19  ;;  %v2011_v35 = vmul.f32 %v5878_v44, %v1876_v54 }
 0x272   :  { %v2600_v42 = vmul.f32 1.442695, %v2460_v32  ;;  %2226 = vadd.xlane.f32.xlu1 %v2012_v34  ;;  %v2461_v52 = vsub.f32 0.0, %v2333_v38  ;;  %4449 = vpow2.f32 %v2606_v8  ;;  %v2338_v56 = vadd.f32 %v5793_v6, %v2091_v39  ;;  %v4440_v4 = vpop.eup %4439 }
 0x273   :  { %v2059_v53 = vpop.xlane.xlu1 %2058  ;;  %4451 = vrcp.f32 %v2838_v36  ;;  %v2837_v21 = vadd.f32 1.0, %v4438_v58  ;;  %v2842_v29 = vadd.f32 1.0, %v4440_v4  ;;  %v5935_v34 = vsub.s32 %v3222_v3, %v5795_v7 }
 0x274   :  { %v2322_v57 = vadd.f32 %v5793_v6, %v2059_v53  ;;  %2214 = vadd.xlane.f32.xlu0 %v2006_v5  ;;  %v2602_v0 = vmul.f32 1.442695, %v2461_v52  ;;  %4453 = vpow2.f32 %v2600_v42  ;;  %v2466_v9 = vsub.f32 0.0, %v2338_v56  ;;  %v4442_v18 = vpop.eup %4441 }
 0x275   :  { %v5919_v1 = vpop.f32.mrb[88].mxu1  ;;  %v2087_v2 = vpop.xlane.xlu0 %2086  ;;  %4455 = vrcp.f32 %v2839_v45  ;;  %v2843_v38 = vadd.f32 1.0, %v4442_v18  ;;  %v1881_v45 = vmax.f32 %v1641_v12, 0.0  ;;  %v1879_v52 = vmax.f32 %v5931_v30, 0.0 }
 0x276   :  { %v2450_v10 = vsub.f32 0.0, %v2322_v57  ;;  %v5922_v11 = vpop.f32.mrb[89].mxu1  ;;  %2222 = vadd.xlane.f32.xlu1 %v2010_v43  ;;  %v2336_v14 = vadd.f32 %v5793_v6, %v2087_v2  ;;  %4457 = vpow2.f32 %v2602_v0  ;;  %v2612_v61 = vmul.f32 1.442695, %v2466_v9  ;;  %v4444_v28 = vpop.eup %4443 }
 0x277   :  { %v4369_v15 = vpop.f32.mrb[90].mxu1  ;;  %v2093_v16 = vpop.xlane.xlu1 %2092  ;;  %4459 = vrcp.f32 %v2836_v63  ;;  %v2840_v5 = vadd.f32 1.0, %v4444_v28  ;;  %v5942_v7 = vadd.f32 %v5872_v41, %v5897_v23 }
 0x278   :  { %v2580_v22 = vmul.f32 1.442695, %v2450_v10  ;;  %v5927_v24 = vpop.f32.mrb[91].mxu1  ;;  %v2464_v13 = vsub.f32 0.0, %v2336_v14  ;;  %4461 = vpow2.f32 %v2612_v61  ;;  %v2339_v32 = vadd.f32 %v5793_v6, %v2093_v16  ;;  %v4446_v36 = vpop.eup %4445 }
 0x279   :  { %v2055_v8 = vpop.xlane.xlu0 %2054  ;;  %v1660_v48 = vadd.f32 %v5872_v41, %v4369_v15  ;;  %v2841_v58 = vadd.f32 1.0, %v4446_v36  ;;  %v5954_v14 = vadd.f32 %v5872_v41, %v5903_v33  ;;  %v1657_v36 = vadd.f32 %v5872_v41, %v5919_v1 }
 0x27a   :  { %2228 = vadd.xlane.f32.xlu1 %v2013_v17  ;;  %4463 = vpow2.f32 %v2580_v22  ;;  %v2608_v39 = vmul.f32 1.442695, %v2464_v13  ;;  %v4448_v19 = vpop.eup %4447  ;;  %v2467_v50 = vsub.f32 0.0, %v2339_v32  ;;  %v2320_v53 = vadd.f32 %v5793_v6, %v2055_v8 }
 0x27b   :  { %v2089_v42 = vpop.xlane.xlu1 %2088  ;;  %4465 = vrcp.f32 %v2837_v21  ;;  %v2846_v4 = vadd.f32 1.0, %v4448_v19  ;;  %v1886_v54 = vmax.f32 %v1660_v48, 0.0  ;;  %v2016_v17 = vmul.f32 %v5878_v44, %v1881_v45 }
 0x27c   :  { %4467 = vrcp.f32 %v2842_v29  ;;  %v4450_v43 = vpop.eup %4449  ;;  %v2614_v63 = vmul.f32 1.442695, %v2467_v50  ;;  %v2337_v0 = vadd.f32 %v5793_v6, %v2089_v42  ;;  %v2448_v23 = vsub.f32 0.0, %v2320_v53 }
 0x27d   :  { %v4372_v56 = vpop.f32.mrb[92].mxu1  ;;  %v2057_v57 = vpop.xlane.xlu0 %2056  ;;  %4469 = vpow2.f32 %v2608_v39  ;;  %v2847_v21 = vadd.f32 1.0, %v4450_v43  ;;  %v5971_v19 = vadd.f32 %v5872_v41, %v5922_v11 }
 0x27e   :  { %v5946_v2 = vpop.f32.mrb[93].mxu1  ;;  %2224 = vadd.xlane.f32.xlu1 %v2011_v35  ;;  %v5948_v3 = vpop.eup %4451  ;;  %4471 = vrcp.f32 %v2843_v38  ;;  %v2465_v15 = vsub.f32 0.0, %v2337_v0  ;;  %v2576_v22 = vmul.f32 1.442695, %v2448_v23  ;;  %v1673_v8 = vadd.f32 %v5872_v41, %v4372_v56 }
 0x27f   :  { %7056 = vst [vmem:[#allocation10_spill] sm:$0xff] %v5948_v3  ;;  %v5950_v9 = vpop.f32.mrb[94].mxu1  ;;  %v2061_v10 = vpop.xlane.xlu1 %2060  ;;  %4473 = vrcp.f32 %v2840_v5  ;;  %v2321_v33 = vadd.f32 %v5793_v6, %v2057_v57  ;;  %v2021_v38 = vmul.f32 %v5878_v44, %v1886_v54  ;;  %v1885_v23 = vmax.f32 %v1657_v36, 0.0 }
 0x280   :  { %v4454_v12 = vpop.eup %4453  ;;  %v5956_v16 = vpop.f32.mrb[95].mxu1  ;;  %4475 = vpow2.f32 %v2614_v63  ;;  %v2610_v13 = vmul.f32 1.442695, %v2465_v15  ;;  %v2323_v1 = vadd.f32 %v5793_v6, %v2061_v10  ;;  %v1889_v11 = vmax.f32 %v1673_v8, 0.0 }
 0x281   :  { %v5959_v18 = vpop.eup %4455  ;;  %v2099_v28 = vpop.xlane.xlu0 %2098  ;;  %4477 = vrcp.f32 %v2841_v58  ;;  %v2844_v35 = vadd.f32 1.0, %v4454_v12  ;;  %v2449_v5 = vsub.f32 0.0, %v2321_v33  ;;  %2244 = vadd.xlane.f32.xlu0 %v2021_v38  ;;  %v6029_v30 = vadd.f32 %v5872_v41, %v5956_v16 }
 0x282   :  { %7057 = vst [vmem:[#allocation11_spill] sm:$0xff] %v5959_v18  ;;  %v4458_v29 = vpop.eup %4457  ;;  %2234 = vadd.xlane.f32.xlu1 %v2016_v17  ;;  %4479 = vrcp.f32 %v2846_v4  ;;  %v2451_v12 = vsub.f32 0.0, %v2323_v1 }
 0x283   :  { %v5964_v32 = vpop.eup %4459  ;;  %v2101_v39 = vpop.xlane.xlu1 %2100  ;;  %v2845_v42 = vadd.f32 1.0, %v4458_v29  ;;  %4481 = vpow2.f32 %v2576_v22  ;;  %v2578_v63 = vmul.f32 1.442695, %v2449_v5  ;;  %v2342_v22 = vadd.f32 %v5793_v6, %v2099_v28 }
 0x284   :  { %7058 = vst [vmem:[#allocation12_spill] sm:$0xff] %v5964_v32  ;;  %v4462_v48 = vpop.eup %4461  ;;  %4483 = vrcp.f32 %v2847_v21  ;;  %v1883_v21 = vmax.f32 %v5971_v19, 0.0  ;;  %v2343_v29 = vadd.f32 %v5793_v6, %v2101_v39  ;;  %v2582_v36 = vmul.f32 1.442695, %v2451_v12 }
 0x285   :  { %v4464_v45 = vpop.eup %4463  ;;  %v5977_v56 = vpop.f32.mrb[96].mxu1  ;;  %v2850_v58 = vadd.f32 1.0, %v4462_v48  ;;  %4485 = vpow2.f32 %v2610_v13  ;;  %v2024_v28 = vmul.f32 %v5878_v44, %v1889_v11  ;;  %v6011_v11 = vmul.f32 %v5878_v44, %v1885_v23 }
 0x286   :  { %v2095_v57 = vpop.xlane.xlu0 %2094  ;;  %v5979_v43 = vpop.eup %4465  ;;  %4487 = vrcp.f32 %v2844_v35  ;;  %v2834_v54 = vadd.f32 1.0, %v4464_v45  ;;  %v1652_v35 = vadd.f32 %v5872_v41, %v5927_v24  ;;  %v2471_v19 = vsub.f32 0.0, %v2343_v29 }
 0x287   :  { %7059 = vst [vmem:[#allocation13_spill] sm:$0xff] %v5979_v43  ;;  %v5981_v0 = vpop.f32.mrb[97].mxu1  ;;  %v5983_v4 = vpop.eup %4467  ;;  %4489 = vrcp.f32 %v2845_v42  ;;  %v2470_v42 = vsub.f32 0.0, %v2342_v22  ;;  %v1676_v45 = vadd.f32 %v5872_v41, %v5950_v9  ;;  %v2340_v24 = vadd.f32 %v5793_v6, %v2095_v57  ;;  %2250 = vadd.xlane.f32.xlu0 %v2024_v28 }
 0x288   :  { %7060 = vst [vmem:[#allocation14_spill] sm:$0xff] %v5983_v4  ;;  %v5985_v15 = vpop.f32.mrb[98].mxu1  ;;  %v2097_v10 = vpop.xlane.xlu1 %2096  ;;  %4491 = vpow2.f32 %v2578_v63  ;;  %v2014_v9 = vmul.f32 %v5878_v44, %v1879_v52  ;;  %v1888_v61 = vmax.f32 %v6029_v30, 0.0 }
 0x289   :  { %v4470_v17 = vpop.eup %4469  ;;  %v5990_v13 = vpop.f32.mrb[99].mxu1  ;;  %4493 = vrcp.f32 %v2850_v58  ;;  %v2620_v58 = vmul.f32 1.442695, %v2470_v42  ;;  %v1665_v42 = vadd.f32 %v5872_v41, %v5946_v2  ;;  %v1890_v5 = vmax.f32 %v1676_v45, 0.0 }
 0x28a   :  { %v5992_v8 = vpop.eup %4471  ;;  %v2848_v33 = vadd.f32 1.0, %v4470_v17  ;;  %v5996_v38 = vpop.xlane.xlu0 %2106  ;;  %4495 = vrcp.f32 %v2834_v54  ;;  %v2622_v17 = vmul.f32 1.442695, %v2471_v19  ;;  %v2468_v54 = vsub.f32 0.0, %v2340_v24  ;;  %2230 = vadd.xlane.f32.xlu1 %v2014_v9 }
 0x28b   :  { %7061 = vst [vmem:[#allocation15_spill] sm:$0xff] %v5992_v8  ;;  %v5998_v48 = vpop.eup %4473  ;;  %4497 = vpow2.f32 %v2582_v36  ;;  %v1884_v36 = vmax.f32 %v1652_v35, 0.0  ;;  %v2341_v19 = vadd.f32 %v5793_v6, %v2097_v10  ;;  %v6038_v10 = vmul.f32 %v5878_v44, %v1883_v21 }
 0x28c   :  { %7062 = vst [vmem:[#allocation16_spill] sm:$0xff] %v5998_v48  ;;  %v4476_v39 = vpop.eup %4475  ;;  %v2109_v1 = vpop.xlane.xlu1 %2108  ;;  %4499 = vrcp.f32 %v2848_v33  ;;  %v2616_v52 = vmul.f32 1.442695, %v2468_v54  ;;  %v2025_v21 = vmul.f32 %v5878_v44, %v1890_v5 }
 0x28d   :  { %v6006_v63 = vpop.eup %4477  ;;  %v2851_v12 = vadd.f32 1.0, %v4476_v39  ;;  %v6016_v57 = vpop.f32.mrb[100].mxu1  ;;  %v2469_v9 = vsub.f32 0.0, %v2341_v19  ;;  %v6053_v45 = vmul.f32 %v5878_v44, %v1884_v36  ;;  %v2346_v36 = vadd.f32 %v5793_v6, %v5996_v38 }
 0x28e   :  { %7063 = vst [vmem:[#allocation17_spill] sm:$0xff] %v6006_v63  ;;  %v6008_v22 = vpop.eup %4479  ;;  %v6018_v29 = vpop.xlane.xlu0 %2102  ;;  %v2347_v5 = vadd.f32 %v5793_v6, %v2109_v1  ;;  %2252 = vadd.xlane.f32.xlu0 %v2025_v21 }
 0x28f   :  { %7064 = vst [vmem:[#allocation18_spill] sm:$0xff] %v6008_v22  ;;  %v4482_v39 = vpop.eup %4481  ;;  %4501 = vrcp.f32 %v2851_v12  ;;  %v6023_v23 = vpop.f32.mrb[101].mxu1  ;;  %v2618_v19 = vmul.f32 1.442695, %v2469_v9  ;;  %v2344_v9 = vadd.f32 %v5793_v6, %v6018_v29 }
 0x290   :  { %v6025_v33 = vpop.eup %4483  ;;  %v2832_v28 = vadd.f32 1.0, %v4482_v39  ;;  %4503 = vpow2.f32 %v2620_v58  ;;  %v6031_v24 = vpop.f32.mrb[102].mxu1  ;;  %v2475_v4 = vsub.f32 0.0, %v2347_v5 }
 0x291   :  { %7065 = vst [vmem:[#allocation19_spill] sm:$0xff] %v6025_v33  ;;  %v6033_v35 = vpop.xlane.xlu1 %2104  ;;  %v4486_v12 = vpop.eup %4485  ;;  %4505 = vpow2.f32 %v2622_v17  ;;  %v1887_v17 = vmax.f32 %v1665_v42, 0.0  ;;  %v7068_v42 = vmax.f32 %v5942_v7, 0.0  ;;  %v2472_v3 = vsub.f32 0.0, %v2344_v9 }
 0x292   :  { %v6040_v39 = vpop.f32.mrb[103].mxu1  ;;  %v6042_v16 = vpop.eup %4487  ;;  %4507 = vrcp.f32 %v2832_v28  ;;  %v2849_v54 = vadd.f32 1.0, %v4486_v12  ;;  %v6058_v28 = vadd.f32 %v5872_v41, %v5977_v56 }
 0x293   :  { %7066 = vst [vmem:[#allocation20_spill] sm:$0xff] %v6042_v16  ;;  %v6046_v50 = vpop.xlane.xlu0 %2114  ;;  %v6048_v53 = vpop.eup %4489  ;;  %4509 = vpow2.f32 %v2616_v52  ;;  %v2017_v52 = vmul.f32 %v5878_v44, %v7068_v42  ;;  %v6087_v42 = vadd.f32 %v5872_v41, %v5985_v15  ;;  %v6092_v56 = vmul.f32 %v5878_v44, %v1887_v17 }
 0x294   :  { %7067 = vst [vmem:[#allocation21_spill] sm:$0xff] %v6048_v53  ;;  %v4492_v2 = vpop.eup %4491  ;;  %4511 = vrcp.f32 %v2849_v54  ;;  %v6076_v54 = vadd.f32 %v5872_v41, %v5981_v0  ;;  %v2474_v0 = vsub.f32 0.0, %v2346_v36  ;;  %v7069_v17 = vmax.f32 %v5954_v14, 0.0 }
 0x295   :  { %v6060_v12 = vpop.xlane.xlu1 %2116  ;;  %v6062_v58 = vpop.eup %4493  ;;  %v2833_v53 = vadd.f32 1.0, %v4492_v2  ;;  %4513 = vpow2.f32 %v2618_v19  ;;  %2236 = vadd.xlane.f32.xlu1 %v2017_v52  ;;  %v2023_v52 = vmul.f32 %v5878_v44, %v1888_v61  ;;  %v2630_v16 = vmul.f32 1.442695, %v2475_v4 }
 0x296   :  { %v6070_v30 = vpop.eup %4495  ;;  %v6079_v2 = vpop.f32.mrb[104].mxu1  ;;  %v2628_v36 = vmul.f32 1.442695, %v2474_v0  ;;  %v2015_v18 = vmul.f32 %v5878_v44, %v7069_v17  ;;  %v3339_v0 = vrot.slane %v6062_v58, %v5900_v26  ;;  %v6117_v14 = vadd.f32 %v5872_v41, %v5990_v13 }
 0x297   :  { %v6081_v38 = vpop.xlane.xlu0 %2110  ;;  %v4498_v7 = vpop.eup %4497  ;;  %4515 = vrcp.f32 %v2833_v53  ;;  %2248 = vadd.xlane.f32.xlu0 %v2023_v52  ;;  %v3233_v4 = vrot.slane %v6070_v30, %v5900_v26  ;;  %v2624_v17 = vmul.f32 1.442695, %v2472_v3  ;;  %v1708_v13 = vadd.f32 %v5872_v41, %v6031_v24 }
 0x298   :  { %v6089_v19 = vpop.f32.mrb[105].mxu1  ;;  %v4500_v1 = vpop.eup %4499  ;;  %v2835_v8 = vadd.f32 1.0, %v4498_v7  ;;  %v2350_v3 = vadd.f32 %v5793_v6, %v6046_v50  ;;  %v2351_v24 = vadd.f32 %v5793_v6, %v6060_v12 }
 0x299   :  { %v6096_v53 = vpop.f32.mrb[106].mxu1  ;;  %v6098_v48 = vpop.xlane.xlu1 %2112  ;;  %2232 = vadd.xlane.f32.xlu1 %v2015_v18  ;;  %v3330_v9 = vrot.slane %v4500_v1, %v5909_v40  ;;  %v2345_v18 = vadd.f32 %v5793_v6, %v6033_v35 }
 0x29a   :  { %v6100_v15 = vpop.eup %4501  ;;  %v6107_v7 = vpop.f32.mrb[107].mxu1  ;;  %4517 = vrcp.f32 %v2835_v8  ;;  %v2479_v12 = vsub.f32 0.0, %v2351_v24 }
 0x29b   :  { %v4504_v5 = vpop.eup %4503  ;;  %v6110_v33 = vpop.xlane.xlu0 %2122  ;;  %4519 = vpow2.f32 %v2628_v36  ;;  %v2473_v61 = vsub.f32 0.0, %v2345_v18 }
 0x29c   :  { %v4506_v31 = vpop.eup %4505  ;;  %v2854_v21 = vadd.f32 1.0, %v4504_v5  ;;  %4521 = vpow2.f32 %v2630_v16  ;;  %v6126_v5 = vadd.f32 %v5872_v41, %v6016_v57 }
 0x29d   :  { %v4508_v8 = vpop.eup %4507  ;;  %v6122_v29 = vpop.xlane.xlu1 %2124  ;;  %v2855_v30 = vadd.f32 1.0, %v4506_v31  ;;  %2242 = vadd.xlane.f32.xlu1 %v6011_v11  ;;  %v2626_v62 = vmul.f32 1.442695, %v2473_v61  ;;  %v1898_v61 = vmax.f32 %v1708_v13, 0.0  ;;  %v2638_v13 = vmul.f32 1.442695, %v2479_v12 }
 0x29e   :  { %v4510_v58 = vpop.eup %4509  ;;  %4523 = vrcp.f32 %v2854_v21  ;;  %v6134_v36 = vpop.f32.mrb[108].mxu1  ;;  %v3344_v21 = vrot.slane %v6100_v15, %v5914_v55  ;;  %v3221_v50 = vrot.slane %v4508_v8, %v5909_v40  ;;  %v6193_v12 = vadd.f32 %v5872_v41, %v6079_v2 }
 0x29f   :  { %v4512_v52 = vpop.eup %4511  ;;  %v2852_v1 = vadd.f32 1.0, %v4510_v58  ;;  %v6136_v16 = vpop.xlane.xlu0 %2118  ;;  %4525 = vpow2.f32 %v2624_v17  ;;  %v2478_v58 = vsub.f32 0.0, %v2350_v3  ;;  %v1892_v2 = vmax.f32 %v6117_v14, 0.0 }
 0x2a0   :  { %v3334_v57 = vrot.slane %v4512_v52, %v5935_v34  ;;  %v6142_v35 = vpop.f32.mrb[109].mxu1  ;;  %v4514_v31 = vpop.eup %4513 }
 0x2a1   :  { %4527 = vrcp.f32 %v2852_v1  ;;  %v6147_v22 = vpop.f32.mrb[110].mxu1  ;;  %v6149_v52 = vpop.xlane.xlu1 %2120  ;;  %v2853_v18 = vadd.f32 1.0, %v4514_v31  ;;  %v2636_v8 = vmul.f32 1.442695, %v2478_v58  ;;  %2238 = vadd.xlane.f32.xlu1 %v6038_v10 }
 0x2a2   :  { %v4516_v17 = vpop.eup %4515  ;;  %v3335_v11 = vsel %vm3227_vm1, %v3334_v57, %v3330_v9  ;;  %v6152_v43 = vpop.f32.mrb[111].mxu1  ;;  %4529 = vrcp.f32 %v2855_v30  ;;  %v6163_v9 = vadd.f32 %v5872_v41, %v6023_v23  ;;  %v2348_v30 = vadd.f32 %v5793_v6, %v6081_v38 }
 0x2a3   :  { %v3340_v32 = vsel %vm3234_vm2, %v3339_v0, %v3335_v11  ;;  %v3226_v15 = vrot.slane %v4516_v17, %v5935_v34  ;;  %v6156_v1 = vpop.xlane.xlu0 %2130  ;;  %4531 = vrcp.f32 %v2853_v18  ;;  %v7071_v11 = vmax.f32 %v6058_v28, 0.0 }
 0x2a4   :  { %v6159_v3 = vsel %vm3241_vm3, %v3344_v21, %v3340_v32  ;;  %v4518_v57 = vpop.eup %4517  ;;  %4533 = vpow2.f32 %v2626_v62  ;;  %v1713_v32 = vadd.f32 %v5872_v41, %v6089_v19  ;;  %v6179_v62 = vadd.f32 %v5872_v41, %v6040_v39 }
 0x2a5   :  { %v3228_v0 = vsel %vm3227_vm1, %v3226_v15, %v3221_v50  ;;  %v6171_v24 = vpop.xlane.xlu1 %2132  ;;  %v3240_v23 = vrot.slane %v4518_v57, %v5914_v55  ;;  %4535 = vpow2.f32 %v2636_v8  ;;  %v4520_v10 = vpop.eup %4519  ;;  %v2476_v38 = vsub.f32 0.0, %v2348_v30  ;;  %2240 = vadd.xlane.f32.xlu1 %v6053_v45 }
 0x2a6   :  { %v3235_v31 = vsel %vm3234_vm2, %v3233_v4, %v3228_v0  ;;  %v1899_v50 = vmax.f32 %v1713_v32, 0.0  ;;  %v6181_v58 = vpop.f32.mrb[112].mxu1  ;;  %v4522_v17 = vpop.eup %4521  ;;  %v2028_v18 = vmul.f32 %v5878_v44, %v7071_v11  ;;  %v2033_v39 = vmul.f32 %v5878_v44, %v1898_v61 }
 0x2a7   :  { %v6183_v19 = vpop.xlane.xlu0 %2126  ;;  %v6186_v4 = vsel %vm3241_vm3, %v3240_v23, %v3235_v31  ;;  %v6197_v15 = vpop.f32.mrb[113].mxu1  ;;  %v7072_v57 = vmax.f32 %v6076_v54, 0.0  ;;  %v7073_v28 = vmax.f32 %v6087_v42, 0.0  ;;  %v2632_v32 = vmul.f32 1.442695, %v2476_v38 }
 0x2a8   :  { %7070 = vst [vmem:[#allocation22_spill] sm:$0xff] %v6186_v4  ;;  %v4524_v8 = vpop.eup %4523  ;;  %v6210_v61 = vpop.f32.mrb[114].mxu1  ;;  %v1897_v23 = vmax.f32 %v6126_v5, 0.0  ;;  %v1895_v54 = vmax.f32 %v6163_v9, 0.0  ;;  %4537 = vpow2.f32 %v2638_v13  ;;  %v2034_v11 = vmul.f32 %v5878_v44, %v1899_v50  ;;  %2268 = vadd.xlane.f32.xlu0 %v2033_v39 }
 0x2a9   :  { %v6202_v0 = vmul.f32 %v5878_v44, %v7072_v57  ;;  %v6207_v30 = vmul.f32 %v5878_v44, %v7073_v28  ;;  %v6212_v45 = vpop.xlane.xlu1 %2128  ;;  %v4526_v31 = vpop.eup %4525  ;;  %v2858_v28 = vadd.f32 1.0, %v4520_v10  ;;  %v1896_v38 = vmax.f32 %v6179_v62, 0.0  ;;  %2246 = vadd.xlane.f32.xlu1 %v6092_v56 }
 0x2aa   :  { %v6217_v42 = vpop.f32.mrb[115].mxu1  ;;  %v2856_v14 = vadd.f32 1.0, %v4526_v31  ;;  %4539 = vpow2.f32 %v2632_v32  ;;  %v1901_v5 = vmax.f32 %v6193_v12, 0.0  ;;  %v2349_v9 = vadd.f32 %v5793_v6, %v6098_v48 }
 0x2ab   :  { %v4528_v57 = vpop.eup %4527  ;;  %v6220_v21 = vpop.xlane.xlu0 %2138  ;;  %v1716_v13 = vadd.f32 %v5872_v41, %v6107_v7  ;;  %v3359_v10 = vrot.slane %v4524_v8, %v5805_v20  ;;  %v2859_v39 = vadd.f32 1.0, %v4522_v17  ;;  %v2354_v62 = vadd.f32 %v5793_v6, %v6110_v33 }
 0x2ac   :  { %v3349_v63 = vrot.slane %v4528_v57, %v5813_v27  ;;  %v4530_v50 = vpop.eup %4529  ;;  %4541 = vrcp.f32 %v2856_v14  ;;  %v2477_v48 = vsub.f32 0.0, %v2349_v9  ;;  %v2355_v7 = vadd.f32 %v5793_v6, %v6122_v29  ;;  %2270 = vadd.xlane.f32.xlu0 %v2034_v11 }
 0x2ad   :  { %v6232_v32 = vpop.xlane.xlu1 %2140  ;;  %v4532_v31 = vpop.eup %4531  ;;  %v1900_v57 = vmax.f32 %v1716_v13, 0.0  ;;  %4543 = vrcp.f32 %v2858_v28  ;;  %v2482_v17 = vsub.f32 0.0, %v2354_v62  ;;  %v2352_v33 = vadd.f32 %v5793_v6, %v6136_v16  ;;  %2258 = vadd.xlane.f32.xlu1 %v2028_v18 }
 0x2ae   :  { %v3350_v12 = vsel %vm3248_vm4, %v3349_v63, %v6159_v3  ;;  %v4534_v56 = vpop.eup %4533  ;;  %v3354_v8 = vrot.slane %v4532_v31, %v5829_v46  ;;  %v6241_v14 = vpop.f32.mrb[116].mxu1  ;;  %v3364_v63 = vrot.slane %v4530_v50, %v5810_v25  ;;  %v2483_v29 = vsub.f32 0.0, %v2355_v7 }
 0x2af   :  { %v6243_v4 = vpop.xlane.xlu0 %2134  ;;  %v4536_v27 = vpop.eup %4535  ;;  %v2857_v3 = vadd.f32 1.0, %v4534_v56  ;;  %v2035_v9 = vmul.f32 %v5878_v44, %v1900_v57  ;;  %4545 = vrcp.f32 %v2859_v39  ;;  %v2634_v16 = vmul.f32 1.442695, %v2477_v48 }
 0x2b0   :  { %v6247_v11 = vpop.f32.mrb[117].mxu1  ;;  %v3355_v28 = vsel %vm3255_vm5, %v3354_v8, %v3350_v12  ;;  %v2862_v13 = vadd.f32 1.0, %v4536_v27  ;;  %v6257_v50 = vadd.f32 %v5872_v41, %v6096_v53  ;;  %v2644_v18 = vmul.f32 1.442695, %v2482_v17 }
 0x2b1   :  { %v6250_v62 = vpop.f32.mrb[118].mxu1  ;;  %v6252_v31 = vpop.xlane.xlu1 %2136  ;;  %v3360_v46 = vsel %vm3262_vm6, %v3359_v10, %v3355_v28  ;;  %4547 = vrcp.f32 %v2857_v3  ;;  %2272 = vadd.xlane.f32.xlu0 %v2035_v9  ;;  %v2027_v12 = vmul.f32 %v5878_v44, %v1892_v2  ;;  %v2646_v39 = vmul.f32 1.442695, %v2483_v29  ;;  %2254 = vadd.xlane.f32.xlu1 %v6202_v0 }
 0x2b2   :  { %v6259_v57 = vpop.f32.mrb[119].mxu1  ;;  %v3365_v27 = vsel %vm3269_vm7, %v3364_v63, %v3360_v46  ;;  %v2480_v48 = vsub.f32 0.0, %v2352_v33  ;;  %v4538_v56 = vpop.eup %4537  ;;  %v6266_v10 = vmul.f32 %v5878_v44, %v1897_v23  ;;  %v6269_v8 = vmul.f32 %v5878_v44, %v1895_v54 }
 0x2b3   :  { %v6263_v7 = vpop.xlane.xlu0 %2146  ;;  %4549 = vrcp.f32 %v2862_v13  ;;  %v6273_v53 = vadd.f32 %v5872_v41, %v6134_v36  ;;  %v6277_v46 = vmul.f32 %v5878_v44, %v1896_v38  ;;  %v2353_v23 = vadd.f32 %v5793_v6, %v6149_v52 }
 0x2b4   :  { %v4540_v2 = vpop.eup %4539  ;;  %4551 = vpow2.f32 %v2634_v16  ;;  %v2640_v17 = vmul.f32 1.442695, %v2480_v48  ;;  %v6284_v54 = vmul.f32 %v5878_v44, %v1901_v5  ;;  %v1732_v3 = vadd.f32 %v5872_v41, %v6152_v43 }
 0x2b5   :  { %v6281_v33 = vpop.xlane.xlu1 %2148  ;;  %v2860_v63 = vadd.f32 1.0, %v4540_v2  ;;  %4553 = vpow2.f32 %v2644_v18  ;;  %v2481_v38 = vsub.f32 0.0, %v2353_v23  ;;  %v2358_v52 = vadd.f32 %v5793_v6, %v6156_v1  ;;  %v6291_v9 = vpop.f32.mrb[120].mxu1  ;;  %2260 = vadd.xlane.f32.xlu1 %v6207_v30 }
 0x2b6   :  { %v4542_v0 = vpop.eup %4541  ;;  %4555 = vpow2.f32 %v2646_v39  ;;  %v2863_v28 = vadd.f32 1.0, %v4538_v56  ;;  %v1905_v13 = vmax.f32 %v6273_v53, 0.0  ;;  %v6298_v16 = vpop.f32.mrb[121].mxu1  ;;  %v1904_v39 = vmax.f32 %v1732_v3, 0.0 }
 0x2b7   :  { %v6293_v29 = vpop.xlane.xlu0 %2142  ;;  %v3369_v5 = vrot.slane %v4542_v0, %v5840_v59  ;;  %4557 = vrcp.f32 %v2860_v63  ;;  %v4544_v18 = vpop.eup %4543  ;;  %v2642_v43 = vmul.f32 1.442695, %v2481_v38  ;;  %v2486_v1 = vsub.f32 0.0, %v2358_v52 }
 0x2b8   :  { %4559 = vpow2.f32 %v2640_v17  ;;  %v6300_v48 = vpop.f32.mrb[122].mxu1  ;;  %v2359_v56 = vadd.f32 %v5793_v6, %v6171_v24  ;;  %v1753_v53 = vadd.f32 %v5872_v41, %v6181_v58  ;;  %v2356_v30 = vadd.f32 %v5793_v6, %v6183_v19 }
 0x2b9   :  { %v6302_v2 = vpop.xlane.xlu1 %2144  ;;  %v3370_v23 = vsel %vm7051_vm8, %v3369_v5, %v3365_v27  ;;  %v6311_v63 = vpop.f32.mrb[123].mxu1  ;;  %v1729_v0 = vadd.f32 %v5872_v41, %v6142_v35  ;;  %4561 = vpow2.f32 %v2642_v43  ;;  %v2039_v38 = vmul.f32 %v5878_v44, %v1904_v39  ;;  %2256 = vadd.xlane.f32.xlu1 %v2027_v12  ;;  %v6336_v43 = vld [vmem:[%s7028_s5] ss:$0 sm:$0xff] }
 0x2ba   :  { %v4546_v17 = vpop.eup %4545  ;;  %v2652_v3 = vmul.f32 1.442695, %v2486_v1  ;;  %4563 = vrcp.f32 %v2863_v28  ;;  %v2487_v24 = vsub.f32 0.0, %v2359_v56  ;;  %v1909_v58 = vmax.f32 %v1753_v53, 0.0  ;;  %v6329_v28 = vld [vmem:[%s7027_s4] ss:$0 sm:$0xff] }
 0x2bb   :  { %v6316_v27 = vpop.xlane.xlu0 %2154  ;;  %v4548_v52 = vpop.eup %4547  ;;  %v2484_v5 = vsub.f32 0.0, %v2356_v30  ;;  %v3379_v19 = vrot.slane %v4544_v18, %v5832_v47  ;;  %v2357_v41 = vadd.f32 %v5793_v6, %v6212_v45  ;;  %2280 = vadd.xlane.f32.xlu0 %v2039_v38  ;;  %v1740_v12 = vadd.f32 %v6329_v28, %v6147_v22  ;;  %s4973_s4 = smov [#allocation3]  }
 0x2bc   :  { %v3374_v36 = vrot.slane %v4548_v52, %v5843_v60  ;;  %4565 = vpow2.f32 %v2652_v3  ;;  %v2654_v18 = vmul.f32 1.442695, %v2487_v24  ;;  %v2044_v45 = vmul.f32 %v6336_v43, %v1909_v58  ;;  %s3902_s5 = sshll.u32 %s4973_s4, 4  ;;  %s3903_s5 = int_to_ptr.vmem [resolvable:$true] %s3902_s5 }
 0x2bd   :  { %v6322_v44 = vpop.xlane.xlu1 %2156  ;;  %v6324_v35 = vpop.eup %4549  ;;  %v2648_v39 = vmul.f32 1.442695, %v2484_v5  ;;  %v3384_v56 = vrot.slane %v4546_v17, %v5835_v49  ;;  %v1903_v30 = vmax.f32 %v1729_v0, 0.0  ;;  %v1745_v38 = vadd.f32 %v6329_v28, %v6197_v15  ;;  %2266 = vadd.xlane.f32.xlu1 %v6266_v10  ;;  %s4948_s11 = scalar_lea.vmem %s3903_s5, 128  ;;  %p4953_p1 = scmp.lt.s32.totalorder %s3903_s5, %s3903_s5 }
 0x2be   :  { %7074 = vst [vmem:[#allocation23_spill] sm:$0xff] %v6324_v35  ;;  %v4552_v1 = vpop.eup %4551  ;;  %v3375_v53 = vsel %vm3283_vm9, %v3374_v36, %v3370_v23  ;;  %4567 = vpow2.f32 %v2654_v18  ;;  %v2485_v35 = vsub.f32 0.0, %v2357_v41  ;;  %v7075_v17 = vmax.f32 %v6257_v50, 0.0  ;;  %p4949_p0 = scmp.ne.s32.totalorder %s3903_s5, %s4948_s11  ;;  %p4954_p2 = scmp.lt.s32.totalorder %s4948_s11, %s4948_s11 }
 0x2bf   :  { %v6343_v3 = vpop.xlane.xlu0 %2150  ;;  %v4554_v22 = vpop.eup %4553  ;;  %v3380_v52 = vsel %vm3290_vm10, %v3379_v19, %v3375_v53  ;;  %v2861_v24 = vadd.f32 1.0, %v4552_v1  ;;  %4569 = vpow2.f32 %v2648_v39  ;;  %2290 = vadd.xlane.f32.xlu0 %v2044_v45  ;;  %v6356_v19 = vmul.f32 %v6336_v43, %v1905_v13 }
 0x2c0   :  { %v4556_v58 = vpop.eup %4555  ;;  %v3385_v5 = vsel %vm3297_vm11, %v3384_v56, %v3380_v52  ;;  %v6351_v36 = vmul.f32 %v6336_v43, %v7075_v17  ;;  %v2866_v23 = vadd.f32 1.0, %v4554_v22  ;;  %v1906_v41 = vmax.f32 %v1740_v12, 0.0  ;;  %p4955_p3 = por %p4954_p2, %p4953_p1 }
 0x2c1   :  { %v6353_v15 = vpop.xlane.xlu1 %2152  ;;  %v4558_v0 = vpop.eup %4557  ;;  %4571 = vrcp.f32 %v2861_v24  ;;  %v2650_v10 = vmul.f32 1.442695, %v2485_v35  ;;  %v2867_v56 = vadd.f32 1.0, %v4556_v58  ;;  %v2362_v50 = vadd.f32 %v5793_v6, %v6220_v21  ;;  %2262 = vadd.xlane.f32.xlu1 %v6269_v8 }
 0x2c2   :  { %v4560_v18 = vpop.eup %4559  ;;  %v3389_v1 = vrot.slane %v4558_v0, %v5866_v37  ;;  %v2363_v39 = vadd.f32 %v5793_v6, %v6232_v32  ;;  %4573 = vrcp.f32 %v2866_v23  ;;  %v6366_v22 = vmul.f32 %v6336_v43, %v1903_v30  ;;  %p4956_p4 = pnand %p4955_p3, %p4949_p0 }
 0x2c3   :  { %v6363_v45 = vpop.xlane.xlu0 %2162  ;;  %v2864_v53 = vadd.f32 1.0, %v4560_v18  ;;  %v1907_v13 = vmax.f32 %v1745_v38, 0.0  ;;  %v4562_v35 = vpop.eup %4561  ;;  %4575 = vpow2.f32 %v2650_v10  ;;  %v2490_v52 = vsub.f32 0.0, %v2362_v50 }
 0x2c4   :  { %v3390_v12 = vsel %vm3304_vm12, %v3389_v1, %v3385_v5  ;;  %v2491_v24 = vsub.f32 0.0, %v2363_v39  ;;  %v6372_v58 = vpop.eup %4563  ;;  %v2865_v32 = vadd.f32 1.0, %v4562_v35  ;;  %v1756_v30 = vadd.f32 %v6329_v28, %v6210_v61 }
 0x2c5   :  { %v6370_v21 = vpop.xlane.xlu1 %2164  ;;  %7076 = vst [vmem:[#allocation24_spill] sm:$0xff] %v6372_v58  ;;  %4577 = vrcp.f32 %v2864_v53  ;;  %v1748_v38 = vadd.f32 %v6329_v28, %v6217_v42  ;;  %v2660_v17 = vmul.f32 1.442695, %v2490_v52  ;;  %v2360_v23 = vadd.f32 %v5793_v6, %v6243_v4  ;;  %2264 = vadd.xlane.f32.xlu1 %v6277_v46 }
 0x2c6   :  { %v4566_v8 = vpop.eup %4565  ;;  %4579 = vrcp.f32 %v2867_v56  ;;  %v2662_v5 = vmul.f32 1.442695, %v2491_v24  ;;  %v6383_v10 = vmul.f32 %v6336_v43, %v1906_v41  ;;  %v1769_v61 = vadd.f32 %v6329_v28, %v6241_v14 }
 0x2c7   :  { %v6380_v0 = vpop.xlane.xlu0 %2158  ;;  %4581 = vrcp.f32 %v2865_v32  ;;  %v2870_v18 = vadd.f32 1.0, %v4566_v8  ;;  %v6389_v42 = vmul.f32 %v6336_v43, %v1907_v13  ;;  %v2488_v1 = vsub.f32 0.0, %v2360_v23 }
 0x2c8   :  { %4583 = vpow2.f32 %v2660_v17  ;;  %v2361_v4 = vadd.f32 %v5793_v6, %v6252_v31  ;;  %v4568_v50 = vpop.eup %4567  ;;  %v1910_v41 = vmax.f32 %v1756_v30, 0.0  ;;  %v1764_v39 = vadd.f32 %v6329_v28, %v6259_v57 }
 0x2c9   :  { %v6393_v56 = vpop.xlane.xlu1 %2160  ;;  %4585 = vrcp.f32 %v2870_v18  ;;  %v2366_v14 = vadd.f32 %v5793_v6, %v6263_v7  ;;  %v4570_v46 = vpop.eup %4569  ;;  %v2871_v53 = vadd.f32 1.0, %v4568_v50  ;;  %v1908_v13 = vmax.f32 %v1748_v38, 0.0  ;;  %2274 = vadd.xlane.f32.xlu1 %v6284_v54 }
 0x2ca   :  { %4587 = vpow2.f32 %v2662_v5  ;;  %v2656_v35 = vmul.f32 1.442695, %v2488_v1  ;;  %v2868_v31 = vadd.f32 1.0, %v4570_v46  ;;  %v1913_v32 = vmax.f32 %v1769_v61, 0.0 }
 0x2cb   :  { %v6399_v52 = vpop.xlane.xlu0 %2170  ;;  %v4572_v24 = vpop.eup %4571  ;;  %v2489_v8 = vsub.f32 0.0, %v2361_v4  ;;  %v1912_v17 = vmax.f32 %v1764_v39, 0.0  ;;  %4589 = vrcp.f32 %v2871_v53  ;;  %v2494_v57 = vsub.f32 0.0, %v2366_v14 }
 0x2cc   :  { %v3394_v30 = vrot.slane %v4572_v24, %v5890_v51  ;;  %v2367_v7 = vadd.f32 %v5793_v6, %v6281_v33  ;;  %v4574_v38 = vpop.eup %4573  ;;  %4591 = vrcp.f32 %v2868_v31  ;;  %v6409_v5 = vadd.f32 %v6329_v28, %v6247_v11 }
 0x2cd   :  { %v6405_v23 = vpop.xlane.xlu1 %2172  ;;  %v2658_v18 = vmul.f32 1.442695, %v2489_v8  ;;  %v2047_v61 = vmul.f32 %v6336_v43, %v1912_v17  ;;  %v4576_v1 = vpop.eup %4575  ;;  %4593 = vpow2.f32 %v2656_v35  ;;  %v6417_v4 = vadd.f32 %v6329_v28, %v6250_v62  ;;  %2276 = vadd.xlane.f32.xlu1 %v6351_v36 }
 0x2ce   :  { %v6413_v54 = vsel %vm3311_vm13, %v3394_v30, %v3390_v12  ;;  %v2668_v33 = vmul.f32 1.442695, %v2494_v57  ;;  %v2869_v14 = vadd.f32 1.0, %v4576_v1  ;;  %v2495_v11 = vsub.f32 0.0, %v2367_v7 }
 0x2cf   :  { %7077 = vst [vmem:[#allocation25_spill] sm:$0xff] %v6413_v54  ;;  %v6419_v50 = vpop.xlane.xlu0 %2166  ;;  %v4578_v39 = vpop.eup %4577  ;;  %4595 = vpow2.f32 %v2658_v18  ;;  %v1785_v46 = vadd.f32 %v6329_v28, %v6291_v9  ;;  %2296 = vadd.xlane.f32.xlu0 %v2047_v61  ;;  %v6425_v53 = vmul.f32 %v6336_v43, %v1910_v41  ;;  %v6428_v62 = vmul.f32 %v6336_v43, %v1908_v13 }
 0x2d0   :  { %v4580_v12 = vpop.eup %4579  ;;  %4597 = vpow2.f32 %v2668_v33  ;;  %v2364_v35 = vadd.f32 %v5793_v6, %v6293_v29  ;;  %v6435_v9 = vmul.f32 %v6336_v43, %v1913_v32  ;;  %v2670_v8 = vmul.f32 1.442695, %v2495_v11 }
 0x2d1   :  { %v6432_v24 = vpop.xlane.xlu1 %2168  ;;  %v4582_v31 = vpop.eup %4581  ;;  %4599 = vrcp.f32 %v2869_v14  ;;  %v1917_v36 = vmax.f32 %v1785_v46, 0.0  ;;  %v3409_v41 = vrot.slane %v4578_v39, %v5909_v40  ;;  %v2365_v57 = vadd.f32 %v5793_v6, %v6302_v2  ;;  %2282 = vadd.xlane.f32.xlu1 %v6356_v19 }
 0x2d2   :  { %v4584_v17 = vpop.eup %4583  ;;  %v3413_v30 = vrot.slane %v4582_v31, %v5935_v34  ;;  %v2492_v13 = vsub.f32 0.0, %v2364_v35  ;;  %v3418_v18 = vrot.slane %v4574_v38, %v5900_v26  ;;  %v3423_v39 = vrot.slane %v4580_v12, %v5914_v55 }
 0x2d3   :  { %v6441_v7 = vpop.xlane.xlu0 %2178  ;;  %v6443_v29 = vpop.eup %4585  ;;  %v2874_v61 = vadd.f32 1.0, %v4584_v17  ;;  %v6453_v2 = vadd.f32 %v6329_v28, %v6298_v16  ;;  %4601 = vpow2.f32 %v2670_v8  ;;  %v2052_v31 = vmul.f32 %v6336_v43, %v1917_v36 }
 0x2d4   :  { %v4588_v33 = vpop.eup %4587  ;;  %v3414_v14 = vsel %vm3227_vm1, %v3413_v30, %v3409_v41  ;;  %v2664_v11 = vmul.f32 1.442695, %v2492_v13  ;;  %v2493_v12 = vsub.f32 0.0, %v2365_v57  ;;  %v1780_v41 = vadd.f32 %v6329_v28, %v6311_v63  ;;  %v7078_v57 = vld [vmem:[#allocation6_spill] sm:$0xff] }
 0x2d5   :  { %v6455_v46 = vpop.xlane.xlu1 %2180  ;;  %v3419_v38 = vsel %vm3234_vm2, %v3418_v18, %v3414_v14  ;;  %v2875_v35 = vadd.f32 1.0, %v4588_v33  ;;  %v4590_v17 = vpop.eup %4589  ;;  %v3438_v13 = vrot.slane %v6443_v29, %v5805_v20  ;;  %v2370_v8 = vadd.f32 %v5793_v6, %v6316_v27  ;;  %2278 = vadd.xlane.f32.xlu1 %v6366_v22 }
 0x2d6   :  { %v3424_v19 = vsel %vm3241_vm3, %v3423_v39, %v3419_v38  ;;  %4603 = vpow2.f32 %v2664_v11  ;;  %v4592_v16 = vpop.eup %4591  ;;  %v2371_v36 = vadd.f32 %v5793_v6, %v6322_v44  ;;  %v2666_v39 = vmul.f32 1.442695, %v2493_v12 }
 0x2d7   :  { %v6462_v30 = vpop.xlane.xlu0 %2174  ;;  %4605 = vrcp.f32 %v2874_v61  ;;  %v4594_v18 = vpop.eup %4593  ;;  %v3428_v33 = vrot.slane %v4592_v16, %v7078_v57  ;;  %v1916_v63 = vmax.f32 %v1780_v41, 0.0  ;;  %v2368_v14 = vadd.f32 %v5793_v6, %v6343_v3 }
 0x2d8   :  { %v2872_v61 = vadd.f32 1.0, %v4594_v18  ;;  %v2498_v38 = vsub.f32 0.0, %v2370_v8  ;;  %v2499_v1 = vsub.f32 0.0, %v2371_v36  ;;  %v2369_v27 = vadd.f32 %v5793_v6, %v6353_v15  ;;  %v7079_v8 = vld [vmem:[#allocation7_spill] sm:$0xff] }
 0x2d9   :  { %v6474_v11 = vpop.xlane.xlu1 %2176  ;;  %v4596_v29 = vpop.eup %4595  ;;  %v3429_v22 = vsel %vm3248_vm4, %v3428_v33, %v3424_v19  ;;  %4607 = vrcp.f32 %v2875_v35  ;;  %v2051_v12 = vmul.f32 %v6336_v43, %v1916_v63  ;;  %2284 = vadd.xlane.f32.xlu1 %v6383_v10  ;;  %v2496_v15 = vsub.f32 0.0, %v2368_v14 }
 0x2da   :  { %v4598_v44 = vpop.eup %4597  ;;  %v2873_v32 = vadd.f32 1.0, %v4596_v29  ;;  %4609 = vrcp.f32 %v2872_v61  ;;  %v2676_v54 = vmul.f32 1.442695, %v2498_v38  ;;  %v2678_v58 = vmul.f32 1.442695, %v2499_v1 }
 0x2db   :  { %v6480_v41 = vpop.xlane.xlu0 %2186  ;;  %v4600_v16 = vpop.eup %4599  ;;  %v2878_v3 = vadd.f32 1.0, %v4598_v44  ;;  %v2497_v18 = vsub.f32 0.0, %v2369_v27  ;;  %2304 = vadd.xlane.f32.xlu0 %v2051_v12  ;;  %v2374_v35 = vadd.f32 %v5793_v6, %v6363_v45  ;;  %v2375_v33 = vadd.f32 %v5793_v6, %v6370_v21 }
 0x2dc   :  { %v3433_v36 = vrot.slane %v4600_v16, %v7079_v8  ;;  %4611 = vrcp.f32 %v2873_v32  ;;  %v2372_v1 = vadd.f32 %v5793_v6, %v6380_v0  ;;  %v3443_v10 = vrot.slane %v4590_v17, %v5810_v25 }
 0x2dd   :  { %v6484_v19 = vpop.xlane.xlu1 %2188  ;;  %4613 = vpow2.f32 %v2666_v39  ;;  %v2672_v32 = vmul.f32 1.442695, %v2496_v15  ;;  %v4602_v29 = vpop.eup %4601  ;;  %v2674_v61 = vmul.f32 1.442695, %v2497_v18  ;;  %v2502_v45 = vsub.f32 0.0, %v2374_v35  ;;  %2286 = vadd.xlane.f32.xlu1 %v6389_v42 }
 0x2de   :  { %v3434_v63 = vsel %vm3255_vm5, %v3433_v36, %v3429_v22  ;;  %4615 = vpow2.f32 %v2676_v54  ;;  %v6501_v0 = vadd.f32 %v6329_v28, %v6300_v48  ;;  %v2503_v54 = vsub.f32 0.0, %v2375_v33 }
 0x2df   :  { %v6494_v14 = vpop.xlane.xlu0 %2182  ;;  %v3439_v39 = vsel %vm3262_vm6, %v3438_v13, %v3434_v63  ;;  %4617 = vpow2.f32 %v2678_v58  ;;  %2306 = vadd.xlane.f32.xlu0 %v2052_v31  ;;  %v2684_v58 = vmul.f32 1.442695, %v2502_v45  ;;  %v2500_v13 = vsub.f32 0.0, %v2372_v1 }
 0x2e0   :  { %v4604_v21 = vpop.eup %4603  ;;  %v3444_v38 = vsel %vm3269_vm7, %v3443_v10, %v3439_v39  ;;  %4619 = vrcp.f32 %v2878_v3  ;;  %v2879_v22 = vadd.f32 1.0, %v4602_v29  ;;  %v2686_v42 = vmul.f32 1.442695, %v2503_v54 }
 0x2e1   :  { %v6503_v17 = vpop.xlane.xlu1 %2184  ;;  %v4606_v27 = vpop.eup %4605  ;;  %v2876_v44 = vadd.f32 1.0, %v4604_v21  ;;  %4621 = vpow2.f32 %v2672_v32  ;;  %v2373_v12 = vadd.f32 %v5793_v6, %v6393_v56  ;;  %v2680_v48 = vmul.f32 1.442695, %v2500_v13  ;;  %2292 = vadd.xlane.f32.xlu1 %v6425_v53 }
 0x2e2   :  { %4623 = vpow2.f32 %v2674_v61  ;;  %v2378_v28 = vadd.f32 %v5793_v6, %v6399_v52  ;;  %v2379_v31 = vadd.f32 %v5793_v6, %v6405_v23  ;;  %v3458_v36 = vrot.slane %v4606_v27, %v5832_v47 }
 0x2e3   :  { %v6507_v16 = vpop.xlane.xlu0 %2194  ;;  %4625 = vrcp.f32 %v2876_v44  ;;  %v4608_v3 = vpop.eup %4607  ;;  %v2501_v15 = vsub.f32 0.0, %v2373_v12  ;;  %v2376_v56 = vadd.f32 %v5793_v6, %v6419_v50  ;;  %v2377_v52 = vadd.f32 %v5793_v6, %v6432_v24 }
 0x2e4   :  { %4627 = vpow2.f32 %v2684_v58  ;;  %v4610_v35 = vpop.eup %4609  ;;  %v2506_v33 = vsub.f32 0.0, %v2378_v28  ;;  %v2507_v1 = vsub.f32 0.0, %v2379_v31  ;;  %v3463_v45 = vrot.slane %v4608_v3, %v5835_v49  ;;  %v7080_v28 = vld [vmem:[#allocation22_spill] sm:$0xff]  ;;  %v7081_v31 = vld [vmem:[#allocation12_spill] sm:$0xff] }
 0x2e5   :  { %v6517_v18 = vpop.xlane.xlu1 %2196  ;;  %4629 = vpow2.f32 %v2686_v42  ;;  %v3448_v53 = vrot.slane %v4610_v35, %v5840_v59  ;;  %v2682_v10 = vmul.f32 1.442695, %v2501_v15  ;;  %v2504_v63 = vsub.f32 0.0, %v2376_v56  ;;  %2288 = vadd.xlane.f32.xlu1 %v6428_v62 }
 0x2e6   :  { %v4612_v23 = vpop.eup %4611  ;;  %4631 = vpow2.f32 %v2680_v48  ;;  %v2692_v50 = vmul.f32 1.442695, %v2506_v33  ;;  %v2694_v39 = vmul.f32 1.442695, %v2507_v1  ;;  %v7082_v3 = vrot.slane %v7081_v31, %v7078_v57 }
 0x2e7   :  { %v4614_v32 = vpop.eup %4613  ;;  %v3453_v29 = vrot.slane %v4612_v23, %v5843_v60  ;;  %4633 = vrcp.f32 %v2879_v22  ;;  %v3449_v21 = vsel %vm7051_vm8, %v3448_v53, %v3444_v38  ;;  %v2688_v24 = vmul.f32 1.442695, %v2504_v63  ;;  %v6526_v54 = vpop.xlane.xlu0 %2190 }
 0x2e8   :  { %v4616_v61 = vpop.eup %4615  ;;  %4635 = vpow2.f32 %v2682_v10  ;;  %v2505_v22 = vsub.f32 0.0, %v2377_v52  ;;  %v2382_v38 = vadd.f32 %v5793_v6, %v6441_v7  ;;  %v6541_v15 = vsel %vm3248_vm4, %v7082_v3, %v7080_v28 }
 0x2e9   :  { %v6528_v27 = vpop.xlane.xlu1 %2192  ;;  %v4618_v44 = vpop.eup %4617  ;;  %v3454_v58 = vsel %vm3283_vm9, %v3453_v29, %v3449_v21  ;;  %v2882_v13 = vadd.f32 1.0, %v4616_v61  ;;  %4637 = vpow2.f32 %v2692_v50  ;;  %v1915_v35 = vmax.f32 %v6453_v2, 0.0  ;;  %2298 = vadd.xlane.f32.xlu1 %v6435_v9 }
 0x2ea   :  { %v6531_v42 = vpop.eup %4619  ;;  %v3459_v62 = vsel %vm3290_vm10, %v3458_v36, %v3454_v58  ;;  %v2883_v12 = vadd.f32 1.0, %v4618_v44  ;;  %4639 = vpow2.f32 %v2694_v39  ;;  %v2690_v1 = vmul.f32 1.442695, %v2505_v22 }
 0x2eb   :  { %v4622_v48 = vpop.eup %4621  ;;  %v3464_v56 = vsel %vm3297_vm11, %v3463_v45, %v3459_v62  ;;  %4641 = vrcp.f32 %v2882_v13  ;;  %v2510_v7 = vsub.f32 0.0, %v2382_v38  ;;  %v7083_v53 = vmax.f32 %v6409_v5, 0.0  ;;  %v6558_v45 = vpop.xlane.xlu0 %2202 }
 0x2ec   :  { %v4624_v36 = vpop.eup %4623  ;;  %4643 = vrcp.f32 %v2883_v12  ;;  %v2880_v33 = vadd.f32 1.0, %v4622_v48  ;;  %v2380_v2 = vadd.f32 %v5793_v6, %v6462_v30  ;;  %v7084_v9 = vmax.f32 %v6417_v4, 0.0 }
 0x2ed   :  { %v6546_v52 = vpop.xlane.xlu1 %2204  ;;  %v4626_v23 = vpop.eup %4625  ;;  %v2046_v10 = vmul.f32 %v6336_v43, %v7083_v53  ;;  %v2881_v63 = vadd.f32 1.0, %v4624_v36  ;;  %4645 = vpow2.f32 %v2688_v24  ;;  %v1918_v61 = vmax.f32 %v6501_v0, 0.0 }
 0x2ee   :  { %v4628_v29 = vpop.eup %4627  ;;  %v2049_v50 = vmul.f32 %v6336_v43, %v7084_v9  ;;  %v3468_v39 = vrot.slane %v4626_v23, %v5866_v37  ;;  %4647 = vrcp.f32 %v2880_v33  ;;  %v2050_v21 = vmul.f32 %v6336_v43, %v1915_v35 }
 0x2ef   :  { %v4630_v5 = vpop.eup %4629  ;;  %v2877_v44 = vadd.f32 1.0, %v4614_v32  ;;  %4649 = vrcp.f32 %v2881_v63  ;;  %v2886_v24 = vadd.f32 1.0, %v4628_v29  ;;  %2294 = vadd.xlane.f32.xlu1 %v2046_v10  ;;  %v2700_v13 = vmul.f32 1.442695, %v2510_v7 }
 0x2f0   :  { %v4632_v30 = vpop.eup %4631  ;;  %v6562_v58 = vsel %vm3304_vm12, %v3468_v39, %v3464_v56  ;;  %v2887_v4 = vadd.f32 1.0, %v4630_v5  ;;  %4651 = vpow2.f32 %v2690_v1  ;;  %v6570_v12 = vadd.f32 %v5793_v6, %v6455_v46 }
 0x2f1   :  { %v6564_v22 = vpop.xlane.xlu1 %2200  ;;  %v6566_v0 = vpop.eup %4633  ;;  %4653 = vrcp.f32 %v2886_v24  ;;  %v2884_v62 = vadd.f32 1.0, %v4632_v30  ;;  %v2508_v32 = vsub.f32 0.0, %v2380_v2  ;;  %v6574_v48 = vadd.f32 %v5793_v6, %v6474_v11 }
 0x2f2   :  { %v4636_v38 = vpop.eup %4635  ;;  %4655 = vrcp.f32 %v2887_v4  ;;  %v2386_v28 = vadd.f32 %v5793_v6, %v6480_v41  ;;  %v2387_v31 = vadd.f32 %v5793_v6, %v6484_v19  ;;  %v2384_v46 = vadd.f32 %v5793_v6, %v6494_v14  ;;  %v6585_v41 = vpop.xlane.xlu0 %2198 }
 0x2f3   :  { %v4638_v3 = vpop.eup %4637  ;;  %4657 = vrcp.f32 %v2884_v62  ;;  %v2885_v56 = vadd.f32 1.0, %v4636_v38  ;;  %v2385_v35 = vadd.f32 %v5793_v6, %v6503_v17  ;;  %2300 = vadd.xlane.f32.xlu1 %v2049_v50  ;;  %v2053_v11 = vmul.f32 %v6336_v43, %v1918_v61 }
 0x2f4   :  { %v4640_v36 = vpop.eup %4639  ;;  %v2890_v33 = vadd.f32 1.0, %v4638_v3  ;;  %4659 = vpow2.f32 %v2700_v13  ;;  %v2514_v1 = vsub.f32 0.0, %v2386_v28  ;;  %v2696_v53 = vmul.f32 1.442695, %v2508_v32 }
 0x2f5   :  { %v6587_v7 = vpop.xlane.xlu1 %2208  ;;  %v4642_v19 = vpop.eup %4641  ;;  %4661 = vrcp.f32 %v2885_v56  ;;  %v2891_v23 = vadd.f32 1.0, %v4640_v36  ;;  %v2515_v10 = vsub.f32 0.0, %v2387_v31  ;;  %v2511_v17 = vsub.f32 0.0, %v6570_v12 }
 0x2f6   :  { %v4644_v14 = vpop.eup %4643  ;;  %4663 = vrcp.f32 %v2877_v44  ;;  %v2509_v63 = vsub.f32 0.0, %v6574_v48  ;;  %v2512_v2 = vsub.f32 0.0, %v2384_v46  ;;  %v3497_v29 = vrot.slane %v4642_v19, %v5900_v26  ;;  %v6604_v38 = vpop.xlane.xlu0 %2210 }
 0x2f7   :  { %v4646_v43 = vpop.eup %4645  ;;  %4665 = vrcp.f32 %v2890_v33  ;;  %v2708_v9 = vmul.f32 1.442695, %v2514_v1  ;;  %v2513_v50 = vsub.f32 0.0, %v2385_v35  ;;  %2302 = vadd.xlane.f32.xlu1 %v2050_v21  ;;  %v2390_v5 = vadd.f32 %v5793_v6, %v6507_v16 }
 0x2f8   :  { %v4648_v39 = vpop.eup %4647  ;;  %4667 = vrcp.f32 %v2891_v23  ;;  %v2888_v61 = vadd.f32 1.0, %v4646_v43  ;;  %v2391_v44 = vadd.f32 %v5793_v6, %v6517_v18  ;;  %v2710_v4 = vmul.f32 1.442695, %v2515_v10 }
 0x2f9   :  { %v6596_v24 = vpop.xlane.xlu1 %2220  ;;  %v4650_v30 = vpop.eup %4649  ;;  %4669 = vpow2.f32 %v2696_v53  ;;  %v2388_v13 = vadd.f32 %v5793_v6, %v6526_v54  ;;  %v2389_v21 = vadd.f32 %v5793_v6, %v6528_v27  ;;  %v3488_v12 = vrot.slane %v4648_v39, %v5909_v40 }
 0x2fa   :  { %v4652_v62 = vpop.eup %4651  ;;  %v3492_v32 = vrot.slane %v4650_v30, %v5935_v34  ;;  %4671 = vrcp.f32 %v2888_v61  ;;  %v2518_v16 = vsub.f32 0.0, %v2390_v5  ;;  %v2704_v28 = vmul.f32 1.442695, %v2512_v2  ;;  %v2207_v61 = vpop.xlane.xlu0 %2206 }
 0x2fb   :  { %v4654_v18 = vpop.eup %4653  ;;  %v2889_v48 = vadd.f32 1.0, %v4652_v62  ;;  %v2519_v31 = vsub.f32 0.0, %v2391_v44  ;;  %v2516_v3 = vsub.f32 0.0, %v2388_v13  ;;  %2308 = vadd.xlane.f32.xlu1 %v2053_v11  ;;  %v3502_v54 = vrot.slane %v4644_v14, %v5914_v55 }
 0x2fc   :  { %v4656_v56 = vpop.eup %4655  ;;  %v3493_v27 = vsel %vm3227_vm1, %v3492_v32, %v3488_v12  ;;  %4673 = vpow2.f32 %v2708_v9  ;;  %v2706_v46 = vmul.f32 1.442695, %v2513_v50  ;;  %v2702_v1 = vmul.f32 1.442695, %v2511_v17 }
 0x2fd   :  { %v6608_v35 = vpop.xlane.xlu1 %2216  ;;  %v4658_v36 = vpop.eup %4657  ;;  %v3498_v33 = vsel %vm3234_vm2, %v3497_v29, %v3493_v27  ;;  %4675 = vrcp.f32 %v2889_v48  ;;  %v2517_v19 = vsub.f32 0.0, %v2389_v21  ;;  %v2716_v10 = vmul.f32 1.442695, %v2518_v16  ;;  %v7088_v27 = vld [vmem:[#allocation18_spill] sm:$0xff] }
 0x2fe   :  { %v4660_v23 = vpop.eup %4659  ;;  %v3503_v53 = vsel %vm3241_vm3, %v3502_v54, %v3498_v33  ;;  %v3507_v11 = vrot.slane %v4658_v36, %v7078_v57  ;;  %4677 = vpow2.f32 %v2710_v4  ;;  %v2718_v2 = vmul.f32 1.442695, %v2519_v31  ;;  %v7087_v54 = vld [vmem:[#allocation8_spill] sm:$0xff] }
 0x2ff   :  { %v4662_v14 = vpop.eup %4661  ;;  %4679 = vpow2.f32 %v2704_v28  ;;  %v2712_v43 = vmul.f32 1.442695, %v2516_v3  ;;  %v2394_v9 = vadd.f32 %v5793_v6, %v6558_v45  ;;  %v2395_v39 = vadd.f32 %v5793_v6, %v6546_v52  ;;  %v7085_v52 = vld [vmem:[#allocation13_spill] sm:$0xff] }
 0x300   :  { %v6615_v50 = vpop.eup %4663  ;;  %v3508_v29 = vsel %vm3248_vm4, %v3507_v11, %v3503_v53  ;;  %v3512_v17 = vrot.slane %v4662_v14, %v7079_v8  ;;  %4681 = vpow2.f32 %v2706_v46  ;;  %v3517_v30 = vrot.slane %v4654_v18, %v5805_v20 }
 0x301   :  { %v6621_v5 = vpop.xlane.xlu1 %2226  ;;  %v4666_v44 = vpop.eup %4665  ;;  %v3522_v4 = vrot.slane %v4656_v56, %v5810_v25  ;;  %4683 = vpow2.f32 %v2702_v1  ;;  %v2698_v45 = vmul.f32 1.442695, %v2509_v63  ;;  %v2894_v62 = vadd.f32 1.0, %v4660_v23  ;;  %v7089_v1 = vld [vmem:[#allocation9_spill] sm:$0xff]  ;;  %v7090_v23 = vld [vmem:[#allocation19_spill] sm:$0xff] }
 0x302   :  { %v6625_v13 = vpop.eup %4667  ;;  %v3513_v21 = vsel %vm3255_vm5, %v3512_v17, %v3508_v29  ;;  %4685 = vpow2.f32 %v2716_v10  ;;  %v2522_v12 = vsub.f32 0.0, %v2394_v9  ;;  %v7086_v16 = vrot.slane %v7085_v52, %v7079_v8 }
 0x303   :  { %v4670_v32 = vpop.eup %4669  ;;  %v3518_v18 = vsel %vm3262_vm6, %v3517_v30, %v3513_v21  ;;  %4687 = vpow2.f32 %v2718_v2  ;;  %v2714_v28 = vmul.f32 1.442695, %v2517_v19  ;;  %v2523_v56 = vsub.f32 0.0, %v2395_v39  ;;  %v7091_v19 = vld [vmem:[#allocation10_spill] sm:$0xff]  ;;  %v6646_v2 = vpop.xlane.xlu0 %2212 }
 0x304   :  { %v3256_v48 = vsel %vm3255_vm5, %v7086_v16, %v6541_v15  ;;  %v4672_v31 = vpop.eup %4671  ;;  %v3523_v63 = vsel %vm3269_vm7, %v3522_v4, %v3518_v18  ;;  %v2892_v3 = vadd.f32 1.0, %v4670_v32  ;;  %4689 = vpow2.f32 %v2712_v43 }
 0x305   :  { %v3527_v36 = vrot.slane %v4672_v31, %v5840_v59  ;;  %4691 = vpow2.f32 %v2698_v45  ;;  %v2392_v33 = vadd.f32 %v5793_v6, %v6585_v41  ;;  %v7092_v11 = vrot.slane %v7091_v19, %v5805_v20  ;;  %v6648_v43 = vpop.xlane.xlu1 %2222 }
 0x306   :  { %v4674_v15 = vpop.eup %4673  ;;  %4693 = vrcp.f32 %v2894_v62  ;;  %v2724_v14 = vmul.f32 1.442695, %v2522_v12  ;;  %v2393_v41 = vadd.f32 %v5793_v6, %v6564_v22  ;;  %v3537_v30 = vrot.slane %v4666_v44, %v5832_v47 }
 0x307   :  { %v3263_v10 = vsel %vm3262_vm6, %v7092_v11, %v3256_v48  ;;  %v4676_v9 = vpop.eup %4675  ;;  %v3528_v29 = vsel %vm7051_vm8, %v3527_v36, %v3523_v63  ;;  %v2898_v17 = vadd.f32 1.0, %v4674_v15  ;;  %4695 = vpow2.f32 %v2714_v28  ;;  %v2219_v15 = vpop.xlane.xlu0 %2218 }
 0x308   :  { %v4678_v39 = vpop.eup %4677  ;;  %v3532_v4 = vrot.slane %v4676_v9, %v5843_v60  ;;  %4697 = vrcp.f32 %v2892_v3  ;;  %v2726_v45 = vmul.f32 1.442695, %v2523_v56  ;;  %v2520_v12 = vsub.f32 0.0, %v2392_v33  ;;  %v7093_v3 = vld [vmem:[#allocation20_spill] sm:$0xff]  ;;  %v7094_v56 = vld [vmem:[#allocation11_spill] sm:$0xff] }
 0x309   :  { %v4680_v21 = vpop.eup %4679  ;;  %4699 = vrcp.f32 %v2898_v17  ;;  %v2899_v62 = vadd.f32 1.0, %v4678_v39  ;;  %v2398_v32 = vadd.f32 %v5793_v6, %v6604_v38  ;;  %v2397_v22 = vadd.f32 %v5793_v6, %v6587_v7  ;;  %v6672_v19 = vpop.xlane.xlu1 %2228 }
 0x30a   :  { %v4682_v52 = vpop.eup %4681  ;;  %v3533_v16 = vsel %vm3283_vm9, %v3532_v4, %v3528_v29  ;;  %v2896_v48 = vadd.f32 1.0, %v4680_v21  ;;  %4701 = vpow2.f32 %v2724_v14  ;;  %v2521_v31 = vsub.f32 0.0, %v2393_v41 }
 0x30b   :  { %v6660_v44 = vpop.eup %4683  ;;  %v6663_v18 = vsel %vm3290_vm10, %v3537_v30, %v3533_v16  ;;  %4703 = vrcp.f32 %v2899_v62  ;;  %v2897_v28 = vadd.f32 1.0, %v4682_v52  ;;  %v7095_v36 = vrot.slane %v7094_v56, %v5810_v25  ;;  %v7096_v52 = vld [vmem:[#allocation21_spill] sm:$0xff] }
 0x30c   :  { %v4686_v63 = vpop.eup %4685  ;;  %4705 = vrcp.f32 %v2896_v48  ;;  %v2396_v7 = vadd.f32 %v5793_v6, %v2207_v61  ;;  %v2526_v9 = vsub.f32 0.0, %v2398_v32  ;;  %v2403_v29 = vadd.f32 %v5793_v6, %v6596_v24 }
 0x30d   :  { %v3270_v33 = vsel %vm3269_vm7, %v7095_v36, %v3263_v10  ;;  %v4688_v11 = vpop.eup %4687  ;;  %4707 = vrcp.f32 %v2897_v28  ;;  %v2902_v14 = vadd.f32 1.0, %v4686_v63  ;;  %v2720_v39 = vmul.f32 1.442695, %v2520_v12  ;;  %v7097_v28 = vld [vmem:[#allocation16_spill] sm:$0xff] }
 0x30e   :  { %v4690_v17 = vpop.eup %4689  ;;  %v2903_v41 = vadd.f32 1.0, %v4688_v11  ;;  %4709 = vpow2.f32 %v2726_v45  ;;  %v2525_v30 = vsub.f32 0.0, %v2397_v22  ;;  %v2722_v21 = vmul.f32 1.442695, %v2521_v31  ;;  %v6693_v11 = vpop.xlane.xlu1 %2224 }
 0x30f   :  { %v4692_v4 = vpop.eup %4691  ;;  %4711 = vrcp.f32 %v2902_v14  ;;  %v2900_v10 = vadd.f32 1.0, %v4690_v17  ;;  %v2401_v61 = vadd.f32 %v5793_v6, %v6608_v35  ;;  %v2524_v16 = vsub.f32 0.0, %v2396_v7  ;;  %v2215_v7 = vpop.xlane.xlu0 %2214 }
 0x310   :  { %v6678_v62 = vpop.eup %4693  ;;  %4713 = vrcp.f32 %v2903_v41  ;;  %v2531_v24 = vsub.f32 0.0, %v2403_v29  ;;  %v7098_v45 = vrot.slane %v7097_v28, %v5840_v59  ;;  %v2732_v22 = vmul.f32 1.442695, %v2526_v9  ;;  %v7099_v29 = vld [vmem:[#allocation23_spill] sm:$0xff] }
 0x311   :  { %v4696_v48 = vpop.eup %4695  ;;  %4715 = vrcp.f32 %v2900_v10  ;;  %v2402_v31 = vadd.f32 %v5793_v6, %v2219_v15  ;;  %v2730_v56 = vmul.f32 1.442695, %v2525_v30  ;;  %v2399_v36 = vadd.f32 %v5793_v6, %v6646_v2  ;;  %v7100_v15 = vld [vmem:[#allocation24_spill] sm:$0xff] }
 0x312   :  { %v6686_v12 = vsel %vm7051_vm8, %v7098_v45, %v3270_v33  ;;  %v6689_v35 = vpop.eup %4697  ;;  %v2901_v63 = vadd.f32 1.0, %v4696_v48  ;;  %4717 = vpow2.f32 %v2720_v39  ;;  %v3399_v33 = vrot.slane %v7099_v29, %v7087_v54 }
 0x313   :  { %v4700_v14 = vpop.eup %4699  ;;  %v2893_v17 = vadd.f32 1.0, %v4692_v4  ;;  %4719 = vpow2.f32 %v2722_v21  ;;  %v2529_v9 = vsub.f32 0.0, %v2401_v61  ;;  %v2728_v39 = vmul.f32 1.442695, %v2524_v16 }
 0x314   :  { %v4702_v41 = vpop.eup %4701  ;;  %4721 = vrcp.f32 %v2901_v63  ;;  %v2742_v30 = vmul.f32 1.442695, %v2531_v24  ;;  %v2530_v2 = vsub.f32 0.0, %v2402_v31  ;;  %v2406_v28 = vadd.f32 %v5793_v6, %v6621_v5 }
 0x315   :  { %v4704_v48 = vpop.eup %4703  ;;  %4723 = vpow2.f32 %v2732_v22  ;;  %v2400_v45 = vadd.f32 %v5793_v6, %v2215_v7  ;;  %v2527_v21 = vsub.f32 0.0, %v2399_v36  ;;  %v2404_v61 = vadd.f32 %v5793_v6, %v6648_v43 }
 0x316   :  { %v4706_v53 = vpop.eup %4705  ;;  %4725 = vpow2.f32 %v2730_v56  ;;  %v2906_v24 = vadd.f32 1.0, %v4702_v41  ;;  %v2738_v22 = vmul.f32 1.442695, %v2529_v9  ;;  %v3576_v5 = vrot.slane %v4700_v14, %v5900_v26  ;;  %v2235_v56 = vpop.xlane.xlu1 %2234 }
 0x317   :  { %v4708_v63 = vpop.eup %4707  ;;  %4727 = vrcp.f32 %v2893_v17  ;;  %v3567_v7 = vrot.slane %v4706_v53, %v5909_v40  ;;  %v2740_v32 = vmul.f32 1.442695, %v2530_v2  ;;  %v2534_v43 = vsub.f32 0.0, %v2406_v28 }
 0x318   :  { %v4710_v31 = vpop.eup %4709  ;;  %v3571_v46 = vrot.slane %v4708_v63, %v5935_v34  ;;  %4729 = vpow2.f32 %v2728_v39  ;;  %v2528_v38 = vsub.f32 0.0, %v2400_v45  ;;  %v3581_v16 = vrot.slane %v4704_v48, %v5914_v55 }
 0x319   :  { %v4712_v36 = vpop.eup %4711  ;;  %4731 = vpow2.f32 %v2742_v30  ;;  %v2734_v9 = vmul.f32 1.442695, %v2527_v21  ;;  %v2532_v41 = vsub.f32 0.0, %v2404_v61  ;;  %v2407_v39 = vadd.f32 %v5793_v6, %v6672_v19  ;;  %v2245_v30 = vpop.xlane.xlu0 %2244 }
 0x31a   :  { %v4714_v4 = vpop.eup %4713  ;;  %v3572_v17 = vsel %vm3227_vm1, %v3571_v46, %v3567_v7  ;;  %4733 = vrcp.f32 %v2906_v24  ;;  %v2895_v28 = vadd.f32 1.0, %v6660_v44  ;;  %v2748_v61 = vmul.f32 1.442695, %v2534_v43 }
 0x31b   :  { %v4716_v10 = vpop.eup %4715  ;;  %v3577_v14 = vsel %vm3234_vm2, %v3576_v5, %v3572_v17  ;;  %4735 = vpow2.f32 %v2738_v22  ;;  %v2736_v63 = vmul.f32 1.442695, %v2528_v38  ;;  %v2744_v19 = vmul.f32 1.442695, %v2532_v41  ;;  %v2231_v17 = vpop.xlane.xlu1 %2230 }
 0x31c   :  { %v4718_v2 = vpop.eup %4717  ;;  %v3582_v48 = vsel %vm3241_vm3, %v3581_v16, %v3577_v14  ;;  %v3586_v46 = vrot.slane %v4716_v10, %v7078_v57  ;;  %4737 = vpow2.f32 %v2740_v32  ;;  %v2535_v16 = vsub.f32 0.0, %v2407_v39 }
 0x31d   :  { %v4720_v45 = vpop.eup %4719  ;;  %v2904_v21 = vadd.f32 1.0, %v4718_v2  ;;  %4739 = vpow2.f32 %v2734_v9  ;;  %v2405_v10 = vadd.f32 %v5793_v6, %v6693_v11  ;;  %v2251_v22 = vpop.xlane.xlu0 %2250  ;;  %v3596_v32 = vrot.slane %v4712_v36, %v5805_v20 }
 0x31e   :  { %v4722_v7 = vpop.eup %4721  ;;  %v3587_v24 = vsel %vm3248_vm4, %v3586_v46, %v3582_v48  ;;  %v2905_v5 = vadd.f32 1.0, %v4720_v45  ;;  %v2907_v38 = vadd.f32 1.0, %v4710_v31  ;;  %v2415_v43 = vadd.f32 %v5793_v6, %v2245_v30 }
 0x31f   :  { %v4724_v53 = vpop.eup %4723  ;;  %v3591_v44 = vrot.slane %v4722_v7, %v7079_v8  ;;  %4741 = vrcp.f32 %v2904_v21  ;;  %v3601_v9 = vrot.slane %v4714_v4, %v5810_v25  ;;  %v2410_v39 = vadd.f32 %v5793_v6, %v2235_v56 }
 0x320   :  { %v4726_v14 = vpop.eup %4725  ;;  %4743 = vrcp.f32 %v2905_v5  ;;  %v2910_v36 = vadd.f32 1.0, %v4724_v53  ;;  %v2533_v21 = vsub.f32 0.0, %v2405_v10  ;;  %v2543_v56 = vsub.f32 0.0, %v2415_v43 }
 0x321   :  { %v6727_v2 = vpop.eup %4727  ;;  %v3592_v41 = vsel %vm3255_vm5, %v3591_v44, %v3587_v24  ;;  %4745 = vpow2.f32 %v2736_v63  ;;  %v2909_v45 = vadd.f32 1.0, %v4726_v14  ;;  %v2750_v63 = vmul.f32 1.442695, %v2535_v16 }
 0x322   :  { %v4730_v48 = vpop.eup %4729  ;;  %v3597_v46 = vsel %vm3262_vm6, %v3596_v32, %v3592_v41  ;;  %4747 = vpow2.f32 %v2748_v61  ;;  %v2237_v7 = vpop.xlane.xlu1 %2236  ;;  %v2538_v44 = vsub.f32 0.0, %v2410_v39  ;;  %v2418_v53 = vadd.f32 %v5793_v6, %v2251_v22 }
 0x323   :  { %v4732_v31 = vpop.eup %4731  ;;  %4749 = vrcp.f32 %v2895_v28  ;;  %v3602_v30 = vsel %vm3269_vm7, %v3601_v9, %v3597_v46  ;;  %v2908_v5 = vadd.f32 1.0, %v4730_v48  ;;  %v2253_v61 = vpop.xlane.xlu0 %2252  ;;  %v2408_v32 = vadd.f32 %v5793_v6, %v2231_v17  ;;  %v7101_v48 = vld [vmem:[#allocation17_spill] sm:$0xff] }
 0x324   :  { %4751 = vpow2.f32 %v2744_v19  ;;  %v6738_v24 = vpop.eup %4733  ;;  %v2915_v10 = vadd.f32 1.0, %v4732_v31  ;;  %v2766_v41 = vmul.f32 1.442695, %v2543_v56  ;;  %v2411_v22 = vadd.f32 %v5793_v6, %v2237_v7 }
 0x325   :  { %4753 = vrcp.f32 %v2907_v38  ;;  %v4736_v28 = vpop.eup %4735  ;;  %v2746_v38 = vmul.f32 1.442695, %v2533_v21  ;;  %v7102_v46 = vrot.slane %v7101_v48, %v5843_v60  ;;  %v2756_v4 = vmul.f32 1.442695, %v2538_v44 }
 0x326   :  { %4755 = vrcp.f32 %v2910_v36  ;;  %v4738_v19 = vpop.eup %4737  ;;  %v2913_v43 = vadd.f32 1.0, %v4736_v28  ;;  %v2233_v39 = vpop.xlane.xlu1 %2232  ;;  %v2546_v16 = vsub.f32 0.0, %v2418_v53  ;;  %v2536_v56 = vsub.f32 0.0, %v2408_v32 }
 0x327   :  { %4757 = vrcp.f32 %v2909_v45  ;;  %v4740_v9 = vpop.eup %4739  ;;  %v3284_v36 = vsel %vm3283_vm9, %v7102_v46, %v6686_v12  ;;  %v2914_v31 = vadd.f32 1.0, %v4738_v19  ;;  %v2249_v48 = vpop.xlane.xlu0 %2248  ;;  %v2409_v12 = vadd.f32 %v5793_v6, %v2233_v39  ;;  %v7103_v46 = vld [vmem:[#allocation14_spill] sm:$0xff] }
 0x328   :  { %4759 = vpow2.f32 %v2750_v63  ;;  %v2772_v39 = vmul.f32 1.442695, %v2546_v16 }
 0x329   :  { %v4742_v17 = vpop.eup %4741  ;;  %4761 = vrcp.f32 %v2908_v5  ;;  %v7104_v5 = vrot.slane %v7103_v46, %v5832_v47  ;;  %v2752_v46 = vmul.f32 1.442695, %v2536_v56 }
 0x32a   :  { %v4744_v45 = vpop.eup %4743  ;;  %v3606_v63 = vrot.slane %v4742_v17, %v5840_v59  ;;  %4763 = vrcp.f32 %v2915_v10  ;;  %v2539_v17 = vsub.f32 0.0, %v2411_v22  ;;  %v2243_v10 = vpop.xlane.xlu1 %2242  ;;  %v2537_v22 = vsub.f32 0.0, %v2409_v12 }
 0x32b   :  { %v4746_v7 = vpop.eup %4745  ;;  %v3611_v28 = vrot.slane %v4744_v45, %v5843_v60  ;;  %4765 = vrcp.f32 %v2913_v43  ;;  %v3291_v44 = vsel %vm3290_vm10, %v7104_v5, %v3284_v36  ;;  %v6765_v43 = vadd.f32 1.0, %v4740_v9 }
 0x32c   :  { %v4748_v53 = vpop.eup %4747  ;;  %v3607_v19 = vsel %vm7051_vm8, %v3606_v63, %v3602_v30  ;;  %v2912_v21 = vadd.f32 1.0, %v4746_v7  ;;  %4767 = vpow2.f32 %v2746_v38  ;;  %v2419_v36 = vadd.f32 %v5793_v6, %v2253_v61  ;;  %v7105_v7 = vld [vmem:[#allocation15_spill] sm:$0xff] }
 0x32d   :  { %v6762_v32 = vpop.eup %4749  ;;  %v3612_v45 = vsel %vm3283_vm9, %v3611_v28, %v3607_v19  ;;  %4769 = vrcp.f32 %v2914_v31  ;;  %v2417_v5 = vadd.f32 %v5793_v6, %v2249_v48  ;;  %v2918_v63 = vadd.f32 1.0, %v4748_v53 }
 0x32e   :  { %v4752_v14 = vpop.eup %4751  ;;  %4771 = vrcp.f32 %v2912_v21  ;;  %v7106_v11 = vrot.slane %v7105_v7, %v5835_v49  ;;  %v2758_v16 = vmul.f32 1.442695, %v2539_v17  ;;  %v2414_v31 = vadd.f32 %v5793_v6, %v2243_v10  ;;  %v2239_v21 = vpop.xlane.xlu1 %2238 }
 0x32f   :  { %v4754_v30 = vpop.eup %4753  ;;  %v2916_v38 = vadd.f32 1.0, %v4752_v14  ;;  %4773 = vpow2.f32 %v2756_v4  ;;  %v2412_v56 = vadd.f32 %v5793_v6, %v2239_v21  ;;  %v7107_v14 = vld [vmem:[#allocation25_spill] sm:$0xff]  ;;  %v2545_v4 = vsub.f32 0.0, %v2417_v5 }
 0x330   :  { %v3298_v28 = vsel %vm3297_vm11, %v7106_v11, %v3291_v44  ;;  %v6773_v9 = vpop.eup %4755  ;;  %v3400_v11 = vsel %vm3318_vm14, %v3399_v33, %v7107_v14  ;;  %v7108_v12 = vrot.slane %v7100_v15, %v7089_v1  ;;  %v7109_v53 = vrot.slane %v6615_v50, %v5890_v51 }
 0x331   :  { %v6776_v61 = vpop.eup %4757  ;;  %4775 = vrcp.f32 %v2916_v38  ;;  %v2754_v29 = vmul.f32 1.442695, %v2537_v22  ;;  %v2540_v33 = vsub.f32 0.0, %v2412_v56  ;;  %v7110_v10 = vrot.slane %v6531_v42, %v7087_v54 }
 0x332   :  { %v4760_v48 = vpop.eup %4759  ;;  %4777 = vpow2.f32 %v2752_v46  ;;  %v6788_v44 = vsel %vm3325_vm15, %v7108_v12, %v3400_v11  ;;  %v3474_v19 = vsel %vm3311_vm13, %v7109_v53, %v6562_v58  ;;  %v2241_v38 = vpop.xlane.xlu1 %2240  ;;  %v7111_v7 = vrot.slane %v6566_v0, %v7089_v1 }
 0x333   :  { %v6795_v17 = vpop.eup %4761  ;;  %4779 = vpow2.f32 %v2766_v41  ;;  %v3479_v46 = vsel %vm3318_vm14, %v7110_v10, %v3474_v19  ;;  %v2919_v5 = vadd.f32 1.0, %v4760_v48  ;;  %v7112_v58 = vrot.slane %v6625_v13, %v5835_v49 }
 0x334   :  { %v4764_v15 = vpop.eup %4763  ;;  %4781 = vpow2.f32 %v2758_v16  ;;  %v6805_v50 = vsel %vm3325_vm15, %v7111_v7, %v3479_v46  ;;  %v3621_v42 = vrot.slane %v4754_v30, %v5835_v49  ;;  %v2547_v21 = vsub.f32 0.0, %v2419_v36 }
 0x335   :  { %v3543_v41 = vsel %vm3297_vm11, %v7112_v58, %v6663_v18  ;;  %v4766_v22 = vpop.eup %4765  ;;  %4783 = vrcp.f32 %v2918_v63  ;;  %v2542_v56 = vsub.f32 0.0, %v2414_v31  ;;  %v2413_v14 = vadd.f32 %v5793_v6, %v2241_v38 }
 0x336   :  { %v4768_v16 = vpop.eup %4767  ;;  %4785 = vpow2.f32 %v2772_v39  ;;  %v7113_v0 = vrot.slane %v6689_v35, %v5866_v37  ;;  %v7114_v13 = vrot.slane %v6738_v24, %v5832_v47  ;;  %v2760_v30 = vmul.f32 1.442695, %v2540_v33  ;;  %v2247_v35 = vpop.xlane.xlu1 %2246 }
 0x337   :  { %v4770_v48 = vpop.eup %4769  ;;  %v2917_v12 = vadd.f32 1.0, %v4768_v16  ;;  %4787 = vpow2.f32 %v2754_v29  ;;  %v7115_v36 = vrot.slane %v7093_v3, %v5866_v37  ;;  %v2770_v31 = vmul.f32 1.442695, %v2545_v4  ;;  %v2269_v33 = vpop.xlane.xlu0 %2268 }
 0x338   :  { %v3548_v11 = vsel %vm3304_vm12, %v7113_v0, %v3543_v41  ;;  %v3617_v18 = vsel %vm3290_vm10, %v7114_v13, %v3612_v45  ;;  %v4772_v63 = vpop.eup %4771  ;;  %4789 = vrcp.f32 %v2919_v5  ;;  %v7116_v53 = vrot.slane %v6727_v2, %v5890_v51 }
 0x339   :  { %v3305_v39 = vsel %vm3304_vm12, %v7115_v36, %v3298_v28  ;;  %v6831_v45 = vsel %vm3297_vm11, %v3621_v42, %v3617_v18  ;;  %v3650_v19 = vrot.slane %v4766_v22, %v5935_v34  ;;  %v3646_v29 = vrot.slane %v4772_v63, %v5909_v40  ;;  %v4774_v28 = vpop.eup %4773 }
 0x33a   :  { %v3553_v24 = vsel %vm3311_vm13, %v7116_v53, %v3548_v11  ;;  %4791 = vrcp.f32 %v2917_v12  ;;  %v2764_v3 = vmul.f32 1.442695, %v2542_v56  ;;  %v3655_v10 = vrot.slane %v4770_v48, %v5900_v26  ;;  %v2259_v16 = vpop.xlane.xlu1 %2258 }
 0x33b   :  { %v2774_v4 = vmul.f32 1.442695, %v2547_v21  ;;  %v2541_v46 = vsub.f32 0.0, %v2413_v14  ;;  %v7117_v2 = vrot.slane %v6678_v62, %v7087_v54  ;;  %v4776_v38 = vpop.eup %4775  ;;  %v3660_v7 = vrot.slane %v4764_v15, %v5914_v55  ;;  %v2271_v15 = vpop.xlane.xlu0 %2270 }
 0x33c   :  { %v3651_v58 = vsel %vm3227_vm1, %v3650_v19, %v3646_v29  ;;  %4793 = vpow2.f32 %v2760_v30  ;;  %v2416_v41 = vadd.f32 %v5793_v6, %v2247_v35  ;;  %v4778_v22 = vpop.eup %4777  ;;  %v3665_v56 = vrot.slane %v4776_v38, %v7078_v57 }
 0x33d   :  { %v3558_v5 = vsel %vm3318_vm14, %v7117_v2, %v3553_v24  ;;  %v3656_v42 = vsel %vm3234_vm2, %v3655_v10, %v3651_v58  ;;  %4795 = vpow2.f32 %v2770_v31  ;;  %v2427_v21 = vadd.f32 %v5793_v6, %v2269_v33  ;;  %v4780_v62 = vpop.eup %4779 }
 0x33e   :  { %v3661_v14 = vsel %vm3241_vm3, %v3660_v7, %v3656_v42  ;;  %v2922_v0 = vadd.f32 1.0, %v4774_v28  ;;  %v2920_v11 = vadd.f32 1.0, %v4778_v22  ;;  %4797 = vpow2.f32 %v2764_v3  ;;  %v4782_v13 = vpop.eup %4781  ;;  %v2255_v19 = vpop.xlane.xlu1 %2254 }
 0x33f   :  { %v3562_v18 = vrot.slane %v6762_v32, %v7089_v1  ;;  %4799 = vrcp.f32 %v6765_v43  ;;  %v3666_v48 = vsel %vm3248_vm4, %v3665_v56, %v3661_v14  ;;  %v2762_v12 = vmul.f32 1.442695, %v2541_v46  ;;  %v4784_v30 = vpop.eup %4783  ;;  %v2273_v2 = vpop.xlane.xlu0 %2272 }
 0x340   :  { %4801 = vrcp.f32 %v2920_v11  ;;  %v2923_v36 = vadd.f32 1.0, %v4782_v13  ;;  %v2544_v63 = vsub.f32 0.0, %v2416_v41  ;;  %v7118_v31 = vrot.slane %v7096_v52, %v5890_v51  ;;  %v4786_v53 = vpop.eup %4785 }
 0x341   :  { %v3631_v24 = vrot.slane %v6776_v61, %v5890_v51  ;;  %v3626_v32 = vrot.slane %v6795_v17, %v5866_v37  ;;  %4803 = vpow2.f32 %v2774_v4  ;;  %v2422_v43 = vadd.f32 %v5793_v6, %v2259_v16  ;;  %v4788_v29 = vpop.eup %4787 }
 0x342   :  { %v3312_v35 = vsel %vm3311_vm13, %v7118_v31, %v3305_v39  ;;  %v2927_v3 = vadd.f32 1.0, %v4780_v62  ;;  %4805 = vrcp.f32 %v2922_v0  ;;  %v2555_v33 = vsub.f32 0.0, %v2427_v21  ;;  %v4790_v52 = vpop.eup %4789  ;;  %v2261_v41 = vpop.xlane.xlu1 %2260 }
 0x343   :  { %v2420_v28 = vadd.f32 %v5793_v6, %v2255_v19  ;;  %v3675_v39 = vrot.slane %v4784_v30, %v5805_v20  ;;  %v2921_v10 = vadd.f32 1.0, %v4788_v29  ;;  %4807 = vpow2.f32 %v2762_v12 }
 0x344   :  { %v6863_v61 = vsel %vm3325_vm15, %v3562_v18, %v3558_v5  ;;  %v4792_v46 = vpop.eup %4791  ;;  %4809 = vrcp.f32 %v2923_v36  ;;  %v2428_v17 = vadd.f32 %v5793_v6, %v2271_v15  ;;  %v2768_v4 = vmul.f32 1.442695, %v2544_v63 }
 0x345   :  { %v2550_v38 = vsub.f32 0.0, %v2422_v43  ;;  %v3670_v7 = vrot.slane %v4792_v46, %v7079_v8  ;;  %4811 = vrcp.f32 %v2921_v10  ;;  %v2548_v58 = vsub.f32 0.0, %v2420_v28 }
 0x346   :  { %v3627_v22 = vsel %vm3304_vm12, %v3626_v32, %v6831_v45  ;;  %v4794_v42 = vpop.eup %4793  ;;  %4813 = vrcp.f32 %v2927_v3  ;;  %v2930_v56 = vadd.f32 1.0, %v4786_v53  ;;  %v2790_v5 = vmul.f32 1.442695, %v2555_v33  ;;  %v2257_v31 = vpop.xlane.xlu1 %2256 }
 0x347   :  { %v6870_v21 = vsel %vm3311_vm13, %v3631_v24, %v3627_v22  ;;  %v4796_v16 = vpop.eup %4795  ;;  %v3680_v62 = vrot.slane %v4790_v52, %v5810_v25  ;;  %v3671_v14 = vsel %vm3255_vm5, %v3670_v7, %v3666_v48  ;;  %v2924_v0 = vadd.f32 1.0, %v4794_v42 }
 0x348   :  { %v2429_v11 = vadd.f32 %v5793_v6, %v2273_v2  ;;  %v4798_v15 = vpop.eup %4797  ;;  %v3676_v13 = vsel %vm3262_vm6, %v3675_v39, %v3671_v14  ;;  %4815 = vpow2.f32 %v2768_v4  ;;  %v2780_v45 = vmul.f32 1.442695, %v2550_v38 }
 0x349   :  { %v2423_v18 = vadd.f32 %v5793_v6, %v2261_v41  ;;  %v6877_v12 = vpop.eup %4799  ;;  %v3681_v30 = vsel %vm3269_vm7, %v3680_v62, %v3676_v13  ;;  %4817 = vrcp.f32 %v2924_v0  ;;  %v2556_v36 = vsub.f32 0.0, %v2428_v17 }
 0x34a   :  { %v2776_v63 = vmul.f32 1.442695, %v2548_v58  ;;  %v4802_v53 = vpop.eup %4801  ;;  %4819 = vrcp.f32 %v2930_v56  ;;  %v2929_v48 = vadd.f32 1.0, %v4796_v16  ;;  %v2421_v24 = vadd.f32 %v5793_v6, %v2257_v31 }
 0x34b   :  { %v7119_v32 = vrot.slane %v7088_v27, %v7087_v54  ;;  %v4804_v19 = vpop.eup %4803  ;;  %v3685_v29 = vrot.slane %v4802_v53, %v5840_v59  ;;  %v2926_v3 = vadd.f32 1.0, %v4798_v15  ;;  %4821 = vpow2.f32 %v2790_v5  ;;  %v2267_v27 = vpop.xlane.xlu1 %2266 }
 0x34c   :  { %v2557_v33 = vsub.f32 0.0, %v2429_v11  ;;  %v4806_v28 = vpop.eup %4805  ;;  %v3636_v52 = vrot.slane %v6773_v9, %v7087_v54  ;;  %4823 = vpow2.f32 %v2780_v45  ;;  %v2551_v39 = vsub.f32 0.0, %v2423_v18 }
 0x34d   :  { %v3319_v43 = vsel %vm3318_vm14, %v7119_v32, %v3312_v35  ;;  %v2549_v10 = vsub.f32 0.0, %v2421_v24  ;;  %v4808_v46 = vpop.eup %4807  ;;  %v3686_v17 = vsel %vm7051_vm8, %v3685_v29, %v3681_v30  ;;  %v2792_v4 = vmul.f32 1.442695, %v2556_v36 }
 0x34e   :  { %4825 = vpow2.f32 %v2776_v63  ;;  %v7120_v35 = vrot.slane %v7090_v23, %v7089_v1  ;;  %v4810_v38 = vpop.eup %4809  ;;  %v2925_v7 = vadd.f32 1.0, %v4808_v46  ;;  %v2426_v9 = vadd.f32 %v5793_v6, %v2267_v27 }
 0x34f   :  { %4827 = vrcp.f32 %v2929_v48  ;;  %v2778_v58 = vmul.f32 1.442695, %v2549_v10  ;;  %v4812_v41 = vpop.eup %4811  ;;  %v2931_v22 = vadd.f32 1.0, %v4804_v19  ;;  %v2794_v42 = vmul.f32 1.442695, %v2557_v33  ;;  %v2263_v0 = vpop.xlane.xlu1 %2262 }
 0x350   :  { %v3326_v2 = vsel %vm3325_vm15, %v7120_v35, %v3319_v43  ;;  %4829 = vrcp.f32 %v2926_v3  ;;  %v6894_v56 = vpop.eup %4813  ;;  %v3690_v5 = vrot.slane %v4812_v41, %v5843_v60  ;;  %v2782_v16 = vmul.f32 1.442695, %v2551_v39 }
 0x351   :  { %4831 = vrcp.f32 %v2925_v7  ;;  %v3881_v23 = vsel %vm3880_vm0, %v6788_v44, %v3326_v2  ;;  %v3695_v62 = vrot.slane %v4806_v28, %v5832_v47  ;;  %v2554_v14 = vsub.f32 0.0, %v2426_v9 }
 0x352   :  { %4833 = vpow2.f32 %v2792_v4  ;;  %vm3882_vm8 = vcmask 1042434   ;;  %v4816_v11 = vpop.eup %4815  ;;  %v3700_v15 = vrot.slane %v4810_v38, %v5835_v49  ;;  %v3691_v13 = vsel %vm3283_vm9, %v3690_v5, %v3686_v17 }
 0x353   :  { %4835 = vpow2.f32 %v2778_v58  ;;  %v3641_v45 = vrot.slane %v6877_v12, %v7089_v1  ;;  %v4818_v18 = vpop.eup %4817  ;;  %v2928_v30 = vadd.f32 1.0, %v4816_v11  ;;  %v2424_v36 = vadd.f32 %v5793_v6, %v2263_v0  ;;  %v2265_v19 = vpop.xlane.xlu1 %2264 }
 0x354   :  { %v3637_v44 = vsel %vm3318_vm14, %v3636_v52, %v6870_v21  ;;  %v3696_v63 = vsel %vm3290_vm10, %v3695_v62, %v3691_v13  ;;  %v6907_v31 = vpop.eup %4819  ;;  %v3705_v53 = vrot.slane %v4818_v18, %v5866_v37  ;;  %4837 = vpow2.f32 %v2782_v16  ;;  %v2281_v62 = vpop.xlane.xlu0 %2280 }
 0x355   :  { %v3701_v48 = vsel %vm3297_vm11, %v3700_v15, %v3696_v63  ;;  %v3883_v24 = vsel %vm3882_vm8, %v6805_v50, %v3881_v23  ;;  %v4822_v32 = vpop.eup %4821  ;;  %4839 = vrcp.f32 %v2928_v30  ;;  %v2788_v12 = vmul.f32 1.442695, %v2554_v14 }
 0x356   :  { %v2552_v43 = vsub.f32 0.0, %v2424_v36  ;;  %vm3884_vm0 = vcmask 1043459   ;;  %v4824_v29 = vpop.eup %4823  ;;  %4841 = vrcp.f32 %v2931_v22  ;;  %v2425_v21 = vadd.f32 %v5793_v6, %v2265_v19 }
 0x357   :  { %v3642_v3 = vsel %vm3325_vm15, %v3641_v45, %v3637_v44  ;;  %v3706_v33 = vsel %vm3304_vm12, %v3705_v53, %v3701_v48  ;;  %4843 = vpow2.f32 %v2794_v42  ;;  %v3885_v52 = vsel %vm3884_vm0, %v6863_v61, %v3883_v24  ;;  %v2275_v4 = vpop.xlane.xlu1 %2274 }
 0x358   :  { %v4826_v28 = vpop.eup %4825  ;;  %v2784_v10 = vmul.f32 1.442695, %v2552_v43  ;;  %v2553_v46 = vsub.f32 0.0, %v2425_v21  ;;  %vm3886_vm8 = vcmask 1044484   ;;  %4845 = vpow2.f32 %v2788_v12 }
 0x359   :  { %v4828_v39 = vpop.eup %4827  ;;  %v2932_v50 = vadd.f32 1.0, %v4826_v28  ;;  %v3887_v27 = vsel %vm3886_vm8, %v3642_v3, %v3885_v52  ;;  %v2934_v2 = vadd.f32 1.0, %v4824_v29  ;;  %v2430_v7 = vadd.f32 %v5793_v6, %v2275_v4 }
 0x35a   :  { %v4830_v17 = vpop.eup %4829  ;;  %v2786_v38 = vmul.f32 1.442695, %v2553_v46  ;;  %v2939_v15 = vadd.f32 1.0, %v4822_v32  ;;  %v3720_v45 = vrot.slane %v6894_v56, %v7089_v1  ;;  %v3729_v53 = vrot.slane %v4828_v39, %v5935_v34 }
 0x35b   :  { %v4832_v35 = vpop.eup %4831  ;;  %4847 = vrcp.f32 %v2932_v50  ;;  %v2558_v61 = vsub.f32 0.0, %v2430_v7  ;;  %v2277_v42 = vpop.xlane.xlu1 %2276  ;;  %v3715_v16 = vrot.slane %v4830_v17, %v7087_v54  ;;  %v2433_v48 = vadd.f32 %v5793_v6, %v2281_v62 }
 0x35c   :  { %v4834_v58 = vpop.eup %4833  ;;  %v3710_v9 = vrot.slane %v4832_v35, %v5890_v51  ;;  %4849 = vpow2.f32 %v2784_v10  ;;  %v2431_v0 = vadd.f32 %v5793_v6, %v2277_v42  ;;  %vm3888_vm0 = vcmask 1045509  }
 0x35d   :  { %v4836_v41 = vpop.eup %4835  ;;  %4851 = vpow2.f32 %v2786_v38  ;;  %v2796_v14 = vmul.f32 1.442695, %v2558_v61  ;;  %v2940_v30 = vadd.f32 1.0, %v4834_v58  ;;  %v2561_v28 = vsub.f32 0.0, %v2433_v48 }
 0x35e   :  { %v2933_v22 = vadd.f32 1.0, %v4836_v41  ;;  %v3711_v5 = vsel %vm3311_vm13, %v3710_v9, %v3706_v33  ;;  %v4838_v23 = vpop.eup %4837  ;;  %4853 = vrcp.f32 %v2934_v2  ;;  %v2559_v44 = vsub.f32 0.0, %v2431_v0 }
 0x35f   :  { %v4840_v11 = vpop.eup %4839  ;;  %v3716_v13 = vsel %vm3318_vm14, %v3715_v16, %v3711_v5  ;;  %v2283_v24 = vpop.xlane.xlu1 %2282  ;;  %v2935_v12 = vadd.f32 1.0, %v4838_v23  ;;  %v3734_v33 = vrot.slane %v6907_v31, %v5900_v26  ;;  %v2802_v61 = vmul.f32 1.442695, %v2561_v28 }
 0x360   :  { %4855 = vrcp.f32 %v2933_v22  ;;  %v4842_v18 = vpop.eup %4841  ;;  %v3725_v36 = vrot.slane %v4840_v11, %v5909_v40  ;;  %v2798_v32 = vmul.f32 1.442695, %v2559_v44  ;;  %v3721_v43 = vsel %vm3325_vm15, %v3720_v45, %v3716_v13  ;;  %v2291_v31 = vpop.xlane.xlu0 %2290 }
 0x361   :  { %4857 = vpow2.f32 %v2796_v14  ;;  %v4844_v63 = vpop.eup %4843  ;;  %v2434_v3 = vadd.f32 %v5793_v6, %v2283_v24  ;;  %v6932_v39 = vsel %vm3888_vm0, %v3721_v43, %v3887_v27  ;;  %v3739_v10 = vrot.slane %v4842_v18, %v5914_v55 }
 0x362   :  { %v4846_v19 = vpop.eup %4845  ;;  %4859 = vrcp.f32 %v2939_v15  ;;  %v3730_v29 = vsel %vm3227_vm1, %v3729_v53, %v3725_v36  ;;  %v2941_v35 = vadd.f32 1.0, %v4844_v63  ;;  %v2438_v36 = vadd.f32 %v5793_v6, %v2291_v31 }
 0x363   :  { %4861 = vrcp.f32 %v2940_v30  ;;  %v2938_v21 = vadd.f32 1.0, %v4846_v19  ;;  %v2279_v52 = vpop.xlane.xlu1 %2278  ;;  %v3735_v4 = vsel %vm3234_vm2, %v3734_v33, %v3730_v29  ;;  %v2562_v9 = vsub.f32 0.0, %v2434_v3 }
 0x364   :  { %4863 = vpow2.f32 %v2798_v32  ;;  %v2432_v46 = vadd.f32 %v5793_v6, %v2279_v52  ;;  %v3740_v5 = vsel %vm3241_vm3, %v3739_v10, %v3735_v4  ;;  %v2297_v13 = vpop.xlane.xlu0 %2296  ;;  %v2566_v29 = vsub.f32 0.0, %v2438_v36 }
 0x365   :  { %v4848_v56 = vpop.eup %4847  ;;  %4865 = vrcp.f32 %v2935_v12  ;;  %v2804_v45 = vmul.f32 1.442695, %v2562_v9  ;;  %v2441_v32 = vadd.f32 %v5793_v6, %v2297_v13  ;;  %vm7121_vm8 = vcmask 589312  }
 0x366   :  { %v4850_v50 = vpop.eup %4849  ;;  %v3744_v2 = vrot.slane %v4848_v56, %v7078_v57  ;;  %4867 = vrcp.f32 %v2938_v21  ;;  %v2560_v27 = vsub.f32 0.0, %v2432_v46  ;;  %vm3890_vm0 = vcmask 1046534  }
 0x367   :  { %v4852_v17 = vpop.eup %4851  ;;  %v2936_v38 = vadd.f32 1.0, %v4850_v50  ;;  %v2285_v22 = vpop.xlane.xlu1 %2284  ;;  %v2569_v46 = vsub.f32 0.0, %v2441_v32 }
 0x368   :  { %v4854_v7 = vpop.eup %4853  ;;  %v2937_v58 = vadd.f32 1.0, %v4852_v17  ;;  %v2435_v23 = vadd.f32 %v5793_v6, %v2285_v22  ;;  %v3745_v14 = vsel %vm3248_vm4, %v3744_v2, %v3740_v5  ;;  %v2800_v11 = vmul.f32 1.442695, %v2560_v27  ;;  %v2305_v33 = vpop.xlane.xlu0 %2304 }
 0x369   :  { %4869 = vrcp.f32 %v2936_v38  ;;  %v3754_v62 = vrot.slane %v4854_v7, %v5805_v20 }
 0x36a   :  { %v4856_v41 = vpop.eup %4855  ;;  %4871 = vrcp.f32 %v2937_v58  ;;  %v2563_v18 = vsub.f32 0.0, %v2435_v23 }
 0x36b   :  { %v4858_v42 = vpop.eup %4857  ;;  %v3749_v16 = vrot.slane %v4856_v41, %v7079_v8  ;;  %4873 = vrcp.f32 %v2941_v35  ;;  %v2287_v63 = vpop.xlane.xlu1 %2286  ;;  %v2812_v35 = vmul.f32 1.442695, %v2566_v29 }
 0x36c   :  { %v2942_v0 = vadd.f32 1.0, %v4858_v42  ;;  %v4860_v30 = vpop.eup %4859  ;;  %4875 = vpow2.f32 %v2802_v61  ;;  %v2806_v48 = vmul.f32 1.442695, %v2563_v18  ;;  %v2436_v24 = vadd.f32 %v5793_v6, %v2287_v63 }
 0x36d   :  { %v3750_v15 = vsel %vm3255_vm5, %v3749_v16, %v3745_v14  ;;  %v4862_v53 = vpop.eup %4861  ;;  %v3779_v22 = vrot.slane %v4860_v30, %v5835_v49  ;;  %v2818_v42 = vmul.f32 1.442695, %v2569_v46  ;;  %v2445_v30 = vadd.f32 %v5793_v6, %v2305_v33 }
 0x36e   :  { %v3755_v44 = vsel %vm3262_vm6, %v3754_v62, %v3750_v15  ;;  %4877 = vrcp.f32 %v2942_v0  ;;  %v4864_v12 = vpop.eup %4863  ;;  %v2564_v56 = vsub.f32 0.0, %v2436_v24  ;;  %v3784_v23 = vrot.slane %v4862_v53, %v5866_v37  ;;  %v2307_v62 = vpop.xlane.xlu0 %2306 }
 0x36f   :  { %4879 = vpow2.f32 %v2800_v11  ;;  %v4866_v43 = vpop.eup %4865  ;;  %v2943_v19 = vadd.f32 1.0, %v4864_v12  ;;  %v2293_v21 = vpop.xlane.xlu1 %2292  ;;  %v2446_v24 = vadd.f32 %v5793_v6, %v2307_v62 }
 0x370   :  { %4881 = vpow2.f32 %v2804_v45  ;;  %v4868_v3 = vpop.eup %4867  ;;  %v2808_v28 = vmul.f32 1.442695, %v2564_v56  ;;  %v2439_v52 = vadd.f32 %v5793_v6, %v2293_v21  ;;  %v3759_v10 = vrot.slane %v4866_v43, %v5810_v25 }
 0x371   :  { %4883 = vpow2.f32 %v2806_v48  ;;  %v3774_v9 = vrot.slane %v4868_v3, %v5832_v47  ;;  %v2574_v46 = vsub.f32 0.0, %v2446_v24 }
 0x372   :  { %4885 = vrcp.f32 %v2943_v19  ;;  %v3760_v2 = vsel %vm3269_vm7, %v3759_v10, %v3755_v44  ;;  %v2567_v7 = vsub.f32 0.0, %v2439_v52 }
 0x373   :  { %v4870_v50 = vpop.eup %4869  ;;  %4887 = vpow2.f32 %v2808_v28  ;;  %v2289_v31 = vpop.xlane.xlu1 %2288  ;;  %v2573_v28 = vsub.f32 0.0, %v2445_v30 }
 0x374   :  { %v4872_v17 = vpop.eup %4871  ;;  %v3764_v4 = vrot.slane %v4870_v50, %v5840_v59  ;;  %v2437_v41 = vadd.f32 %v5793_v6, %v2289_v31  ;;  %4889 = vpow2.f32 %v2812_v35  ;;  %v2814_v15 = vmul.f32 1.442695, %v2567_v7 }
 0x375   :  { %v3769_v38 = vrot.slane %v4872_v17, %v5843_v60  ;;  %v4874_v58 = vpop.eup %4873  ;;  %4891 = vpow2.f32 %v2818_v42 }
 0x376   :  { %v3765_v27 = vsel %vm7121_vm8, %v3764_v4, %v3760_v2  ;;  %v4876_v61 = vpop.eup %4875  ;;  %v2565_v14 = vsub.f32 0.0, %v2437_v41  ;;  %v3789_v18 = vrot.slane %v4874_v58, %v5890_v51  ;;  %v2826_v58 = vmul.f32 1.442695, %v2573_v28 }
 0x377   :  { %v3770_v5 = vsel %vm3283_vm9, %v3769_v38, %v3765_v27  ;;  %v2299_v13 = vpop.xlane.xlu1 %2298  ;;  %v2945_v48 = vadd.f32 1.0, %v4876_v61  ;;  %v2828_v61 = vmul.f32 1.442695, %v2574_v46 }
 0x378   :  { %v4878_v16 = vpop.eup %4877  ;;  %v3775_v0 = vsel %vm3290_vm10, %v3774_v9, %v3770_v5  ;;  %v2810_v44 = vmul.f32 1.442695, %v2565_v14  ;;  %v2442_v63 = vadd.f32 %v5793_v6, %v2299_v13 }
 0x379   :  { %v4880_v11 = vpop.eup %4879  ;;  %v3780_v45 = vsel %vm3297_vm11, %v3779_v22, %v3775_v0  ;;  %v3794_v12 = vrot.slane %v4878_v16, %v7087_v54 }
 0x37a   :  { %v4882_v36 = vpop.eup %4881  ;;  %v3785_v53 = vsel %vm3304_vm12, %v3784_v23, %v3780_v45  ;;  %v2944_v43 = vadd.f32 1.0, %v4880_v11  ;;  %4893 = vpow2.f32 %v2810_v44  ;;  %v2570_v19 = vsub.f32 0.0, %v2442_v63 }
 0x37b   :  { %v4884_v32 = vpop.eup %4883  ;;  %v3790_v56 = vsel %vm3311_vm13, %v3789_v18, %v3785_v53  ;;  %v2946_v21 = vadd.f32 1.0, %v4882_v36  ;;  %4895 = vpow2.f32 %v2814_v15 }
 0x37c   :  { %v4886_v29 = vpop.eup %4885  ;;  %v2295_v3 = vpop.xlane.xlu1 %2294  ;;  %v2820_v52 = vmul.f32 1.442695, %v2570_v19  ;;  %4897 = vrcp.f32 %v2945_v48  ;;  %v2947_v17 = vadd.f32 1.0, %v4884_v32  ;;  %v3795_v4 = vsel %vm3318_vm14, %v3794_v12, %v3790_v56 }
 0x37d   :  { %v4888_v33 = vpop.eup %4887  ;;  %v2440_v50 = vadd.f32 %v5793_v6, %v2295_v3  ;;  %v3799_v10 = vrot.slane %v4886_v29, %v7089_v1  ;;  %4899 = vrcp.f32 %v2944_v43 }
 0x37e   :  { %4901 = vrcp.f32 %v2946_v21  ;;  %v2948_v38 = vadd.f32 1.0, %v4888_v33  ;;  %v4890_v41 = vpop.eup %4889 }
 0x37f   :  { %v2568_v35 = vsub.f32 0.0, %v2440_v50  ;;  %v3800_v2 = vsel %vm3325_vm15, %v3799_v10, %v3795_v4  ;;  %4903 = vpow2.f32 %v2820_v52  ;;  %v4892_v42 = vpop.eup %4891  ;;  %v2950_v14 = vadd.f32 1.0, %v4890_v41 }
 0x380   :  { %v2301_v7 = vpop.xlane.xlu1 %2300  ;;  %v6974_v31 = vsel %vm3890_vm0, %v3800_v2, %v6932_v39  ;;  %4905 = vrcp.f32 %v2947_v17  ;;  %v2953_v63 = vadd.f32 1.0, %v4892_v42 }
 0x381   :  { %v2816_v9 = vmul.f32 1.442695, %v2568_v35  ;;  %v2443_v27 = vadd.f32 %v5793_v6, %v2301_v7 }
 0x383   :  { %4907 = vpow2.f32 %v2816_v9  ;;  %v2571_v22 = vsub.f32 0.0, %v2443_v27 }
 0x384   :  { %4909 = vrcp.f32 %v2948_v38  ;;  %v2303_v5 = vpop.xlane.xlu1 %2302  ;;  %v4894_v16 = vpop.eup %4893 }
 0x385   :  { %4911 = vpow2.f32 %v2826_v58  ;;  %v2822_v23 = vmul.f32 1.442695, %v2571_v22  ;;  %v2444_v62 = vadd.f32 %v5793_v6, %v2303_v5  ;;  %v4896_v39 = vpop.eup %4895  ;;  %v2949_v0 = vadd.f32 1.0, %v4894_v16 }
 0x386   :  { %4913 = vpow2.f32 %v2828_v61  ;;  %v4898_v15 = vpop.eup %4897  ;;  %v2951_v18 = vadd.f32 1.0, %v4896_v39 }
 0x387   :  { %4915 = vpow2.f32 %v2822_v23  ;;  %v2572_v11 = vsub.f32 0.0, %v2444_v62  ;;  %v4900_v45 = vpop.eup %4899  ;;  %v3808_v56 = vrot.slane %v4898_v15, %v5935_v34 }
 0x388   :  { %4917 = vrcp.f32 %v2949_v0  ;;  %v2309_v13 = vpop.xlane.xlu1 %2308  ;;  %v4902_v44 = vpop.eup %4901  ;;  %v3804_v12 = vrot.slane %v4900_v45, %v5909_v40 }
 0x389   :  { %v2824_v36 = vmul.f32 1.442695, %v2572_v11  ;;  %v2447_v30 = vadd.f32 %v5793_v6, %v2309_v13  ;;  %4919 = vrcp.f32 %v2950_v14  ;;  %v4904_v53 = vpop.eup %4903  ;;  %v3813_v40 = vrot.slane %v4902_v44, %v5900_v26 }
 0x38a   :  { %v4906_v24 = vpop.eup %4905  ;;  %v2954_v29 = vadd.f32 1.0, %v4904_v53  ;;  %v3809_v33 = vsel %vm3227_vm1, %v3808_v56, %v3804_v12  ;;  %vm7122_vm1 = vmmov %vm7121_vm8 }
 0x38b   :  { %4921 = vpow2.f32 %v2824_v36  ;;  %v2575_v48 = vsub.f32 0.0, %v2447_v30  ;;  %v3818_v28 = vrot.slane %v4906_v24, %v5914_v55  ;;  %v3814_v4 = vsel %vm3234_vm2, %v3813_v40, %v3809_v33 }
 0x38c   :  { %4923 = vrcp.f32 %v2951_v18  ;;  %vm3892_vm2 = vcmask 1047559  }
 0x38d   :  { %v4908_v32 = vpop.eup %4907  ;;  %v2830_v43 = vmul.f32 1.442695, %v2575_v48  ;;  %4925 = vrcp.f32 %v2953_v63  ;;  %v3819_v38 = vsel %vm3241_vm3, %v3818_v28, %v3814_v4 }
 0x38e   :  { %v4910_v19 = vpop.eup %4909  ;;  %v2952_v21 = vadd.f32 1.0, %v4908_v32 }
 0x38f   :  { %v4912_v3 = vpop.eup %4911  ;;  %4927 = vpow2.f32 %v2830_v43  ;;  %v3823_v50 = vrot.slane %v4910_v19, %v7078_v57 }
 0x390   :  { %v4914_v6 = vpop.eup %4913  ;;  %4929 = vrcp.f32 %v2952_v21  ;;  %v2957_v46 = vadd.f32 1.0, %v4912_v3 }
 0x391   :  { %v4916_v52 = vpop.eup %4915  ;;  %4931 = vrcp.f32 %v2954_v29  ;;  %v2958_v17 = vadd.f32 1.0, %v4914_v6  ;;  %v3824_v7 = vsel %vm3248_vm4, %v3823_v50, %v3819_v38 }
 0x392   :  { %v4918_v10 = vpop.eup %4917  ;;  %v2955_v34 = vadd.f32 1.0, %v4916_v52 }
 0x393   :  { %v3828_v35 = vrot.slane %v4918_v10, %v7079_v8  ;;  %v4920_v2 = vpop.eup %4919 }
 0x394   :  { %4933 = vrcp.f32 %v2955_v34  ;;  %v3833_v9 = vrot.slane %v4920_v2, %v5805_v20 }
 0x395   :  { %v4922_v55 = vpop.eup %4921  ;;  %4935 = vrcp.f32 %v2957_v46  ;;  %v3829_v26 = vsel %vm3255_vm5, %v3828_v35, %v3824_v7 }
 0x396   :  { %v2956_v57 = vadd.f32 1.0, %v4922_v55  ;;  %v4924_v58 = vpop.eup %4923  ;;  %4937 = vrcp.f32 %v2958_v17  ;;  %v3834_v8 = vsel %vm3262_vm6, %v3833_v9, %v3829_v26 }
 0x397   :  { %v4926_v27 = vpop.eup %4925  ;;  %v3838_v22 = vrot.slane %v4924_v58, %v5810_v25 }
 0x398   :  { %4939 = vrcp.f32 %v2956_v57  ;;  %v3848_v23 = vrot.slane %v4926_v27, %v5843_v60 }
 0x399   :  { %v4928_v41 = vpop.eup %4927  ;;  %v3839_v62 = vsel %vm3269_vm7, %v3838_v22, %v3834_v8 }
 0x39a   :  { %v4930_v61 = vpop.eup %4929  ;;  %v2959_v42 = vadd.f32 1.0, %v4928_v41 }
 0x39b   :  { %v3843_v5 = vrot.slane %v4930_v61, %v5840_v59  ;;  %v4932_v16 = vpop.eup %4931 }
 0x39c   :  { %4941 = vrcp.f32 %v2959_v42  ;;  %v3853_v0 = vrot.slane %v4932_v16, %v5832_v47 }
 0x39d   :  { %v3844_v20 = vsel %vm7122_vm1, %v3843_v5, %v3839_v62 }
 0x39e   :  { %v4934_v39 = vpop.eup %4933  ;;  %v3849_v14 = vsel %vm3283_vm9, %v3848_v23, %v3844_v20 }
 0x39f   :  { %v4936_v11 = vpop.eup %4935  ;;  %v3858_v15 = vrot.slane %v4934_v39, %v5835_v49  ;;  %v3854_v13 = vsel %vm3290_vm10, %v3853_v0, %v3849_v14 }
 0x3a0   :  { %v4938_v25 = vpop.eup %4937  ;;  %v3868_v18 = vrot.slane %v4936_v11, %v5890_v51 }
 0x3a1   :  { %v3859_v60 = vsel %vm3297_vm11, %v3858_v15, %v3854_v13  ;;  %v3873_v30 = vrot.slane %v4938_v25, %v7087_v54 }
 0x3a2   :  { %v4940_v59 = vpop.eup %4939 }
 0x3a3   :  { %v3863_v45 = vrot.slane %v4940_v59, %v5866_v37 }
 0x3a5   :  { %v3864_v36 = vsel %vm3304_vm12, %v3863_v45, %v3859_v60 }
 0x3a6   :  { %v4942_v44 = vpop.eup %4941  ;;  %v3869_v47 = vsel %vm3311_vm13, %v3868_v18, %v3864_v36 }
 0x3a7   :  { %v3874_v49 = vsel %vm3318_vm14, %v3873_v30, %v3869_v47  ;;  %v3878_v63 = vrot.slane %v4942_v44, %v7089_v1 }
 0x3a9   :  { %v3879_v37 = vsel %vm3325_vm15, %v3878_v63, %v3874_v49 }
 0x3aa   :  { %v3893_v53 = vsel %vm3892_vm2, %v3879_v37, %v6974_v31 }
 0x3ab   :  { %3895 = vst [vmem:[#allocation3] sm:$0xff] %v3893_v53 }
 0x3ac   :  { %4959 = shalt.err (!%p4956_p4)
}
 0x3ad   :  { %s4960_s13 = scalar_lea.hbm %s7030_s7, 128 }
 0x3ae   :  { %p4961_p5 = scmp.ne.s32.totalorder %s7030_s7, %s4960_s13  ;;  %p4964_p6 = scmp.lt.u32.totalorder %s4960_s13, %s7030_s7 }
 0x3b0   :  { %p4966_p7 = pnand %p4964_p6, %p4961_p5 }
 0x3b2   :  { %4969 = shalt.err (!%p4966_p7)
}
 0x3b3   :  { %3905 = dma.vmem_to_hbm [thread:$0]  %s3903_s5, 128, %s7030_s7, [#allocation4]  }
 0x3b4   :  { %4970 = dma.done.wait [#allocation4], 128  }
 0x3b5   :  { %4971 = vsyncadd [#allocation4], 4294967168 }
 0x3b6   :  { %3909 = vsyncpa [#allocation4], 1 }

</bundles_post_ra>
